<compile_context>
chip_gen: v6e
topology: v6e:2x2x1
jax: 0.10.0
libtpu: 0.0.40
codegen_flags: <defaults>
</compile_context>

<pallas_src>
import functools

import jax
import jax.numpy as jnp
from jax import lax
from jax.experimental import pallas as pl
from jax.experimental.pallas import tpu as pltpu


# ----------------------------- fused MSRB kernel ----------------------------
def _msrb_kernel(x_ref, w1_ref, b1_ref, w2_ref, b2_ref, wcf_ref, bcf_ref,
                 o_ref, *, K):
    # x_ref : (H, W, C)           one batch image (NHWC, batch squeezed)
    # w1_ref: (K*K*C,   2C)       fused [pad(w3_1) | w5_1] flattened HWIO
    # b1_ref: (1, 2C)
    # w2_ref: (K*K*2C,  4C)       fused [pad(w3_2) | w5_2] flattened HWIO
    # b2_ref: (1, 4C)
    # wcf_ref:(4C, C)  bcf_ref:(1, C)
    # o_ref : (H, W, C)
    H, W, C = x_ref.shape
    P = K // 2

    def conv_same_relu(x, w_ref_, b_ref_):
        """KxK 'same' conv + bias + ReLU as a single im2col matmul."""
        cin = x.shape[-1]
        dt = x.dtype
        # Spatial zero padding entirely in VMEM (no HBM pass).
        zrow = jnp.zeros((P, W, cin), dt)
        xp = jnp.concatenate([zrow, x, zrow], axis=0)            # (H+2P, W, cin)
        zcol = jnp.zeros((H + 2 * P, P, cin), dt)
        xp = jnp.concatenate([zcol, xp, zcol], axis=1)           # (H+2P, W+2P, cin)
        # Build the im2col patch once: columns ordered (kh, kw, cin) to match
        # the flattened HWIO weights.
        bands = []
        for kh in range(K):
            band = xp[kh:kh + H, :, :]                           # (H, W+2P, cin)
            shifts = [band[:, kw:kw + W, :] for kw in range(K)]
            bands.append(jnp.concatenate(shifts, axis=-1))       # (H, W, K*cin)
        patch = jnp.concatenate(bands, axis=-1)                  # (H, W, K*K*cin)
        patch = patch.reshape(H * W, K * K * cin)
        # One MXU matmul with K*K*cin contraction; accumulate in f32.
        y = jnp.dot(patch, w_ref_[...], preferred_element_type=jnp.float32)
        y = y + b_ref_[...].astype(jnp.float32)
        return jnp.maximum(y, 0.0)                               # (H*W, cout) f32

    x = x_ref[...]
    dt = x.dtype

    # Stage 1: fused conv3_1 + conv5_1 -> cat1 (2C channels), ReLU applied.
    cat1 = conv_same_relu(x, w1_ref, b1_ref).astype(dt).reshape(H, W, 2 * C)

    # Stage 2: fused conv3_2 + conv5_2 -> cat2 (4C channels), ReLU applied.
    cat2 = conv_same_relu(cat1, w2_ref, b2_ref).astype(dt)        # (H*W, 4C)

    # 1x1 confusion conv + bias + residual add, fused.
    out = jnp.dot(cat2, wcf_ref[...], preferred_element_type=jnp.float32)
    out = out + bcf_ref[...].astype(jnp.float32)
    out = out + x.reshape(H * W, C).astype(jnp.float32)
    o_ref[...] = out.reshape(H, W, C).astype(o_ref.dtype)


# ------------------------------- host wrapper --------------------------------
def _fuse_branch_weights(w3, w5):
    """Embed the 3x3 taps at the center of a 5x5 kernel and concat on cout."""
    w3p = jnp.pad(w3, ((1, 1), (1, 1), (0, 0), (0, 0)))
    return jnp.concatenate([w3p, w5], axis=-1)


def msrb_forward(x_nchw, params):
    """Forward pass matching the PyTorch MSRB module (input/output NCHW)."""
    K = 5
    x = jnp.transpose(x_nchw, (0, 2, 3, 1))                       # -> NHWC
    N, H, W, C = x.shape

    # Fold both stages' 3x3 branch into the 5x5 conv (mathematically identical).
    w1 = _fuse_branch_weights(params["w3_1"], params["w5_1"]).reshape(K * K * C, 2 * C)
    b1 = jnp.concatenate([params["b3_1"], params["b5_1"]]).reshape(1, 2 * C)
    w2 = _fuse_branch_weights(params["w3_2"], params["w5_2"]).reshape(K * K * 2 * C, 4 * C)
    b2 = jnp.concatenate([params["b3_2"], params["b5_2"]]).reshape(1, 4 * C)
    wcf = params["wcf"]                                           # (4C, C)
    bcf = params["bcf"].reshape(1, C)

    itemsize = jnp.dtype(x.dtype).itemsize
    flops = 2 * N * H * W * (K * K * C * 2 * C + K * K * 2 * C * 4 * C + 4 * C * C)
    bytes_accessed = itemsize * (x.size + w1.size + w2.size + wcf.size
                                 + b1.size + b2.size + bcf.size + N * H * W * C)

    kernel = functools.partial(_msrb_kernel, K=K)
    out = pl.pallas_call(
        kernel,
        grid=(N,),
        in_specs=[
            pl.BlockSpec((None, H, W, C), lambda n: (n, 0, 0, 0)),        # x
            pl.BlockSpec((K * K * C, 2 * C), lambda n: (0, 0)),           # w1
            pl.BlockSpec((1, 2 * C), lambda n: (0, 0)),                   # b1
            pl.BlockSpec((K * K * 2 * C, 4 * C), lambda n: (0, 0)),       # w2
            pl.BlockSpec((1, 4 * C), lambda n: (0, 0)),                   # b2
            pl.BlockSpec((4 * C, C), lambda n: (0, 0)),                   # wcf
            pl.BlockSpec((1, C), lambda n: (0, 0)),                       # bcf
        ],
        out_specs=pl.BlockSpec((None, H, W, C), lambda n: (n, 0, 0, 0)),
        out_shape=jax.ShapeDtypeStruct((N, H, W, C), x.dtype),
        compiler_params=pltpu.CompilerParams(
            dimension_semantics=("parallel",),          # megacore on v7x
            vmem_limit_bytes=32 * 1024 * 1024),
        cost_estimate=pl.CostEstimate(flops=flops, transcendentals=0,
                                      bytes_accessed=bytes_accessed),
    )(x, w1, b1, w2, b2, wcf, bcf)
    return jnp.transpose(out, (0, 3, 1, 2))                        # -> NCHW


# ----------------------------- parameters -----------------------------------
def init_msrb_params(key, C):
    """Deterministic synthetic parameters matching MSRB(input_channels=C)."""
    ks = jax.random.split(key, 10)

    def conv_w(k, kh, cin, cout):
        scale = 1.0 / jnp.sqrt(jnp.float32(kh * kh * cin))
        return jax.random.uniform(k, (kh, kh, cin, cout), jnp.float32,
                                  -scale, scale)

    def conv_b(k, cout, fan_in):
        scale = 1.0 / jnp.sqrt(jnp.float32(fan_in))
        return jax.random.uniform(k, (cout,), jnp.float32, -scale, scale)

    return {
        "w3_1": conv_w(ks[0], 3, C, C),         "b3_1": conv_b(ks[1], C, 9 * C),
        "w5_1": conv_w(ks[2], 5, C, C),         "b5_1": conv_b(ks[3], C, 25 * C),
        "w3_2": conv_w(ks[4], 3, 2 * C, 2 * C), "b3_2": conv_b(ks[5], 2 * C, 9 * 2 * C),
        "w5_2": conv_w(ks[6], 5, 2 * C, 2 * C), "b5_2": conv_b(ks[7], 2 * C, 25 * 2 * C),
        "wcf": conv_w(ks[8], 1, 4 * C, C)[0, 0],  # (4C, C)
        "bcf": conv_b(ks[9], C, 4 * C),
    }


# ----------------------------- reference (pure JAX) --------------------------
def _conv_ref(x, w, b, relu):
    y = lax.conv_general_dilated(
        x, w, window_strides=(1, 1), padding="SAME",
        dimension_numbers=("NHWC", "HWIO", "NHWC"))
    y = y + b.reshape(1, 1, 1, -1)
    return jnp.maximum(y, 0.0) if relu else y


def msrb_reference(x_nchw, p):
    x = jnp.transpose(x_nchw, (0, 2, 3, 1))
    o31 = _conv_ref(x, p["w3_1"], p["b3_1"], True)
    o51 = _conv_ref(x, p["w5_1"], p["b5_1"], True)
    cat1 = jnp.concatenate([o31, o51], axis=-1)
    o32 = _conv_ref(cat1, p["w3_2"], p["b3_2"], True)
    o52 = _conv_ref(cat1, p["w5_2"], p["b5_2"], True)
    cat2 = jnp.concatenate([o32, o52], axis=-1)
    out = jnp.einsum("nhwi,io->nhwo", cat2, p["wcf"]) + p["bcf"].reshape(1, 1, 1, -1)
    out = out + x
    return jnp.transpose(out, (0, 3, 1, 2))


if __name__ == "__main__":
    key = jax.random.PRNGKey(0)
    kx, kp = jax.random.split(key)

    N, C, H, W = 2, 4, 16, 16            # NCHW input, MSRB(input_channels=4)
    x = jax.random.normal(kx, (N, C, H, W), jnp.float32)
    params = init_msrb_params(kp, C)

    out = jax.block_until_ready(msrb_forward(x, params))
    assert out.shape == (N, C, H, W), out.shape

    ref = jax.block_until_ready(msrb_reference(x, params))
    if not jnp.allclose(out, ref, atol=1e-4, rtol=1e-4):
        raise AssertionError("Pallas MSRB output mismatch vs pure-JAX reference")

    print("KERNEL_OK")
</pallas_src>

<mosaic_0001>
module attributes {stable_mosaic.version = 11 : i64} {
  func.func @_msrb_kernel(%arg0: i32, %arg1: memref<1x16x16x4xf32, #tpu.memory_space<vmem>>, %arg2: memref<100x8xf32, #tpu.memory_space<vmem>>, %arg3: memref<1x8xf32, #tpu.memory_space<vmem>>, %arg4: memref<200x16xf32, #tpu.memory_space<vmem>>, %arg5: memref<1x16xf32, #tpu.memory_space<vmem>>, %arg6: memref<16x4xf32, #tpu.memory_space<vmem>>, %arg7: memref<1x4xf32, #tpu.memory_space<vmem>>, %arg8: memref<1x16x16x4xf32, #tpu.memory_space<vmem>>) attributes {dimension_semantics = [#tpu.dimension_semantics<parallel>], iteration_bounds = array<i64: 2>, scalar_prefetch = 0 : i64, scratch_operands = 0 : i64, tpu.core_type = #tpu.core_type<tc>, window_params = [{transform_indices = @transform_0, window_bounds = array<i64: 1, 16, 16, 4>}, {pipeline_mode = #tpu.pipeline_mode<synchronous>, transform_indices = @transform_1, window_bounds = array<i64: 100, 8>}, {pipeline_mode = #tpu.pipeline_mode<synchronous>, transform_indices = @transform_2, window_bounds = array<i64: 1, 8>}, {pipeline_mode = #tpu.pipeline_mode<synchronous>, transform_indices = @transform_3, window_bounds = array<i64: 200, 16>}, {pipeline_mode = #tpu.pipeline_mode<synchronous>, transform_indices = @transform_4, window_bounds = array<i64: 1, 16>}, {pipeline_mode = #tpu.pipeline_mode<synchronous>, transform_indices = @transform_5, window_bounds = array<i64: 16, 4>}, {pipeline_mode = #tpu.pipeline_mode<synchronous>, transform_indices = @transform_6, window_bounds = array<i64: 1, 4>}, {transform_indices = @transform_7, window_bounds = array<i64: 1, 16, 16, 4>}]} {
    %c0 = arith.constant 0 : index
    %c0_0 = arith.constant 0 : index
    %c0_1 = arith.constant 0 : index
    %c0_2 = arith.constant 0 : index
    %0 = vector.load %arg1[%c0, %c0_0, %c0_1, %c0_2] : memref<1x16x16x4xf32, #tpu.memory_space<vmem>>, vector<1x16x16x4xf32>
    %1 = vector.shape_cast %0 : vector<1x16x16x4xf32> to vector<16x16x4xf32>
    %cst = arith.constant 0.000000e+00 : f32
    %2 = vector.broadcast %cst : f32 to vector<2x16x4xf32>
    %3 = tpu.concatenate %2, %1, %2 in 0 : vector<2x16x4xf32>, vector<16x16x4xf32>, vector<2x16x4xf32> -> vector<20x16x4xf32>
    %cst_3 = arith.constant 0.000000e+00 : f32
    %4 = vector.broadcast %cst_3 : f32 to vector<20x2x4xf32>
    %5 = tpu.concatenate %4, %3, %4 in 1 : vector<20x2x4xf32>, vector<20x16x4xf32>, vector<20x2x4xf32> -> vector<20x20x4xf32>
    %6 = vector.extract_strided_slice %5 {offsets = [0, 0, 0], sizes = [16, 20, 4], strides = [1, 1, 1]} : vector<20x20x4xf32> to vector<16x20x4xf32>
    %7 = vector.extract_strided_slice %6 {offsets = [0, 0, 0], sizes = [16, 16, 4], strides = [1, 1, 1]} : vector<16x20x4xf32> to vector<16x16x4xf32>
    %8 = vector.extract_strided_slice %6 {offsets = [0, 1, 0], sizes = [16, 16, 4], strides = [1, 1, 1]} : vector<16x20x4xf32> to vector<16x16x4xf32>
    %9 = vector.extract_strided_slice %6 {offsets = [0, 2, 0], sizes = [16, 16, 4], strides = [1, 1, 1]} : vector<16x20x4xf32> to vector<16x16x4xf32>
    %10 = vector.extract_strided_slice %6 {offsets = [0, 3, 0], sizes = [16, 16, 4], strides = [1, 1, 1]} : vector<16x20x4xf32> to vector<16x16x4xf32>
    %11 = vector.extract_strided_slice %6 {offsets = [0, 4, 0], sizes = [16, 16, 4], strides = [1, 1, 1]} : vector<16x20x4xf32> to vector<16x16x4xf32>
    %12 = tpu.concatenate %7, %8, %9, %10, %11 in 2 : vector<16x16x4xf32>, vector<16x16x4xf32>, vector<16x16x4xf32>, vector<16x16x4xf32>, vector<16x16x4xf32> -> vector<16x16x20xf32>
    %13 = vector.extract_strided_slice %5 {offsets = [1, 0, 0], sizes = [16, 20, 4], strides = [1, 1, 1]} : vector<20x20x4xf32> to vector<16x20x4xf32>
    %14 = vector.extract_strided_slice %13 {offsets = [0, 0, 0], sizes = [16, 16, 4], strides = [1, 1, 1]} : vector<16x20x4xf32> to vector<16x16x4xf32>
    %15 = vector.extract_strided_slice %13 {offsets = [0, 1, 0], sizes = [16, 16, 4], strides = [1, 1, 1]} : vector<16x20x4xf32> to vector<16x16x4xf32>
    %16 = vector.extract_strided_slice %13 {offsets = [0, 2, 0], sizes = [16, 16, 4], strides = [1, 1, 1]} : vector<16x20x4xf32> to vector<16x16x4xf32>
    %17 = vector.extract_strided_slice %13 {offsets = [0, 3, 0], sizes = [16, 16, 4], strides = [1, 1, 1]} : vector<16x20x4xf32> to vector<16x16x4xf32>
    %18 = vector.extract_strided_slice %13 {offsets = [0, 4, 0], sizes = [16, 16, 4], strides = [1, 1, 1]} : vector<16x20x4xf32> to vector<16x16x4xf32>
    %19 = tpu.concatenate %14, %15, %16, %17, %18 in 2 : vector<16x16x4xf32>, vector<16x16x4xf32>, vector<16x16x4xf32>, vector<16x16x4xf32>, vector<16x16x4xf32> -> vector<16x16x20xf32>
    %20 = vector.extract_strided_slice %5 {offsets = [2, 0, 0], sizes = [16, 20, 4], strides = [1, 1, 1]} : vector<20x20x4xf32> to vector<16x20x4xf32>
    %21 = vector.extract_strided_slice %20 {offsets = [0, 0, 0], sizes = [16, 16, 4], strides = [1, 1, 1]} : vector<16x20x4xf32> to vector<16x16x4xf32>
    %22 = vector.extract_strided_slice %20 {offsets = [0, 1, 0], sizes = [16, 16, 4], strides = [1, 1, 1]} : vector<16x20x4xf32> to vector<16x16x4xf32>
    %23 = vector.extract_strided_slice %20 {offsets = [0, 2, 0], sizes = [16, 16, 4], strides = [1, 1, 1]} : vector<16x20x4xf32> to vector<16x16x4xf32>
    %24 = vector.extract_strided_slice %20 {offsets = [0, 3, 0], sizes = [16, 16, 4], strides = [1, 1, 1]} : vector<16x20x4xf32> to vector<16x16x4xf32>
    %25 = vector.extract_strided_slice %20 {offsets = [0, 4, 0], sizes = [16, 16, 4], strides = [1, 1, 1]} : vector<16x20x4xf32> to vector<16x16x4xf32>
    %26 = tpu.concatenate %21, %22, %23, %24, %25 in 2 : vector<16x16x4xf32>, vector<16x16x4xf32>, vector<16x16x4xf32>, vector<16x16x4xf32>, vector<16x16x4xf32> -> vector<16x16x20xf32>
    %27 = vector.extract_strided_slice %5 {offsets = [3, 0, 0], sizes = [16, 20, 4], strides = [1, 1, 1]} : vector<20x20x4xf32> to vector<16x20x4xf32>
    %28 = vector.extract_strided_slice %27 {offsets = [0, 0, 0], sizes = [16, 16, 4], strides = [1, 1, 1]} : vector<16x20x4xf32> to vector<16x16x4xf32>
    %29 = vector.extract_strided_slice %27 {offsets = [0, 1, 0], sizes = [16, 16, 4], strides = [1, 1, 1]} : vector<16x20x4xf32> to vector<16x16x4xf32>
    %30 = vector.extract_strided_slice %27 {offsets = [0, 2, 0], sizes = [16, 16, 4], strides = [1, 1, 1]} : vector<16x20x4xf32> to vector<16x16x4xf32>
    %31 = vector.extract_strided_slice %27 {offsets = [0, 3, 0], sizes = [16, 16, 4], strides = [1, 1, 1]} : vector<16x20x4xf32> to vector<16x16x4xf32>
    %32 = vector.extract_strided_slice %27 {offsets = [0, 4, 0], sizes = [16, 16, 4], strides = [1, 1, 1]} : vector<16x20x4xf32> to vector<16x16x4xf32>
    %33 = tpu.concatenate %28, %29, %30, %31, %32 in 2 : vector<16x16x4xf32>, vector<16x16x4xf32>, vector<16x16x4xf32>, vector<16x16x4xf32>, vector<16x16x4xf32> -> vector<16x16x20xf32>
    %34 = vector.extract_strided_slice %5 {offsets = [4, 0, 0], sizes = [16, 20, 4], strides = [1, 1, 1]} : vector<20x20x4xf32> to vector<16x20x4xf32>
    %35 = vector.extract_strided_slice %34 {offsets = [0, 0, 0], sizes = [16, 16, 4], strides = [1, 1, 1]} : vector<16x20x4xf32> to vector<16x16x4xf32>
    %36 = vector.extract_strided_slice %34 {offsets = [0, 1, 0], sizes = [16, 16, 4], strides = [1, 1, 1]} : vector<16x20x4xf32> to vector<16x16x4xf32>
    %37 = vector.extract_strided_slice %34 {offsets = [0, 2, 0], sizes = [16, 16, 4], strides = [1, 1, 1]} : vector<16x20x4xf32> to vector<16x16x4xf32>
    %38 = vector.extract_strided_slice %34 {offsets = [0, 3, 0], sizes = [16, 16, 4], strides = [1, 1, 1]} : vector<16x20x4xf32> to vector<16x16x4xf32>
    %39 = vector.extract_strided_slice %34 {offsets = [0, 4, 0], sizes = [16, 16, 4], strides = [1, 1, 1]} : vector<16x20x4xf32> to vector<16x16x4xf32>
    %40 = tpu.concatenate %35, %36, %37, %38, %39 in 2 : vector<16x16x4xf32>, vector<16x16x4xf32>, vector<16x16x4xf32>, vector<16x16x4xf32>, vector<16x16x4xf32> -> vector<16x16x20xf32>
    %41 = tpu.concatenate %12, %19, %26, %33, %40 in 2 : vector<16x16x20xf32>, vector<16x16x20xf32>, vector<16x16x20xf32>, vector<16x16x20xf32>, vector<16x16x20xf32> -> vector<16x16x100xf32>
    %42 = vector.shape_cast %41 : vector<16x16x100xf32> to vector<256x100xf32>
    %c0_4 = arith.constant 0 : index
    %c0_5 = arith.constant 0 : index
    %43 = vector.load %arg2[%c0_4, %c0_5] : memref<100x8xf32, #tpu.memory_space<vmem>>, vector<100x8xf32>
    %cst_6 = arith.constant dense<0.000000e+00> : vector<256x8xf32>
    %44 = tpu.matmul %42, %43, %cst_6 {dimension_numbers = #tpu.dot_dimension_numbers<[1], [0], [0], [1], [0, 0, 1, 1], [], []>} : vector<256x100xf32>, vector<100x8xf32>, vector<256x8xf32> -> vector<256x8xf32>
    %c0_7 = arith.constant 0 : index
    %c0_8 = arith.constant 0 : index
    %45 = vector.load %arg3[%c0_7, %c0_8] : memref<1x8xf32, #tpu.memory_space<vmem>>, vector<1x8xf32>
    %46 = vector.broadcast %45 : vector<1x8xf32> to vector<256x8xf32>
    %47 = arith.addf %44, %46 : vector<256x8xf32>
    %cst_9 = arith.constant 0.000000e+00 : f32
    %48 = vector.broadcast %cst_9 : f32 to vector<256x8xf32>
    %49 = arith.maximumf %47, %48 : vector<256x8xf32>
    %50 = vector.shape_cast %49 : vector<256x8xf32> to vector<16x16x8xf32>
    %cst_10 = arith.constant 0.000000e+00 : f32
    %51 = vector.broadcast %cst_10 : f32 to vector<2x16x8xf32>
    %52 = tpu.concatenate %51, %50, %51 in 0 : vector<2x16x8xf32>, vector<16x16x8xf32>, vector<2x16x8xf32> -> vector<20x16x8xf32>
    %cst_11 = arith.constant 0.000000e+00 : f32
    %53 = vector.broadcast %cst_11 : f32 to vector<20x2x8xf32>
    %54 = tpu.concatenate %53, %52, %53 in 1 : vector<20x2x8xf32>, vector<20x16x8xf32>, vector<20x2x8xf32> -> vector<20x20x8xf32>
    %55 = vector.extract_strided_slice %54 {offsets = [0, 0, 0], sizes = [16, 20, 8], strides = [1, 1, 1]} : vector<20x20x8xf32> to vector<16x20x8xf32>
    %56 = vector.extract_strided_slice %55 {offsets = [0, 0, 0], sizes = [16, 16, 8], strides = [1, 1, 1]} : vector<16x20x8xf32> to vector<16x16x8xf32>
    %57 = vector.extract_strided_slice %55 {offsets = [0, 1, 0], sizes = [16, 16, 8], strides = [1, 1, 1]} : vector<16x20x8xf32> to vector<16x16x8xf32>
    %58 = vector.extract_strided_slice %55 {offsets = [0, 2, 0], sizes = [16, 16, 8], strides = [1, 1, 1]} : vector<16x20x8xf32> to vector<16x16x8xf32>
    %59 = vector.extract_strided_slice %55 {offsets = [0, 3, 0], sizes = [16, 16, 8], strides = [1, 1, 1]} : vector<16x20x8xf32> to vector<16x16x8xf32>
    %60 = vector.extract_strided_slice %55 {offsets = [0, 4, 0], sizes = [16, 16, 8], strides = [1, 1, 1]} : vector<16x20x8xf32> to vector<16x16x8xf32>
    %61 = tpu.concatenate %56, %57, %58, %59, %60 in 2 : vector<16x16x8xf32>, vector<16x16x8xf32>, vector<16x16x8xf32>, vector<16x16x8xf32>, vector<16x16x8xf32> -> vector<16x16x40xf32>
    %62 = vector.extract_strided_slice %54 {offsets = [1, 0, 0], sizes = [16, 20, 8], strides = [1, 1, 1]} : vector<20x20x8xf32> to vector<16x20x8xf32>
    %63 = vector.extract_strided_slice %62 {offsets = [0, 0, 0], sizes = [16, 16, 8], strides = [1, 1, 1]} : vector<16x20x8xf32> to vector<16x16x8xf32>
    %64 = vector.extract_strided_slice %62 {offsets = [0, 1, 0], sizes = [16, 16, 8], strides = [1, 1, 1]} : vector<16x20x8xf32> to vector<16x16x8xf32>
    %65 = vector.extract_strided_slice %62 {offsets = [0, 2, 0], sizes = [16, 16, 8], strides = [1, 1, 1]} : vector<16x20x8xf32> to vector<16x16x8xf32>
    %66 = vector.extract_strided_slice %62 {offsets = [0, 3, 0], sizes = [16, 16, 8], strides = [1, 1, 1]} : vector<16x20x8xf32> to vector<16x16x8xf32>
    %67 = vector.extract_strided_slice %62 {offsets = [0, 4, 0], sizes = [16, 16, 8], strides = [1, 1, 1]} : vector<16x20x8xf32> to vector<16x16x8xf32>
    %68 = tpu.concatenate %63, %64, %65, %66, %67 in 2 : vector<16x16x8xf32>, vector<16x16x8xf32>, vector<16x16x8xf32>, vector<16x16x8xf32>, vector<16x16x8xf32> -> vector<16x16x40xf32>
    %69 = vector.extract_strided_slice %54 {offsets = [2, 0, 0], sizes = [16, 20, 8], strides = [1, 1, 1]} : vector<20x20x8xf32> to vector<16x20x8xf32>
    %70 = vector.extract_strided_slice %69 {offsets = [0, 0, 0], sizes = [16, 16, 8], strides = [1, 1, 1]} : vector<16x20x8xf32> to vector<16x16x8xf32>
    %71 = vector.extract_strided_slice %69 {offsets = [0, 1, 0], sizes = [16, 16, 8], strides = [1, 1, 1]} : vector<16x20x8xf32> to vector<16x16x8xf32>
    %72 = vector.extract_strided_slice %69 {offsets = [0, 2, 0], sizes = [16, 16, 8], strides = [1, 1, 1]} : vector<16x20x8xf32> to vector<16x16x8xf32>
    %73 = vector.extract_strided_slice %69 {offsets = [0, 3, 0], sizes = [16, 16, 8], strides = [1, 1, 1]} : vector<16x20x8xf32> to vector<16x16x8xf32>
    %74 = vector.extract_strided_slice %69 {offsets = [0, 4, 0], sizes = [16, 16, 8], strides = [1, 1, 1]} : vector<16x20x8xf32> to vector<16x16x8xf32>
    %75 = tpu.concatenate %70, %71, %72, %73, %74 in 2 : vector<16x16x8xf32>, vector<16x16x8xf32>, vector<16x16x8xf32>, vector<16x16x8xf32>, vector<16x16x8xf32> -> vector<16x16x40xf32>
    %76 = vector.extract_strided_slice %54 {offsets = [3, 0, 0], sizes = [16, 20, 8], strides = [1, 1, 1]} : vector<20x20x8xf32> to vector<16x20x8xf32>
    %77 = vector.extract_strided_slice %76 {offsets = [0, 0, 0], sizes = [16, 16, 8], strides = [1, 1, 1]} : vector<16x20x8xf32> to vector<16x16x8xf32>
    %78 = vector.extract_strided_slice %76 {offsets = [0, 1, 0], sizes = [16, 16, 8], strides = [1, 1, 1]} : vector<16x20x8xf32> to vector<16x16x8xf32>
    %79 = vector.extract_strided_slice %76 {offsets = [0, 2, 0], sizes = [16, 16, 8], strides = [1, 1, 1]} : vector<16x20x8xf32> to vector<16x16x8xf32>
    %80 = vector.extract_strided_slice %76 {offsets = [0, 3, 0], sizes = [16, 16, 8], strides = [1, 1, 1]} : vector<16x20x8xf32> to vector<16x16x8xf32>
    %81 = vector.extract_strided_slice %76 {offsets = [0, 4, 0], sizes = [16, 16, 8], strides = [1, 1, 1]} : vector<16x20x8xf32> to vector<16x16x8xf32>
    %82 = tpu.concatenate %77, %78, %79, %80, %81 in 2 : vector<16x16x8xf32>, vector<16x16x8xf32>, vector<16x16x8xf32>, vector<16x16x8xf32>, vector<16x16x8xf32> -> vector<16x16x40xf32>
    %83 = vector.extract_strided_slice %54 {offsets = [4, 0, 0], sizes = [16, 20, 8], strides = [1, 1, 1]} : vector<20x20x8xf32> to vector<16x20x8xf32>
    %84 = vector.extract_strided_slice %83 {offsets = [0, 0, 0], sizes = [16, 16, 8], strides = [1, 1, 1]} : vector<16x20x8xf32> to vector<16x16x8xf32>
    %85 = vector.extract_strided_slice %83 {offsets = [0, 1, 0], sizes = [16, 16, 8], strides = [1, 1, 1]} : vector<16x20x8xf32> to vector<16x16x8xf32>
    %86 = vector.extract_strided_slice %83 {offsets = [0, 2, 0], sizes = [16, 16, 8], strides = [1, 1, 1]} : vector<16x20x8xf32> to vector<16x16x8xf32>
    %87 = vector.extract_strided_slice %83 {offsets = [0, 3, 0], sizes = [16, 16, 8], strides = [1, 1, 1]} : vector<16x20x8xf32> to vector<16x16x8xf32>
    %88 = vector.extract_strided_slice %83 {offsets = [0, 4, 0], sizes = [16, 16, 8], strides = [1, 1, 1]} : vector<16x20x8xf32> to vector<16x16x8xf32>
    %89 = tpu.concatenate %84, %85, %86, %87, %88 in 2 : vector<16x16x8xf32>, vector<16x16x8xf32>, vector<16x16x8xf32>, vector<16x16x8xf32>, vector<16x16x8xf32> -> vector<16x16x40xf32>
    %90 = tpu.concatenate %61, %68, %75, %82, %89 in 2 : vector<16x16x40xf32>, vector<16x16x40xf32>, vector<16x16x40xf32>, vector<16x16x40xf32>, vector<16x16x40xf32> -> vector<16x16x200xf32>
    %91 = vector.shape_cast %90 : vector<16x16x200xf32> to vector<256x200xf32>
    %c0_12 = arith.constant 0 : index
    %c0_13 = arith.constant 0 : index
    %92 = vector.load %arg4[%c0_12, %c0_13] : memref<200x16xf32, #tpu.memory_space<vmem>>, vector<200x16xf32>
    %cst_14 = arith.constant dense<0.000000e+00> : vector<256x16xf32>
    %93 = tpu.matmul %91, %92, %cst_14 {dimension_numbers = #tpu.dot_dimension_numbers<[1], [0], [0], [1], [0, 0, 1, 1], [], []>} : vector<256x200xf32>, vector<200x16xf32>, vector<256x16xf32> -> vector<256x16xf32>
    %c0_15 = arith.constant 0 : index
    %c0_16 = arith.constant 0 : index
    %94 = vector.load %arg5[%c0_15, %c0_16] : memref<1x16xf32, #tpu.memory_space<vmem>>, vector<1x16xf32>
    %95 = vector.broadcast %94 : vector<1x16xf32> to vector<256x16xf32>
    %96 = arith.addf %93, %95 : vector<256x16xf32>
    %cst_17 = arith.constant 0.000000e+00 : f32
    %97 = vector.broadcast %cst_17 : f32 to vector<256x16xf32>
    %98 = arith.maximumf %96, %97 : vector<256x16xf32>
    %c0_18 = arith.constant 0 : index
    %c0_19 = arith.constant 0 : index
    %99 = vector.load %arg6[%c0_18, %c0_19] : memref<16x4xf32, #tpu.memory_space<vmem>>, vector<16x4xf32>
    %cst_20 = arith.constant dense<0.000000e+00> : vector<256x4xf32>
    %100 = tpu.matmul %98, %99, %cst_20 {dimension_numbers = #tpu.dot_dimension_numbers<[1], [0], [0], [1], [0, 0, 1, 1], [], []>} : vector<256x16xf32>, vector<16x4xf32>, vector<256x4xf32> -> vector<256x4xf32>
    %c0_21 = arith.constant 0 : index
    %c0_22 = arith.constant 0 : index
    %101 = vector.load %arg7[%c0_21, %c0_22] : memref<1x4xf32, #tpu.memory_space<vmem>>, vector<1x4xf32>
    %102 = vector.broadcast %101 : vector<1x4xf32> to vector<256x4xf32>
    %103 = arith.addf %100, %102 : vector<256x4xf32>
    %104 = vector.shape_cast %1 : vector<16x16x4xf32> to vector<256x4xf32>
    %105 = arith.addf %103, %104 : vector<256x4xf32>
    %106 = vector.shape_cast %105 : vector<256x4xf32> to vector<16x16x4xf32>
    %c0_23 = arith.constant 0 : index
    %c0_24 = arith.constant 0 : index
    %c0_25 = arith.constant 0 : index
    %c0_26 = arith.constant 0 : index
    %107 = vector.load %arg8[%c0_23, %c0_24, %c0_25, %c0_26] : memref<1x16x16x4xf32, #tpu.memory_space<vmem>>, vector<1x16x16x4xf32>
    %108 = vector.shape_cast %107 : vector<1x16x16x4xf32> to vector<16x16x4xf32>
    %109 = vector.shape_cast %106 : vector<16x16x4xf32> to vector<1x16x16x4xf32>
    tpu.vector_store %arg8[%c0_23, %c0_24, %c0_25, %c0_26], %109 {strides = array<i32>} : memref<1x16x16x4xf32, #tpu.memory_space<vmem>>, vector<1x16x16x4xf32>,
    return
  }
  func.func @transform_0(%arg0: i32) -> (i32, i32, i32, i32) {
    %c0_i32 = arith.constant 0 : i32
    %c0_i32_0 = arith.constant 0 : i32
    %c0_i32_1 = arith.constant 0 : i32
    %c0_i32_2 = arith.constant 0 : i32
    return %arg0, %c0_i32, %c0_i32_0, %c0_i32_1 : i32, i32, i32, i32
  }
  func.func @transform_1(%arg0: i32) -> (i32, i32) {
    %c0_i32 = arith.constant 0 : i32
    %c0_i32_0 = arith.constant 0 : i32
    %c0_i32_1 = arith.constant 0 : i32
    return %c0_i32, %c0_i32_0 : i32, i32
  }
  func.func @transform_2(%arg0: i32) -> (i32, i32) {
    %c0_i32 = arith.constant 0 : i32
    %c0_i32_0 = arith.constant 0 : i32
    %c0_i32_1 = arith.constant 0 : i32
    return %c0_i32, %c0_i32_0 : i32, i32
  }
  func.func @transform_3(%arg0: i32) -> (i32, i32) {
    %c0_i32 = arith.constant 0 : i32
    %c0_i32_0 = arith.constant 0 : i32
    %c0_i32_1 = arith.constant 0 : i32
    return %c0_i32, %c0_i32_0 : i32, i32
  }
  func.func @transform_4(%arg0: i32) -> (i32, i32) {
    %c0_i32 = arith.constant 0 : i32
    %c0_i32_0 = arith.constant 0 : i32
    %c0_i32_1 = arith.constant 0 : i32
    return %c0_i32, %c0_i32_0 : i32, i32
  }
  func.func @transform_5(%arg0: i32) -> (i32, i32) {
    %c0_i32 = arith.constant 0 : i32
    %c0_i32_0 = arith.constant 0 : i32
    %c0_i32_1 = arith.constant 0 : i32
    return %c0_i32, %c0_i32_0 : i32, i32
  }
  func.func @transform_6(%arg0: i32) -> (i32, i32) {
    %c0_i32 = arith.constant 0 : i32
    %c0_i32_0 = arith.constant 0 : i32
    %c0_i32_1 = arith.constant 0 : i32
    return %c0_i32, %c0_i32_0 : i32, i32
  }
  func.func @transform_7(%arg0: i32) -> (i32, i32, i32, i32) {
    %c0_i32 = arith.constant 0 : i32
    %c0_i32_0 = arith.constant 0 : i32
    %c0_i32_1 = arith.constant 0 : i32
    %c0_i32_2 = arith.constant 0 : i32
    return %arg0, %c0_i32, %c0_i32_0, %c0_i32_1 : i32, i32, i32, i32
  }
}

</mosaic_0001>

<bundles_post_ra>
// kernel: tpu_custom_call.1
= control target key start
LH: loop header
LB: loop body
LE: loop exit
PB: predicated region body
PF: predicated region fallthrough
CT: control target
= control target key end

     0   :  { %s5476_s24 = smov 0   ;;  %s9248_s0 = inlined_call_operand.vmem [shape: f32[2,16,16,4], index: 0, kind: input, shape index: {}]   ;;  %s9249_s1 = inlined_call_operand.vmem [shape: f32[100,8], index: 1, kind: input, shape index: {}]   ;;  %s9250_s2 = inlined_call_operand.vmem [shape: f32[1,8], index: 2, kind: input, shape index: {}]   ;;  %s9251_s3 = inlined_call_operand.vmem [shape: f32[200,16], index: 3, kind: input, shape index: {}]   ;;  %s9252_s4 = inlined_call_operand.vmem [shape: f32[1,16], index: 4, kind: input, shape index: {}]   ;;  %s9253_s5 = inlined_call_operand.vmem [shape: f32[16,4], index: 5, kind: input, shape index: {}]   ;;  %s9254_s6 = inlined_call_operand.vmem [shape: f32[1,4], index: 6, kind: input, shape index: {}]   ;;  %s9255_s7 = inlined_call_operand.vmem [shape: f32[2,16,16,4], index: 7, kind: output, shape index: {}]  }
   0x1 LB: > { %s4760_s25 = sadd.s32 4294967295, %s5422_s24   ;;  %p4764_p0 = scmp.ge.s32.totalorder %s5422_s24, 1  ;;  %s5422_s24 = sphi %s5476_s24, %s17_s24  }
   0x2   : > { %p237_p1 = scmp.lt.s32.totalorder %s5422_s24, 3 }
   0x4   : > { %p238_p2 = pnand %p4764_p0, %p237_p1 }
   0x6   : > { %241 = sbr.rel (%p238_p2) target bundleno = 1593 (0x639), region = 48 }
   0xb   : > { %vm344_vm0 = vcmask 1041408   ;;  %p269_p3 = scmp.lt.s32.totalorder %s4760_s25, 1  ;;  %v9256_v0 = vmov 0.0   ;;  %vm509_vm1 = vcmask 1046528   ;;  %s5425_s30 = smov 4   ;;  %vm675_vm2 = vcmask 1045504  }
   0xc   : > { %v5485_v1 = vrot.slane %v9256_v0, 6  ;;  %5078 = vmatprep.subr.mxu1 %v9256_v0  ;;  %s5426_s8 = smov 8   ;;  %vm841_vm3 = vcmask 1044480   ;;  %vm1007_vm4 = vcmask 1043456   ;;  %s5427_s9 = smov 12   ;;  %vm1173_vm5 = vcmask 31744  }
   0xd   : > { %s9499_s25 = smov (!%p269_p3, %s4760_s25), 1  ;;  %s5428_s10 = smov 16   ;;  %vm1204_vm6 = vcmask 64512   ;;  %vm1235_vm7 = vcmask 97280   ;;  %vm1266_vm8 = vcmask 130048   ;;  %vm1817_vm9 = vcmask 162816  }
   0xe   : > { %9324 = vst [vmem:[#allocation2_spill] sm:$0xff] %v5485_v1  ;;  %v5492_v2 = vsel %vm344_vm0, 0.0, %v5485_v1  ;;  %v5496_v3 = vsel %vm344_vm0, %v5485_v1, 0.0  ;;  %v511_v4 = vrot.slane %v5485_v1, 1  ;;  %s4871_s26 = sshll.u32 %s9499_s25, 8  ;;  %s5429_s16 = smov 20  }
   0xf   : > { %9325 = vst [vmem:[#allocation3_spill] sm:$0xff] %v5492_v2  ;;  %v510_v5 = vrot.slane %v5492_v2, 1  ;;  %v513_v6 = vrot.slane %v5496_v3, 1  ;;  %s5507_s29 = scalar_lea.vmem %s9248_s0, %s4871_s26  ;;  %s5430_s19 = smov 40   ;;  %vm1850_vm10 = vcmask 326656   ;;  %vm1883_vm11 = vcmask 490496  }
  0x10   : > { %v279_v9 = vld [vmem:[%s5507_s29] sm:$0xff]  ;;  %v280_v10 = vld [vmem:[%s5507_s29 + $0x8] sm:$0xff]  ;;  %v281_v11 = vld [vmem:[%s5507_s29 + $0x10] sm:$0xff]  ;;  %s5431_s27 = smov 60   ;;  %s5432_s28 = smov 80   ;;  %vm1916_vm12 = vcmask 654336  }
  0x11   : > { %v5510_v7 = vsel %vm509_vm1, %v510_v5, %v511_v4  ;;  %v5513_v8 = vsel %vm509_vm1, %v511_v4, %v513_v6  ;;  %v347_v13 = vrot.slane %v279_v9, 6  ;;  %v348_v14 = vrot.slane %v280_v10, 6  ;;  %v282_v15 = vld [vmem:[%s5507_s29 + $0x18] sm:$0xff]  ;;  %v283_v17 = vld [vmem:[%s5507_s29 + $0x20] sm:$0xff]  ;;  %v284_v18 = vld [vmem:[%s5507_s29 + $0x28] sm:$0xff]  ;;  %s5433_s11 = smov 24   ;;  %s9116_s18 = scalar_lea.vmem %s9255_s7, %s4871_s26 }
  0x12   : > { %9326 = vst [vmem:[#allocation4_spill] sm:$0xff] %v5510_v7  ;;  %9327 = vst [vmem:[#allocation5_spill] sm:$0xff] %v5513_v8  ;;  %v5148_v12 = vpack.i.bf16 %v5513_v8, %v5510_v7  ;;  %v350_v16 = vrot.slane %v281_v11, 6  ;;  %v351_v19 = vrot.slane %v282_v15, 6  ;;  %v353_v20 = vrot.slane %v283_v17, 6  ;;  %v285_v34 = vld [vmem:[%s5507_s29 + $0x30] sm:$0xff] }
  0x13   : > { %v354_v21 = vrot.slane %v284_v18, 6  ;;  %v5525_v22 = vsel %vm344_vm0, %v347_v13, %v348_v14  ;;  %v5528_v23 = vsel %vm344_vm0, %v348_v14, 0.0  ;;  %v5531_v24 = vsel %vm344_vm0, 0.0, %v347_v13  ;;  %v286_v35 = vld [vmem:[%s5507_s29 + $0x38] sm:$0xff]  ;;  %v287_v40 = vld [vmem:[%s5507_s29 + $0x40] sm:$0xff]  ;;  %v288_v41 = vld [vmem:[%s5507_s29 + $0x48] sm:$0xff] }
  0x14   : > { %5149 = vrot.lane.b32.xlu0 %v5148_v12, %s5425_s30  ;;  %v5534_v25 = vsel %vm344_vm0, 0.0, %v350_v16  ;;  %v516_v26 = vrot.slane %v5525_v22, 1  ;;  %v518_v27 = vrot.slane %v5528_v23, 1  ;;  %v515_v28 = vrot.slane %v5531_v24, 1  ;;  %v289_v50 = vld [vmem:[%s5507_s29 + $0x50] sm:$0xff]  ;;  %v290_v57 = vld [vmem:[%s5507_s29 + $0x58] sm:$0xff] }
  0x15   : > { %v5540_v29 = vsel %vm344_vm0, %v350_v16, %v351_v19  ;;  %v520_v30 = vrot.slane %v5534_v25, 1  ;;  %v5545_v32 = vsel %vm344_vm0, %v351_v19, 0.0  ;;  %v5548_v33 = vsel %vm344_vm0, %v353_v20, %v354_v21  ;;  %v291_v6 = vld [vmem:[%s5507_s29 + $0x60] sm:$0xff]  ;;  %v292_v10 = vld [vmem:[%s5507_s29 + $0x68] sm:$0xff]  ;;  %v293_v19 = vld [vmem:[%s5507_s29 + $0x70] sm:$0xff]  ;;  %s5434_s12 = smov 32  }
  0x16   : > { %v521_v31 = vrot.slane %v5540_v29, 1  ;;  %v519_v36 = vsel %vm509_vm1, %v516_v26, %v518_v27  ;;  %v517_v37 = vsel %vm509_vm1, %v515_v28, %v516_v26  ;;  %v523_v38 = vrot.slane %v5545_v32, 1  ;;  %s5435_s13 = smov 120  }
  0x17   : > { %v5556_v39 = vsel %vm344_vm0, 0.0, %v353_v20  ;;  %591 = vrot.lane.b32.xlu1 %v519_v36, %s5425_s30  ;;  %v526_v44 = vrot.slane %v5548_v33, 1  ;;  %v5566_v45 = vsel %vm344_vm0, %v354_v21, 0.0  ;;  %v356_v48 = vrot.slane %v285_v34, 6  ;;  %v294_v20 = vld [vmem:[%s5507_s29 + $0x78] sm:$0xff]  ;;  %v295_v36 = vld [vmem:[%s5507_s29 + $0x80] sm:$0xff] }
  0x18   : > { %589 = vrot.lane.b32.xlu0 %v517_v37, %s5425_s30  ;;  %v522_v42 = vsel %vm509_vm1, %v520_v30, %v521_v31  ;;  %v525_v43 = vrot.slane %v5556_v39, 1  ;;  %v524_v46 = vsel %vm509_vm1, %v521_v31, %v523_v38  ;;  %v528_v47 = vrot.slane %v5566_v45, 1 }
  0x19   : > { %v357_v49 = vrot.slane %v286_v35, 6  ;;  %v359_v51 = vrot.slane %v287_v40, 6  ;;  %v360_v52 = vrot.slane %v288_v41, 6  ;;  %v5576_v55 = vsel %vm344_vm0, 0.0, %v356_v48 }
  0x1a   : > { %v527_v53 = vsel %vm509_vm1, %v525_v43, %v526_v44  ;;  %v529_v58 = vsel %vm509_vm1, %v526_v44, %v528_v47  ;;  %v530_v59 = vrot.slane %v5576_v55, 1  ;;  %v362_v61 = vrot.slane %v289_v50, 6 }
  0x1b   : > { %v5573_v54 = vsel %vm344_vm0, %v356_v48, %v357_v49  ;;  %v5579_v56 = vsel %vm344_vm0, %v357_v49, 0.0  ;;  %593 = vrot.lane.b32.xlu1 %v522_v42, %s5425_s30  ;;  %v5587_v60 = vsel %vm344_vm0, %v359_v51, %v360_v52  ;;  %v5592_v4 = vsel %vm344_vm0, 0.0, %v359_v51  ;;  %v296_v42 = vld [vmem:[%s5507_s29 + $0x88] sm:$0xff] }
  0x1c   : > { %595 = vrot.lane.b32.xlu0 %v524_v46, %s5425_s30  ;;  %v531_v62 = vrot.slane %v5573_v54, 1  ;;  %v533_v63 = vrot.slane %v5579_v56, 1  ;;  %v5595_v5 = vsel %vm344_vm0, %v360_v52, 0.0  ;;  %v363_v9 = vrot.slane %v290_v57, 6  ;;  %v297_v57 = vld [vmem:[%s5507_s29 + $0x90] sm:$0xff] }
  0x1d   : > { %v535_v11 = vrot.slane %v5592_v4, 1  ;;  %v536_v12 = vrot.slane %v5587_v60, 1  ;;  %v538_v13 = vrot.slane %v5595_v5, 1  ;;  %v365_v14 = vrot.slane %v291_v6, 6 }
  0x1e   : > { %v532_v15 = vsel %vm509_vm1, %v530_v59, %v531_v62  ;;  %v534_v16 = vsel %vm509_vm1, %v531_v62, %v533_v63  ;;  %v5607_v17 = vsel %vm344_vm0, 0.0, %v362_v61  ;;  %v366_v18 = vrot.slane %v292_v10, 6 }
  0x1f   : > { %597 = vrot.lane.b32.xlu1 %v527_v53, %s5425_s30  ;;  %9328 = vst [vmem:[#allocation6_spill] sm:$0xff] %v5607_v17  ;;  %v5612_v21 = vsel %vm344_vm0, %v362_v61, %v363_v9  ;;  %v5615_v26 = vsel %vm344_vm0, %v363_v9, 0.0  ;;  %v537_v27 = vsel %vm509_vm1, %v535_v11, %v536_v12  ;;  %v539_v28 = vsel %vm509_vm1, %v536_v12, %v538_v13 }
  0x20   : > { %599 = vrot.lane.b32.xlu0 %v529_v58, %s5425_s30  ;;  %9329 = vst [vmem:[#allocation7_spill] sm:$0xff] %v5612_v21  ;;  %v540_v30 = vrot.slane %v5607_v17, 1  ;;  %v5623_v31 = vsel %vm344_vm0, 0.0, %v365_v14  ;;  %v368_v34 = vrot.slane %v293_v19, 6  ;;  %v369_v35 = vrot.slane %v294_v20, 6  ;;  %v298_v58 = vld [vmem:[%s5507_s29 + $0x98] sm:$0xff] }
  0x21   : > { %9330 = vst [vmem:[#allocation8_spill] sm:$0xff] %v5623_v31  ;;  %v541_v37 = vrot.slane %v5612_v21, 1  ;;  %v543_v38 = vrot.slane %v5615_v26, 1  ;;  %v5629_v40 = vsel %vm344_vm0, %v365_v14, %v366_v18  ;;  %v5632_v41 = vsel %vm344_vm0, %v366_v18, 0.0  ;;  %v299_v14 = vld [vmem:[%s5507_s29 + $0xa0] sm:$0xff] }
  0x22   : > { %9331 = vst [vmem:[#allocation9_spill] sm:$0xff] %v5629_v40  ;;  %v545_v43 = vrot.slane %v5623_v31, 1  ;;  %v371_v44 = vrot.slane %v295_v36, 6  ;;  %v546_v46 = vrot.slane %v5629_v40, 1  ;;  %v548_v47 = vrot.slane %v5632_v41, 1 }
  0x23   : > { %601 = vrot.lane.b32.xlu1 %v532_v15, %s5425_s30  ;;  %v5641_v48 = vsel %vm344_vm0, %v368_v34, %v369_v35  ;;  %v5644_v49 = vsel %vm344_vm0, 0.0, %v368_v34  ;;  %v542_v50 = vsel %vm509_vm1, %v540_v30, %v541_v37  ;;  %v544_v51 = vsel %vm509_vm1, %v541_v37, %v543_v38  ;;  %v300_v15 = vld [vmem:[%s5507_s29 + $0xa8] sm:$0xff]  ;;  %v302_v38 = vld [vmem:[%s5507_s29 + $0xb8] sm:$0xff] }
  0x24   : > { %603 = vrot.lane.b32.xlu0 %v534_v16, %s5425_s30  ;;  %9332 = vst [vmem:[#allocation10_spill] sm:$0xff] %v5641_v48  ;;  %9333 = vst [vmem:[#allocation11_spill] sm:$0xff] %v5644_v49  ;;  %v5649_v52 = vsel %vm344_vm0, %v369_v35, 0.0  ;;  %v372_v53 = vrot.slane %v296_v42, 6  ;;  %v550_v59 = vrot.slane %v5644_v49, 1  ;;  %v551_v61 = vrot.slane %v5641_v48, 1 }
  0x25   : > { %v547_v62 = vsel %vm509_vm1, %v545_v43, %v546_v46  ;;  %v549_v63 = vsel %vm509_vm1, %v546_v46, %v548_v47  ;;  %v553_v6 = vrot.slane %v5649_v52, 1  ;;  %v5661_v9 = vsel %vm344_vm0, 0.0, %v371_v44 }
  0x26   : > { %9334 = vst [vmem:[#allocation12_spill] sm:$0xff] %v5661_v9  ;;  %v5664_v10 = vsel %vm344_vm0, %v371_v44, %v372_v53  ;;  %v5667_v11 = vsel %vm344_vm0, %v372_v53, 0.0  ;;  %v374_v12 = vrot.slane %v297_v57, 6  ;;  %v375_v13 = vrot.slane %v298_v58, 6 }
  0x27   : > { %605 = vrot.lane.b32.xlu1 %v537_v27, %s5425_s30  ;;  %9335 = vst [vmem:[#allocation13_spill] sm:$0xff] %v5664_v10  ;;  %v555_v16 = vrot.slane %v5661_v9, 1  ;;  %v552_v18 = vsel %vm509_vm1, %v550_v59, %v551_v61  ;;  %v554_v19 = vsel %vm509_vm1, %v551_v61, %v553_v6  ;;  %v556_v20 = vrot.slane %v5664_v10, 1  ;;  %v303_v59 = vld [vmem:[%s5507_s29 + $0xc0] sm:$0xff]  ;;  %v304_v61 = vld [vmem:[%s5507_s29 + $0xc8] sm:$0xff] }
  0x28   : > { %607 = vrot.lane.b32.xlu0 %v539_v28, %s5425_s30  ;;  %v558_v27 = vrot.slane %v5667_v11, 1  ;;  %v301_v28 = vld [vmem:[%s5507_s29 + $0xb0] sm:$0xff]  ;;  %v5680_v30 = vsel %vm344_vm0, %v374_v12, %v375_v13  ;;  %v5683_v34 = vsel %vm344_vm0, 0.0, %v374_v12  ;;  %v377_v35 = vrot.slane %v299_v14, 6 }
  0x29   : > { %9336 = vst [vmem:[#allocation14_spill] sm:$0xff] %v5680_v30  ;;  %9337 = vst [vmem:[#allocation15_spill] sm:$0xff] %v5683_v34  ;;  %v378_v36 = vrot.slane %v300_v15, 6  ;;  %v5686_v37 = vsel %vm344_vm0, %v375_v13, 0.0  ;;  %v380_v42 = vrot.slane %v301_v28, 6  ;;  %v557_v43 = vsel %vm509_vm1, %v555_v16, %v556_v20 }
  0x2a   : > { %v559_v44 = vsel %vm509_vm1, %v556_v20, %v558_v27  ;;  %v560_v46 = vrot.slane %v5683_v34, 1  ;;  %v561_v47 = vrot.slane %v5680_v30, 1  ;;  %v5700_v53 = vsel %vm344_vm0, 0.0, %v377_v35  ;;  %v305_v20 = vld [vmem:[%s5507_s29 + $0xd0] sm:$0xff]  ;;  %v306_v27 = vld [vmem:[%s5507_s29 + $0xd8] sm:$0xff] }
  0x2b   : > { %609 = vrot.lane.b32.xlu1 %v542_v50, %s5425_s30  ;;  %v563_v50 = vrot.slane %v5686_v37, 1  ;;  %9339 = vst [vmem:[#allocation17_spill] sm:$0xff] %v5700_v53  ;;  %v5703_v57 = vsel %vm344_vm0, %v378_v36, 0.0  ;;  %v381_v58 = vrot.slane %v302_v38, 6  ;;  %v5715_v14 = vsel %vm344_vm0, 0.0, %v380_v42 }
  0x2c   : > { %611 = vrot.lane.b32.xlu0 %v544_v51, %s5425_s30  ;;  %v5697_v51 = vsel %vm344_vm0, %v377_v35, %v378_v36  ;;  %v568_v12 = vrot.slane %v5703_v57, 1  ;;  %9340 = vst [vmem:[#allocation18_spill] sm:$0xff] %v5715_v14  ;;  %v383_v15 = vrot.slane %v303_v59, 6  ;;  %v384_v16 = vrot.slane %v304_v61, 6 }
  0x2d   : > { %9338 = vst [vmem:[#allocation16_spill] sm:$0xff] %v5697_v51  ;;  %v566_v6 = vrot.slane %v5697_v51, 1  ;;  %v564_v13 = vsel %vm509_vm1, %v561_v47, %v563_v50  ;;  %v570_v36 = vrot.slane %v5715_v14, 1  ;;  %v387_v50 = vrot.slane %v306_v27, 6 }
  0x2e   : > { %v679_v27 = vrot.slane %v5496_v3, 2  ;;  %vm1969_vm13 = vcmask 818176   ;;  %vm3214_vm14 = vcmask 195584   ;;  %vm3245_vm15 = vcmask 261120  }
  0x2f   : > { %613 = vrot.lane.b32.xlu1 %v547_v62, %s5425_s30  ;;  %v562_v62 = vsel %vm509_vm1, %v560_v46, %v561_v47  ;;  %v569_v35 = vsel %vm509_vm1, %v566_v6, %v568_v12  ;;  %v5739_v46 = vsel %vm344_vm0, %v384_v16, 0.0  ;;  %v386_v47 = vrot.slane %v305_v20, 6 }
  0x30   : > { %615 = vrot.lane.b32.xlu0 %v549_v63, %s5425_s30  ;;  %v565_v63 = vrot.slane %v5700_v53, 1  ;;  %v677_v20 = vrot.slane %v5485_v1, 2 }
  0x31   : > { %v5752_v12 = vsel %vm344_vm0, 0.0, %v386_v47 }
  0x32   : > { %v567_v28 = vsel %vm509_vm1, %v565_v63, %v566_v6  ;;  %v578_v63 = vrot.slane %v5739_v46, 1  ;;  %v5749_v6 = vsel %vm344_vm0, %v386_v47, %v387_v50  ;;  %9342 = vst [vmem:[#allocation20_spill] sm:$0xff] %v5752_v12  ;;  %v5773_v47 = vsel %vm675_vm2, %v677_v20, %v679_v27 }
  0x33   : > { %617 = vrot.lane.b32.xlu1 %v552_v18, %s5425_s30  ;;  %v5718_v18 = vsel %vm344_vm0, %v380_v42, %v381_v58  ;;  %9344 = vst [vmem:[#allocation22_spill] sm:$0xff] %v5773_v47  ;;  %v689_v27 = vrot.slane %v5545_v32, 2 }
  0x34   : > { %619 = vrot.lane.b32.xlu0 %v554_v19, %s5425_s30  ;;  %9341 = vst [vmem:[#allocation19_spill] sm:$0xff] %v5718_v18  ;;  %v5721_v19 = vsel %vm344_vm0, %v381_v58, 0.0  ;;  %v571_v38 = vrot.slane %v5718_v18, 1 }
  0x35   : > { %v573_v42 = vrot.slane %v5721_v19, 1 }
  0x36   : > { %v572_v61 = vsel %vm509_vm1, %v570_v36, %v571_v38  ;;  %v581_v36 = vrot.slane %v5749_v6, 1 }
  0x37   : > { %621 = vrot.lane.b32.xlu1 %v557_v43, %s5425_s30  ;;  %v5733_v43 = vsel %vm344_vm0, %v383_v15, %v384_v16  ;;  %v676_v16 = vrot.slane %v5492_v2, 2 }
  0x38   : > { %623 = vrot.lane.b32.xlu0 %v559_v44, %s5425_s30  ;;  %v5736_v44 = vsel %vm344_vm0, 0.0, %v383_v15  ;;  %v576_v59 = vrot.slane %v5733_v43, 1 }
  0x39   : > { %v575_v58 = vrot.slane %v5736_v44, 1 }
  0x3b   : > { %625 = vrot.lane.b32.xlu1 %v562_v62, %s5425_s30  ;;  %v574_v62 = vsel %vm509_vm1, %v571_v38, %v573_v42  ;;  %v577_v15 = vsel %vm509_vm1, %v575_v58, %v576_v59  ;;  %v5770_v42 = vsel %vm675_vm2, %v676_v16, %v677_v20  ;;  %v686_v16 = vrot.slane %v5534_v25, 2 }
  0x3c   : > { %627 = vrot.lane.b32.xlu0 %v564_v13, %s5425_s30  ;;  %v5755_v13 = vsel %vm344_vm0, %v387_v50, 0.0  ;;  %9343 = vst [vmem:[#allocation21_spill] sm:$0xff] %v5770_v42  ;;  %v687_v20 = vrot.slane %v5540_v29, 2 }
  0x3d   : > { %v583_v38 = vrot.slane %v5755_v13, 1 }
  0x3f   : > { %629 = vrot.lane.b32.xlu1 %v567_v28, %s5425_s30  ;;  %v579_v28 = vsel %vm509_vm1, %v576_v59, %v578_v63  ;;  %v584_v58 = vsel %vm509_vm1, %v581_v36, %v583_v38  ;;  %v681_v59 = vrot.slane %v5531_v24, 2  ;;  %v692_v38 = vrot.slane %v5548_v33, 2 }
  0x40   : > { %631 = vrot.lane.b32.xlu0 %v569_v35, %s5425_s30  ;;  %v580_v35 = vrot.slane %v5752_v12, 1 }
  0x42   : > { %v582_v50 = vsel %vm509_vm1, %v580_v35, %v581_v36  ;;  %v688_v35 = vsel %vm675_vm2, %v686_v16, %v687_v20  ;;  %v691_v36 = vrot.slane %v5556_v39, 2  ;;  %v9259_v16 = vrot.slane %v5573_v54, 2 }
  0x43   : > { %633 = vrot.lane.b32.xlu1 %v572_v61, %s5425_s30  ;;  %v682_v61 = vrot.slane %v5525_v22, 2 }
  0x44   : > { %635 = vrot.lane.b32.xlu0 %v574_v62, %s5425_s30  ;;  %v5153_v62 = vpack.i.bf16 %v5773_v47, %v5770_v42 }
  0x45   : > { %v683_v63 = vsel %vm675_vm2, %v681_v59, %v682_v61  ;;  %v843_v59 = vrot.slane %v5485_v1, 3 }
  0x47   : > { %637 = vrot.lane.b32.xlu1 %v577_v15, %s5425_s30  ;;  %v684_v15 = vrot.slane %v5528_v23, 2 }
  0x48   : > { %639 = vrot.lane.b32.xlu0 %v579_v28, %s5425_s30 }
  0x49   : > { %v685_v28 = vsel %vm675_vm2, %v682_v61, %v684_v15  ;;  %v690_v61 = vsel %vm675_vm2, %v687_v20, %v689_v27  ;;  %v696_v15 = vrot.slane %v5576_v55, 2  ;;  %v847_v20 = vrot.slane %v5531_v24, 3 }
  0x4b   : > { %641 = vrot.lane.b32.xlu1 %v582_v50, %s5425_s30  ;;  %v694_v50 = vrot.slane %v5566_v45, 2  ;;  %v698_v27 = vsel %vm675_vm2, %v696_v15, %v9259_v16  ;;  %v852_v15 = vrot.slane %v5534_v25, 3  ;;  %v858_v16 = vrot.slane %v5548_v33, 3 }
  0x4c   : > { %643 = vrot.lane.b32.xlu0 %v584_v58, %s5425_s30  ;;  %v842_v58 = vrot.slane %v5492_v2, 3 }
  0x4e   : > { %v5809_v0 = vsel %vm841_vm3, %v842_v58, %v843_v59 }
  0x4f   : > { %5154 = vrot.lane.b32.xlu1 %v5153_v62, %s5426_s8  ;;  %v845_v62 = vrot.slane %v5496_v3, 3  ;;  %9345 = vst [vmem:[#allocation23_spill] sm:$0xff] %v5809_v0 }
  0x50   : > { %755 = vrot.lane.b32.xlu0 %v683_v63, %s5426_s8  ;;  %v693_v63 = vsel %vm675_vm2, %v691_v36, %v692_v38  ;;  %v848_v36 = vrot.slane %v5525_v22, 3 }
  0x51   : > { %v5812_v47 = vsel %vm841_vm3, %v843_v59, %v845_v62  ;;  %v850_v62 = vrot.slane %v5528_v23, 3 }
  0x52   : > { %9346 = vst [vmem:[#allocation24_spill] sm:$0xff] %v5812_v47 }
  0x53   : > { %757 = vrot.lane.b32.xlu1 %v685_v28, %s5426_s8  ;;  %v1008_v28 = vrot.slane %v5492_v2, 4 }
  0x54   : > { %759 = vrot.lane.b32.xlu0 %v688_v35, %s5426_s8  ;;  %v695_v35 = vsel %vm675_vm2, %v692_v38, %v694_v50  ;;  %v5158_v38 = vpack.i.bf16 %v5812_v47, %v5809_v0  ;;  %v849_v50 = vsel %vm841_vm3, %v847_v20, %v848_v36  ;;  %v1013_v20 = vrot.slane %v5531_v24, 4 }
  0x57   : > { %761 = vrot.lane.b32.xlu1 %v690_v61, %s5426_s8  ;;  %v1009_v61 = vrot.slane %v5485_v1, 4 }
  0x58   : > { %763 = vrot.lane.b32.xlu0 %v693_v63, %s5426_s8  ;;  %v1011_v63 = vrot.slane %v5496_v3, 4 }
  0x59   : > { %v5827_v58 = vsel %vm1007_vm4, %v1008_v28, %v1009_v61  ;;  %v851_v28 = vsel %vm841_vm3, %v848_v36, %v850_v62  ;;  %v1016_v36 = vrot.slane %v5528_v23, 4  ;;  %v1021_v23 = vrot.slane %v5545_v32, 4 }
  0x5a   : > { %9347 = vst [vmem:[#allocation25_spill] sm:$0xff] %v5827_v58  ;;  %v5830_v59 = vsel %vm1007_vm4, %v1009_v61, %v1011_v63 }
  0x5b   : > { %765 = vrot.lane.b32.xlu1 %v695_v35, %s5426_s8  ;;  %9348 = vst [vmem:[#allocation26_spill] sm:$0xff] %v5830_v59  ;;  %v5163_v3 = vpack.i.bf16 %v5830_v59, %v5827_v58  ;;  %v853_v35 = vrot.slane %v5540_v29, 3 }
  0x5c   : > { %767 = vrot.lane.b32.xlu0 %v698_v27, %s5426_s8  ;;  %v1014_v27 = vrot.slane %v5525_v22, 4 }
  0x5d   : > { %v854_v61 = vsel %vm841_vm3, %v852_v15, %v853_v35  ;;  %v1018_v15 = vrot.slane %v5534_v25, 4 }
  0x5e   : > { %v1015_v63 = vsel %vm1007_vm4, %v1013_v20, %v1014_v27  ;;  %v1017_v20 = vsel %vm1007_vm4, %v1014_v27, %v1016_v36  ;;  %v1026_v27 = vrot.slane %v5566_v45, 4 }
  0x5f   : > { %5159 = vrot.lane.b32.xlu1 %v5158_v38, %s5427_s9  ;;  %v855_v38 = vrot.slane %v5545_v32, 3 }
  0x60   : > { %921 = vrot.lane.b32.xlu0 %v849_v50, %s5427_s9  ;;  %v857_v50 = vrot.slane %v5556_v39, 3 }
  0x61   : > { %v856_v62 = vsel %vm841_vm3, %v853_v35, %v855_v38  ;;  %v1023_v35 = vrot.slane %v5556_v39, 4  ;;  %v1024_v38 = vrot.slane %v5548_v33, 4 }
  0x63   : > { %5164 = vrot.lane.b32.xlu1 %v5163_v3, %s5428_s10  ;;  %v859_v3 = vsel %vm841_vm3, %v857_v50, %v858_v16  ;;  %v1025_v32 = vsel %vm1007_vm4, %v1023_v35, %v1024_v38  ;;  %v1027_v36 = vsel %vm1007_vm4, %v1024_v38, %v1026_v27  ;;  %v1031_v35 = vrot.slane %v5579_v56, 4 }
  0x64   : > { %923 = vrot.lane.b32.xlu0 %v851_v28, %s5427_s9  ;;  %v1019_v28 = vrot.slane %v5540_v29, 4  ;;  %v702_v27 = vrot.slane %v5587_v60, 2 }
  0x67   : > { %925 = vrot.lane.b32.xlu1 %v854_v61, %s5427_s9  ;;  %v1020_v61 = vsel %vm1007_vm4, %v1018_v15, %v1019_v28  ;;  %v862_v15 = vrot.slane %v5576_v55, 3 }
  0x68   : > { %1087 = vrot.lane.b32.xlu0 %v1015_v63, %s5428_s10  ;;  %v860_v63 = vrot.slane %v5566_v45, 3  ;;  %v865_v45 = vrot.slane %v5579_v56, 3 }
  0x6a   : > { %v861_v50 = vsel %vm841_vm3, %v858_v16, %v860_v63  ;;  %v9349_v16 = vrot.slane %v5573_v54, 2  ;;  %v1028_v63 = vrot.slane %v5576_v55, 4 }
  0x6b   : > { %927 = vrot.lane.b32.xlu1 %v856_v62, %s5427_s9  ;;  %v1022_v62 = vsel %vm1007_vm4, %v1019_v28, %v1021_v23  ;;  %v1029_v23 = vrot.slane %v5573_v54, 4 }
  0x6c   : > { %929 = vrot.lane.b32.xlu0 %v859_v3, %s5427_s9  ;;  %v699_v3 = vrot.slane %v5579_v56, 2  ;;  %v867_v56 = vrot.slane %v5592_v4, 3 }
  0x6e   : > { %v700_v28 = vsel %vm675_vm2, %v9349_v16, %v699_v3 }
  0x6f   : > { %1089 = vrot.lane.b32.xlu1 %v1017_v20, %s5428_s10  ;;  %v863_v20 = vrot.slane %v5573_v54, 3 }
  0x70   : > { %1091 = vrot.lane.b32.xlu0 %v1020_v61, %s5428_s10 }
  0x71   : > { %v864_v61 = vsel %vm841_vm3, %v862_v15, %v863_v20  ;;  %v866_v38 = vsel %vm841_vm3, %v863_v20, %v865_v45  ;;  %v868_v15 = vrot.slane %v5587_v60, 3  ;;  %v870_v20 = vrot.slane %v5595_v5, 3 }
  0x73   : > { %931 = vrot.lane.b32.xlu1 %v861_v50, %s5427_s9  ;;  %v1030_v50 = vsel %vm1007_vm4, %v1028_v63, %v1029_v23  ;;  %v869_v16 = vsel %vm841_vm3, %v867_v56, %v868_v15 }
  0x74   : > { %1093 = vrot.lane.b32.xlu0 %v1022_v62, %s5428_s10  ;;  %v701_v62 = vrot.slane %v5592_v4, 2 }
  0x76   : > { %v703_v3 = vsel %vm675_vm2, %v701_v62, %v702_v27  ;;  %v707_v62 = vrot.slane %v5612_v21, 2 }
  0x77   : > { %1095 = vrot.lane.b32.xlu1 %v1025_v32, %s5428_s10  ;;  %v704_v32 = vrot.slane %v5595_v5, 2 }
  0x78   : > { %1097 = vrot.lane.b32.xlu0 %v1027_v36, %s5428_s10  ;;  %v1032_v36 = vsel %vm1007_vm4, %v1029_v23, %v1031_v35  ;;  %v871_v23 = vsel %vm841_vm3, %v868_v15, %v870_v20  ;;  %v873_v15 = vrot.slane %v5612_v21, 3 }
  0x79   : > { %v705_v45 = vsel %vm675_vm2, %v702_v27, %v704_v32 }
  0x7b   : > { %769 = vrot.lane.b32.xlu1 %v700_v28, %s5426_s8  ;;  %v1033_v28 = vrot.slane %v5592_v4, 4 }
  0x7c   : > { %933 = vrot.lane.b32.xlu0 %v864_v61, %s5427_s9  ;;  %v1034_v61 = vrot.slane %v5587_v60, 4 }
  0x7e   : > { %v1035_v35 = vsel %vm1007_vm4, %v1033_v28, %v1034_v61 }
  0x7f   : > { %935 = vrot.lane.b32.xlu1 %v866_v38, %s5427_s9  ;;  %v1036_v38 = vrot.slane %v5595_v5, 4  ;;  %v872_v5 = vrot.slane %v5607_v17, 3 }
  0x80   : > { %1099 = vrot.lane.b32.xlu0 %v1030_v50, %s5428_s10  ;;  %v706_v50 = vrot.slane %v5607_v17, 2 }
  0x82   : > { %v708_v56 = vsel %vm675_vm2, %v706_v50, %v707_v62 }
  0x83   : > { %1101 = vrot.lane.b32.xlu1 %v1032_v36, %s5428_s10  ;;  %v709_v36 = vrot.slane %v5615_v26, 2 }
  0x84   : > { %771 = vrot.lane.b32.xlu0 %v703_v3, %s5426_s8  ;;  %v1037_v3 = vsel %vm1007_vm4, %v1034_v61, %v1036_v38  ;;  %v874_v61 = vsel %vm841_vm3, %v872_v5, %v873_v15  ;;  %v712_v5 = vrot.slane %v5629_v40, 2 }
  0x85   : > { %v710_v28 = vsel %vm675_vm2, %v707_v62, %v709_v36  ;;  %v711_v36 = vrot.slane %v5623_v31, 2 }
  0x86   : > { %v5906_v63 = vpop.permute.xlu0 %5149 }
  0x87   : > { %773 = vrot.lane.b32.xlu1 %v705_v45, %s5426_s8 }
  0x88   : > { %937 = vrot.lane.b32.xlu0 %v869_v16, %s5427_s9  ;;  %v875_v16 = vrot.slane %v5615_v26, 3 }
  0x89   : > { %v5915_v27 = vpop.permute.xlu1 %591 }
  0x8a   : > { %v5917_v32 = vpop.permute.xlu0 %589 }
  0x8b   : > { %939 = vrot.lane.b32.xlu1 %v871_v23, %s5427_s9  ;;  %v1038_v23 = vrot.slane %v5607_v17, 4  ;;  %v1071_v17 = vrot.slane %v5721_v19, 4 }
  0x8c   : > { %1103 = vrot.lane.b32.xlu0 %v1035_v35, %s5428_s10  ;;  %v1039_v35 = vrot.slane %v5612_v21, 4 }
  0x8d   : > { %v5926_v20 = vpop.permute.xlu1 %593 }
  0x8e   : > { %v5928_v45 = vpop.permute.xlu0 %595  ;;  %v1040_v62 = vsel %vm1007_vm4, %v1038_v23, %v1039_v35 }
  0x8f   : > { %1105 = vrot.lane.b32.xlu1 %v1037_v3, %s5428_s10  ;;  %v1041_v3 = vrot.slane %v5615_v26, 4  ;;  %v713_v26 = vsel %vm675_vm2, %v711_v36, %v712_v5  ;;  %v1044_v36 = vrot.slane %v5629_v40, 4 }
  0x90   : > { %775 = vrot.lane.b32.xlu0 %v708_v56, %s5426_s8  ;;  %v876_v56 = vsel %vm841_vm3, %v873_v15, %v875_v16  ;;  %v714_v15 = vrot.slane %v5632_v41, 2  ;;  %v877_v16 = vrot.slane %v5623_v31, 3 }
  0x91   : > { %v5937_v38 = vpop.permute.xlu1 %597 }
  0x92   : > { %v5939_v50 = vpop.permute.xlu0 %599 }
  0x93   : > { %777 = vrot.lane.b32.xlu1 %v710_v28, %s5426_s8  ;;  %v1042_v28 = vsel %vm1007_vm4, %v1039_v35, %v1041_v3  ;;  %v715_v35 = vsel %vm675_vm2, %v712_v5, %v714_v15  ;;  %v716_v15 = vrot.slane %v5644_v49, 2 }
  0x94   : > { %941 = vrot.lane.b32.xlu0 %v874_v61, %s5427_s9  ;;  %v878_v61 = vrot.slane %v5629_v40, 3 }
  0x95   : > { %v5948_v59 = vpop.permute.xlu1 %601 }
  0x96   : > { %v5950_v47 = vpop.permute.xlu0 %603  ;;  %v879_v3 = vsel %vm841_vm3, %v877_v16, %v878_v61  ;;  %v717_v16 = vrot.slane %v5641_v48, 2 }
  0x97   : > { %943 = vrot.lane.b32.xlu1 %v876_v56, %s5427_s9  ;;  %v880_v56 = vrot.slane %v5632_v41, 3 }
  0x98   : > { %1107 = vrot.lane.b32.xlu0 %v1040_v62, %s5428_s10  ;;  %v1043_v62 = vrot.slane %v5623_v31, 4 }
  0x99   : > { %v5959_v23 = vpop.permute.xlu1 %605 }
  0x9a   : > { %v5961_v8 = vpop.permute.xlu0 %607  ;;  %v1045_v5 = vsel %vm1007_vm4, %v1043_v62, %v1044_v36 }
  0x9b   : > { %1109 = vrot.lane.b32.xlu1 %v1042_v28, %s5428_s10  ;;  %v1046_v28 = vrot.slane %v5632_v41, 4 }
  0x9c   : > { %779 = vrot.lane.b32.xlu0 %v713_v26, %s5426_s8  ;;  %v881_v26 = vsel %vm841_vm3, %v878_v61, %v880_v56  ;;  %v718_v61 = vsel %vm675_vm2, %v716_v15, %v717_v16  ;;  %v882_v56 = vrot.slane %v5644_v49, 3  ;;  %v1049_v15 = vrot.slane %v5641_v48, 4 }
  0x9d   : > { %v5970_v58 = vpop.permute.xlu1 %609  ;;  %v1047_v41 = vsel %vm1007_vm4, %v1044_v36, %v1046_v28  ;;  %v885_v36 = vrot.slane %v5649_v52, 3  ;;  %v1048_v28 = vrot.slane %v5644_v49, 4  ;;  %v1956_v49 = vld [vmem:[%s9249_s1 + $0x38] sm:$0xff] }
  0x9e   : > { %v5972_v0 = vpop.permute.xlu0 %611 }
  0x9f   : > { %9350 = vst [vmem:[#allocation27_spill] sm:$0xff] %v5972_v0  ;;  %781 = vrot.lane.b32.xlu1 %v715_v35, %s5426_s8  ;;  %v719_v35 = vrot.slane %v5649_v52, 2 }
  0xa0   : > { %945 = vrot.lane.b32.xlu0 %v879_v3, %s5427_s9  ;;  %v883_v3 = vrot.slane %v5641_v48, 3 }
  0xa1   : > { %v5981_v42 = vpop.permute.xlu1 %613 }
  0xa2   : > { %9351 = vst [vmem:[#allocation28_spill] sm:$0xff] %v5981_v42  ;;  %v5983_v7 = vpop.permute.xlu0 %615 }
  0xa3   : > { %9352 = vst [vmem:[#allocation29_spill] sm:$0xff] %v5983_v7  ;;  %947 = vrot.lane.b32.xlu1 %v881_v26, %s5427_s9  ;;  %v720_v26 = vsel %vm675_vm2, %v717_v16, %v719_v35  ;;  %v886_v16 = vsel %vm841_vm3, %v883_v3, %v885_v36  ;;  %v1050_v35 = vsel %vm1007_vm4, %v1048_v28, %v1049_v15  ;;  %v888_v36 = vrot.slane %v5664_v10, 3 }
  0xa4   : > { %1111 = vrot.lane.b32.xlu0 %v1045_v5, %s5428_s10  ;;  %v884_v5 = vsel %vm841_vm3, %v882_v56, %v883_v3  ;;  %v722_v56 = vrot.slane %v5664_v10, 2 }
  0xa5   : > { %v5992_v62 = vpop.permute.xlu1 %617 }
  0xa6   : > { %9353 = vst [vmem:[#allocation30_spill] sm:$0xff] %v5992_v62  ;;  %v5994_v40 = vpop.permute.xlu0 %619 }
  0xa7   : > { %9354 = vst [vmem:[#allocation31_spill] sm:$0xff] %v5994_v40  ;;  %1113 = vrot.lane.b32.xlu1 %v1047_v41, %s5428_s10  ;;  %v1051_v41 = vrot.slane %v5649_v52, 4 }
  0xa8   : > { %783 = vrot.lane.b32.xlu0 %v718_v61, %s5426_s8  ;;  %v721_v61 = vrot.slane %v5661_v9, 2 }
  0xa9   : > { %v6003_v7 = vpop.permute.xlu1 %621  ;;  %v1052_v52 = vsel %vm1007_vm4, %v1049_v15, %v1051_v41  ;;  %v1053_v41 = vrot.slane %v5661_v9, 4 }
  0xaa   : > { %9355 = vst [vmem:[#allocation32_spill] sm:$0xff] %v6003_v7  ;;  %v6005_v31 = vpop.permute.xlu0 %623  ;;  %v723_v3 = vsel %vm675_vm2, %v721_v61, %v722_v56  ;;  %v1054_v61 = vrot.slane %v5664_v10, 4 }
  0xab   : > { %9356 = vst [vmem:[#allocation33_spill] sm:$0xff] %v6005_v31  ;;  %785 = vrot.lane.b32.xlu1 %v720_v26, %s5426_s8  ;;  %v724_v26 = vrot.slane %v5667_v11, 2 }
  0xac   : > { %949 = vrot.lane.b32.xlu0 %v884_v5, %s5427_s9  ;;  %v887_v5 = vrot.slane %v5661_v9, 3 }
  0xad   : > { %v6014_v40 = vpop.permute.xlu1 %625 }
  0xae   : > { %9357 = vst [vmem:[#allocation34_spill] sm:$0xff] %v6014_v40  ;;  %v6016_v48 = vpop.permute.xlu0 %627  ;;  %v889_v15 = vsel %vm841_vm3, %v887_v5, %v888_v36  ;;  %v727_v5 = vrot.slane %v5680_v30, 2 }
  0xaf   : > { %9358 = vst [vmem:[#allocation35_spill] sm:$0xff] %v6016_v48  ;;  %951 = vrot.lane.b32.xlu1 %v886_v16, %s5427_s9  ;;  %v890_v16 = vrot.slane %v5667_v11, 3 }
  0xb0   : > { %1115 = vrot.lane.b32.xlu0 %v1050_v35, %s5428_s10  ;;  %v725_v35 = vsel %vm675_vm2, %v722_v56, %v724_v26  ;;  %v1056_v56 = vrot.slane %v5667_v11, 4  ;;  %v726_v26 = vrot.slane %v5683_v34, 2  ;;  %v892_v11 = vrot.slane %v5683_v34, 3 }
  0xb1   : > { %v6025_v28 = vpop.permute.xlu1 %629 }
  0xb2   : > { %9359 = vst [vmem:[#allocation36_spill] sm:$0xff] %v6025_v28  ;;  %v6027_v7 = vpop.permute.xlu0 %631 }
  0xb3   : > { %9360 = vst [vmem:[#allocation37_spill] sm:$0xff] %v6027_v7  ;;  %1117 = vrot.lane.b32.xlu1 %v1052_v52, %s5428_s10  ;;  %v891_v52 = vsel %vm841_vm3, %v888_v36, %v890_v16  ;;  %v1057_v36 = vsel %vm1007_vm4, %v1054_v61, %v1056_v56  ;;  %v728_v16 = vsel %vm675_vm2, %v726_v26, %v727_v5  ;;  %v1058_v56 = vrot.slane %v5683_v34, 4 }
  0xb4   : > { %787 = vrot.lane.b32.xlu0 %v723_v3, %s5426_s8  ;;  %v1055_v3 = vsel %vm1007_vm4, %v1053_v41, %v1054_v61  ;;  %v1059_v26 = vrot.slane %v5680_v30, 4  ;;  %v1064_v34 = vrot.slane %v5697_v51, 4 }
  0xb5   : > { %v6036_v40 = vpop.permute.xlu1 %633 }
  0xb6   : > { %9361 = vst [vmem:[#allocation38_spill] sm:$0xff] %v6036_v40  ;;  %v6038_v48 = vpop.permute.xlu0 %635 }
  0xb7   : > { %9362 = vst [vmem:[#allocation39_spill] sm:$0xff] %v6038_v48  ;;  %789 = vrot.lane.b32.xlu1 %v725_v35, %s5426_s8  ;;  %v729_v35 = vrot.slane %v5686_v37, 2 }
  0xb8   : > { %953 = vrot.lane.b32.xlu0 %v889_v15, %s5427_s9  ;;  %v893_v15 = vrot.slane %v5680_v30, 3 }
  0xb9   : > { %v6047_v28 = vpop.permute.xlu1 %637 }
  0xba   : > { %9363 = vst [vmem:[#allocation40_spill] sm:$0xff] %v6047_v28  ;;  %v6049_v7 = vpop.permute.xlu0 %639  ;;  %v894_v61 = vsel %vm841_vm3, %v892_v11, %v893_v15  ;;  %v732_v11 = vrot.slane %v5697_v51, 2 }
  0xbb   : > { %9364 = vst [vmem:[#allocation41_spill] sm:$0xff] %v6049_v7  ;;  %955 = vrot.lane.b32.xlu1 %v891_v52, %s5427_s9  ;;  %v895_v52 = vrot.slane %v5686_v37, 3 }
  0xbc   : > { %1119 = vrot.lane.b32.xlu0 %v1055_v3, %s5428_s10  ;;  %v730_v3 = vsel %vm675_vm2, %v727_v5, %v729_v35  ;;  %v1061_v5 = vrot.slane %v5686_v37, 4  ;;  %v731_v35 = vrot.slane %v5700_v53, 2  ;;  %v897_v37 = vrot.slane %v5700_v53, 3 }
  0xbd   : > { %v6058_v41 = vpop.permute.xlu1 %641 }
  0xbe   : > { %9365 = vst [vmem:[#allocation42_spill] sm:$0xff] %v6058_v41  ;;  %v6060_v40 = vpop.permute.xlu0 %643 }
  0xbf   : > { %9366 = vst [vmem:[#allocation43_spill] sm:$0xff] %v6060_v40  ;;  %1121 = vrot.lane.b32.xlu1 %v1057_v36, %s5428_s10  ;;  %v896_v36 = vsel %vm841_vm3, %v893_v15, %v895_v52  ;;  %v1062_v15 = vsel %vm1007_vm4, %v1059_v26, %v1061_v5  ;;  %v733_v52 = vsel %vm675_vm2, %v731_v35, %v732_v11  ;;  %v1063_v35 = vrot.slane %v5700_v53, 4 }
  0xc0   : > { %791 = vrot.lane.b32.xlu0 %v728_v16, %s5426_s8  ;;  %v1060_v16 = vsel %vm1007_vm4, %v1058_v56, %v1059_v26  ;;  %v1961_v26 = vld [vmem:[%s9249_s1 + $0x60] sm:$0xf]  ;;  %v1066_v53 = vrot.slane %v5703_v57, 4 }
  0xc1   : > { %v6069_v28 = vpop.permute.xlu1 %5154  ;;  %4952 = vmatprep.subr.msk.mxu0 %vm1007_vm4, %v1961_v26 }
  0xc2   : > { %v6071_v7 = vpop.permute.xlu0 %755  ;;  %4953 = vmatpush3.msk.msra.mxu0 %vm1007_vm4, %v1961_v26  ;;  %v736_v26 = vrot.slane %v5715_v14, 2  ;;  %v5157_v62 = vunpack.i.h.bf16 %v6069_v28 }
  0xc3   : > { %793 = vrot.lane.b32.xlu1 %v730_v3, %s5426_s8  ;;  %v734_v3 = vrot.slane %v5703_v57, 2 }
  0xc4   : > { %957 = vrot.lane.b32.xlu0 %v894_v61, %s5427_s9  ;;  %v898_v61 = vrot.slane %v5697_v51, 3  ;;  %v737_v51 = vrot.slane %v5718_v18, 2 }
  0xc5   : > { %v6080_v41 = vpop.permute.xlu1 %757 }
  0xc6   : > { %v6082_v40 = vpop.permute.xlu0 %759  ;;  %v899_v5 = vsel %vm841_vm3, %v897_v37, %v898_v61  ;;  %v1065_v37 = vsel %vm1007_vm4, %v1063_v35, %v1064_v34  ;;  %v903_v35 = vrot.slane %v5718_v18, 3 }
  0xc7   : > { %959 = vrot.lane.b32.xlu1 %v896_v36, %s5427_s9  ;;  %v900_v36 = vrot.slane %v5703_v57, 3  ;;  %v739_v57 = vrot.slane %v5721_v19, 2 }
  0xc8   : > { %1123 = vrot.lane.b32.xlu0 %v1060_v16, %s5428_s10  ;;  %v735_v16 = vsel %vm675_vm2, %v732_v11, %v734_v3  ;;  %v1959_v3 = vld [vmem:[%s9249_s1 + $0x50] sm:$0xff] }
  0xc9   : > { %v6091_v56 = vpop.permute.xlu1 %761  ;;  %v901_v11 = vsel %vm841_vm3, %v898_v61, %v900_v36  ;;  %v1958_v61 = vld [vmem:[%s9249_s1 + $0x48] sm:$0xff]  ;;  %v1067_v36 = vsel %vm1007_vm4, %v1064_v34, %v1066_v53  ;;  %v5152_v34 = vunpack.i.h.bf16 %v5906_v63  ;;  %v5151_v53 = vunpack.i.l.bf16 %v5906_v63 }
  0xca   : > { %v6093_v48 = vpop.permute.xlu0 %763  ;;  %v1069_v63 = vrot.slane %v5718_v18, 4 }
  0xcb   : > { %1125 = vrot.lane.b32.xlu1 %v1062_v15, %s5428_s10  ;;  %v1174_v18 = vsel %vm1173_vm5, %v5492_v2, %v5151_v53 }
  0xcc   : > { %795 = vrot.lane.b32.xlu0 %v733_v52, %s5426_s8  ;;  %v1960_v52 = vld [vmem:[%s9249_s1 + $0x58] sm:$0xff] }
  0xcd   : > { %v6106_v30 = vpop.permute.xlu1 %765  ;;  %4954 = vmatprep.subr.mxu0 %v1960_v52 }
  0xce   : > { %v6108_v15 = vpop.permute.xlu0 %767  ;;  %4955 = vmatpush3.msra.mxu0 %v1960_v52 }
  0xcf   : > { %797 = vrot.lane.b32.xlu1 %v735_v16, %s5426_s8  ;;  %4956 = vmatprep.subr.mxu0 %v1959_v3  ;;  %v738_v16 = vsel %vm675_vm2, %v736_v26, %v737_v51  ;;  %v1068_v26 = vrot.slane %v5715_v14, 4 }
  0xd0   : > { %961 = vrot.lane.b32.xlu0 %v899_v5, %s5427_s9  ;;  %v902_v5 = vrot.slane %v5715_v14, 3  ;;  %4957 = vmatpush3.msra.mxu0 %v1959_v3  ;;  %v740_v3 = vsel %vm675_vm2, %v737_v51, %v739_v57 }
  0xd1   : > { %v5160_v9 = vpop.permute.xlu1 %5159  ;;  %4958 = vmatprep.subr.mxu0 %v1958_v61  ;;  %v1070_v0 = vsel %vm1007_vm4, %v1068_v26, %v1069_v63 }
  0xd2   : > { %v6124_v10 = vpop.permute.xlu0 %921  ;;  %4959 = vmatpush3.msra.mxu0 %v1958_v61  ;;  %v5156_v61 = vunpack.i.l.bf16 %v6069_v28  ;;  %v904_v42 = vsel %vm841_vm3, %v902_v5, %v903_v35  ;;  %v5161_v21 = vunpack.i.l.bf16 %v5160_v9  ;;  %v1955_v28 = vld [vmem:[%s9249_s1 + $0x30] sm:$0xff]  ;;  %v1175_v5 = vsel %vm1173_vm5, %v5485_v1, %v5152_v34 }
  0xd3   : > { %963 = vrot.lane.b32.xlu1 %v901_v11, %s5427_s9  ;;  %v1957_v11 = vld [vmem:[%s9249_s1 + $0x40] sm:$0xff] }
  0xd4   : > { %1127 = vrot.lane.b32.xlu0 %v1065_v37, %s5428_s10  ;;  %v905_v37 = vrot.slane %v5721_v19, 3  ;;  %4960 = vmatprep.subr.mxu0 %v1957_v11 }
  0xd5   : > { %v5165_v52 = vpop.permute.xlu1 %5164  ;;  %4961 = vmatpush3.msra.mxu0 %v1957_v11  ;;  %v1205_v11 = vsel %vm1204_vm6, %v1174_v18, %v5156_v61  ;;  %v1951_v61 = vld [vmem:[%s9249_s1 + $0x10] sm:$0xff] }
  0xd6   : > { %v6136_v31 = vpop.permute.xlu0 %923  ;;  %v5167_v57 = vunpack.i.h.bf16 %v5165_v52  ;;  %v5166_v14 = vunpack.i.l.bf16 %v5165_v52  ;;  %4962 = vmatprep.subr.mxu0 %v1956_v49  ;;  %v1206_v52 = vsel %vm1204_vm6, %v1175_v5, %v5157_v62  ;;  %v1236_v34 = vsel %vm1235_vm7, %v1205_v11, %v5161_v21  ;;  %v1953_v21 = vld [vmem:[%s9249_s1 + $0x20] sm:$0xff] }
  0xd7   : > { %1129 = vrot.lane.b32.xlu1 %v1067_v36, %s5428_s10  ;;  %v5162_v36 = vunpack.i.h.bf16 %v5160_v9  ;;  %v906_v9 = vsel %vm841_vm3, %v903_v35, %v905_v37  ;;  %4963 = vmatpush3.msra.mxu0 %v1956_v49  ;;  %v1072_v49 = vsel %vm1007_vm4, %v1069_v63, %v1071_v17  ;;  %v1952_v37 = vld [vmem:[%s9249_s1 + $0x18] sm:$0xff]  ;;  %v1176_v17 = vsel %vm1173_vm5, %v5531_v24, %v5917_v32 }
  0xd8   : > { %799 = vrot.lane.b32.xlu0 %v738_v16, %s5426_s8  ;;  %4964 = vmatprep.subr.mxu0 %v1955_v28  ;;  %v6177_v62 = vsel %vm1266_vm8, %v1236_v34, %v5166_v14  ;;  %v9368_v11 = vmov 0.0  }
  0xd9   : > { %v6155_v16 = vpop.permute.xlu1 %925  ;;  %v1237_v53 = vsel %vm1235_vm7, %v1206_v52, %v5162_v36  ;;  %4965 = vmatpush3.msra.mxu0 %v1955_v28 }
  0xda   : > { %v1088_v51 = vpop.permute.xlu0 %1087  ;;  %v6180_v18 = vsel %vm1266_vm8, %v1237_v53, %v5167_v57 }
  0xdb   : > { %801 = vrot.lane.b32.xlu1 %v740_v3, %s5426_s8  ;;  %v6190_v14 = vpack.i.bf16 %v6180_v18, %v6177_v62  ;;  %v1207_v3 = vsel %vm1204_vm6, %v1176_v17, %v6071_v7 }
  0xdc   : > { %965 = vrot.lane.b32.xlu0 %v904_v42, %s5427_s9  ;;  %v1954_v42 = vld [vmem:[%s9249_s1 + $0x28] sm:$0xff] }
  0xdd   : > { %v928_v2 = vpop.permute.xlu1 %927  ;;  %4966 = vmatprep.subr.mxu0 %v1954_v42  ;;  %9367 = vst [vmem:[#allocation44_spill] sm:$0xff] %v6190_v14 }
  0xde   : > { %v930_v1 = vpop.permute.xlu0 %929  ;;  %4967 = vmatpush3.msra.mxu0 %v1954_v42 }
  0xdf   : > { %967 = vrot.lane.b32.xlu1 %v906_v9, %s5427_s9  ;;  %4968 = vmatprep.subr.mxu0 %v1953_v21 }
  0xe0   : > { %1131 = vrot.lane.b32.xlu0 %v1070_v0, %s5428_s10  ;;  %v1177_v0 = vsel %vm1173_vm5, %v5525_v22, %v5915_v27  ;;  %4969 = vmatpush3.msra.mxu0 %v1953_v21  ;;  %v1238_v22 = vsel %vm1235_vm7, %v1207_v3, %v6124_v10  ;;  %v1178_v10 = vsel %vm1173_vm5, %v5534_v25, %v5926_v20 }
  0xe1   : > { %v1090_v19 = vpop.permute.xlu1 %1089  ;;  %v1208_v26 = vsel %vm1204_vm6, %v1177_v0, %v6080_v41  ;;  %4970 = vmatprep.subr.mxu0 %v1952_v37  ;;  %v6216_v63 = vsel %vm1266_vm8, %v1238_v22, %v1088_v51  ;;  %v1950_v41 = vld [vmem:[%s9249_s1 + $0x8] sm:$0xff]  ;;  %v1209_v36 = vsel %vm1204_vm6, %v1178_v10, %v6082_v40  ;;  %v1949_v40 = vld [vmem:[%s9249_s1] sm:$0xff]  ;;  %v1074_v10 = vrot.slane %v5733_v43, 4 }
  0xe2   : > { %v1092_v35 = vpop.permute.xlu0 %1091  ;;  %v1239_v27 = vsel %vm1235_vm7, %v1208_v26, %v6136_v31  ;;  %4971 = vmatpush3.msra.mxu0 %v1952_v37  ;;  %v1179_v31 = vsel %vm1173_vm5, %v5540_v29, %v5928_v45  ;;  %v1240_v29 = vsel %vm1235_vm7, %v1209_v36, %v6155_v16 }
  0xe3   : > { %5169 = vrot.lane.b32.xlu1 %v6190_v14, %s5429_s16  ;;  %v6219_v7 = vsel %vm1266_vm8, %v1239_v27, %v1090_v19  ;;  %v1210_v25 = vsel %vm1204_vm6, %v1179_v31, %v6091_v56  ;;  %4972 = vmatprep.subr.mxu0 %v1951_v61  ;;  %v6242_v57 = vsel %vm1266_vm8, %v1240_v29, %v1092_v35  ;;  %v908_v19 = vrot.slane %v5733_v43, 3 }
  0xe4   : > { %1133 = vrot.lane.b32.xlu0 %v1072_v49, %s5428_s10  ;;  %v1241_v20 = vsel %vm1235_vm7, %v1210_v25, %v928_v2  ;;  %4973 = vmatpush3.msra.mxu0 %v1951_v61  ;;  %v1180_v56 = vsel %vm1173_vm5, %v5556_v39, %v5937_v38  ;;  %v1181_v39 = vsel %vm1173_vm5, %v5548_v33, %v5939_v50  ;;  %v742_v38 = vrot.slane %v5733_v43, 2 }
  0xe5   : > { %v932_v24 = vpop.permute.xlu1 %931  ;;  %4974 = vmatprep.subr.mxu0 %v1950_v41  ;;  %v1211_v2 = vsel %vm1204_vm6, %v1180_v56, %v6093_v48  ;;  %v741_v48 = vrot.slane %v5736_v44, 2  ;;  %v907_v49 = vrot.slane %v5736_v44, 3  ;;  %v744_v35 = vrot.slane %v5739_v46, 2 }
  0xe6   : > { %v1094_v32 = vpop.permute.xlu0 %1093  ;;  %4975 = vmatpush3.msra.mxu0 %v1950_v41  ;;  %v1242_v16 = vsel %vm1235_vm7, %v1211_v2, %v930_v1  ;;  %v1212_v1 = vsel %vm1204_vm6, %v1181_v39, %v6106_v30  ;;  %v1182_v27 = vsel %vm1173_vm5, %v5576_v55, %v5948_v59  ;;  %v1073_v61 = vrot.slane %v5736_v44, 4 }
  0xe7   : > { %1535 = vrot.lane.b32.xlu1 %v6216_v63, %s5430_s19  ;;  %v6245_v28 = vsel %vm1266_vm8, %v1241_v20, %v1094_v32  ;;  %4976 = vmatprep.subr.mxu0 %v1949_v40  ;;  %v1243_v34 = vsel %vm1235_vm7, %v1212_v1, %v932_v24  ;;  %v743_v30 = vsel %vm675_vm2, %v741_v48, %v742_v38  ;;  %v910_v32 = vrot.slane %v5739_v46, 3 }
  0xe8   : > { %1537 = vrot.lane.b32.xlu0 %v6219_v7, %s5430_s19  ;;  %4977 = vmatpush3.msra.mxu0 %v1949_v40  ;;  %v909_v17 = vsel %vm841_vm3, %v907_v49, %v908_v19  ;;  %v745_v3 = vsel %vm675_vm2, %v742_v38, %v744_v35  ;;  %v1213_v24 = vsel %vm1204_vm6, %v1182_v27, %v6108_v15 }
  0xe9   : > { %v1096_v45 = vpop.permute.xlu1 %1095  ;;  %4054 = vmatprep.subr.mxu0 %v9368_v11  ;;  %v911_v59 = vsel %vm841_vm3, %v908_v19, %v910_v32  ;;  %v1075_v15 = vsel %vm1007_vm4, %v1073_v61, %v1074_v10  ;;  %v1183_v20 = vsel %vm1173_vm5, %v5573_v54, %v5950_v47  ;;  %v1184_v48 = vsel %vm1173_vm5, %v5592_v4, %v5959_v23 }
  0xea   : > { %v1098_v51 = vpop.permute.xlu0 %1097  ;;  %v6261_v52 = vsel %vm1266_vm8, %v1242_v16, %v1096_v45  ;;  %v1185_v4 = vsel %vm1173_vm5, %v5587_v60, %v5961_v8 }
  0xeb   : > { %1631 = vrot.lane.b32.xlu1 %v6242_v57, %s5431_s27  ;;  %v6277_v50 = vsel %vm1266_vm8, %v1243_v34, %v1098_v51  ;;  %v1076_v51 = vrot.slane %v5739_v46, 4 }
  0xec   : > { %1633 = vrot.lane.b32.xlu0 %v6245_v28, %s5431_s27 }
  0xed   : > { %v770_v5 = vpop.permute.xlu1 %769  ;;  %v1077_v54 = vsel %vm1007_vm4, %v1074_v10, %v1076_v51 }
  0xee   : > { %v934_v9 = vpop.permute.xlu0 %933  ;;  %v1214_v45 = vsel %vm1204_vm6, %v1183_v20, %v770_v5  ;;  %v1078_v20 = vrot.slane %v5752_v12, 4 }
  0xef   : > { %1727 = vrot.lane.b32.xlu1 %v6261_v52, %s5432_s28  ;;  %v1244_v31 = vsel %vm1235_vm7, %v1213_v24, %v934_v9 }
  0xf0   : > { %1441 = vrot.lane.b32.xlu0 %v6216_v63, %s5429_s16 }
  0xf1   : > { %v936_v53 = vpop.permute.xlu1 %935 }
  0xf2   : > { %v1100_v33 = vpop.permute.xlu0 %1099  ;;  %v1245_v40 = vsel %vm1235_vm7, %v1214_v45, %v936_v53  ;;  %v1079_v45 = vrot.slane %v5749_v6, 4 }
  0xf3   : > { %1729 = vrot.lane.b32.xlu1 %v6277_v50, %s5432_s28  ;;  %v6310_v55 = vsel %vm1266_vm8, %v1244_v31, %v1100_v33  ;;  %v9373_v31 = vld [vmem:[#allocation6_spill] sm:$0xff] }
  0xf4   : > { %1443 = vrot.lane.b32.xlu0 %v6219_v7, %s5429_s16  ;;  %9369 = vst [vmem:[#allocation45_spill] sm:$0xff] %v6310_v55 }
  0xf5   : > { %v1102_v42 = vpop.permute.xlu1 %1101 }
  0xf6   : > { %v772_v21 = vpop.permute.xlu0 %771  ;;  %v6333_v16 = vsel %vm1266_vm8, %v1245_v40, %v1102_v42  ;;  %v746_v42 = vrot.slane %v5752_v12, 2 }
  0xf7   : > { %1539 = vrot.lane.b32.xlu1 %v6242_v57, %s5430_s19  ;;  %9370 = vst [vmem:[#allocation46_spill] sm:$0xff] %v6333_v16  ;;  %v1215_v38 = vsel %vm1204_vm6, %v1184_v48, %v772_v21  ;;  %v747_v21 = vrot.slane %v5749_v6, 2  ;;  %v1080_v48 = vsel %vm1007_vm4, %v1078_v20, %v1079_v45 }
  0xf8   : > { %803 = vrot.lane.b32.xlu0 %v743_v30, %s5426_s8 }
  0xf9   : > { %v774_v37 = vpop.permute.xlu1 %773  ;;  %v748_v60 = vsel %vm675_vm2, %v746_v42, %v747_v21  ;;  %v1081_v42 = vrot.slane %v5755_v13, 4 }
  0xfa   : > { %v938_v0 = vpop.permute.xlu0 %937  ;;  %v1216_v23 = vsel %vm1204_vm6, %v1185_v4, %v774_v37  ;;  %v9375_v4 = vld [vmem:[#allocation7_spill] sm:$0xff] }
  0xfb   : > { %1541 = vrot.lane.b32.xlu1 %v6245_v28, %s5430_s19  ;;  %v1246_v34 = vsel %vm1235_vm7, %v1215_v38, %v938_v0 }
  0xfc   : > { %1635 = vrot.lane.b32.xlu0 %v6261_v52, %s5431_s27 }
  0xfd   : > { %v940_v26 = vpop.permute.xlu1 %939 }
  0xfe   : > { %v1104_v22 = vpop.permute.xlu0 %1103  ;;  %v1247_v49 = vsel %vm1235_vm7, %v1216_v23, %v940_v26  ;;  %v749_v26 = vrot.slane %v5755_v13, 2 }
  0xff   : > { %805 = vrot.lane.b32.xlu1 %v745_v3, %s5426_s8  ;;  %v6373_v30 = vsel %vm1266_vm8, %v1246_v34, %v1104_v22  ;;  %v913_v3 = vrot.slane %v5749_v6, 3  ;;  %v9374_v34 = vld [vmem:[#allocation27_spill] sm:$0xff] }
 0x100   : > { %969 = vrot.lane.b32.xlu0 %v909_v17, %s5427_s9  ;;  %9371 = vst [vmem:[#allocation47_spill] sm:$0xff] %v6373_v30  ;;  %v912_v17 = vrot.slane %v5752_v12, 3  ;;  %v750_v32 = vsel %vm675_vm2, %v747_v21, %v749_v26  ;;  %v308_v26 = vld [vmem:[%s5507_s29 + $0xe8] sm:$0xff]  ;;  %v9385_v12 = vld [vmem:[#allocation10_spill] sm:$0xff] }
 0x101   : > { %v1106_v41 = vpop.permute.xlu1 %1105 }
 0x102   : > { %v6307_v36 = vpop.permute.xlu0 %775  ;;  %v6391_v8 = vsel %vm1266_vm8, %v1247_v49, %v1106_v41  ;;  %v914_v24 = vsel %vm841_vm3, %v912_v17, %v913_v3  ;;  %v1186_v41 = vsel %vm1173_vm5, %v9373_v31, %v5970_v58 }
 0x103   : > { %1637 = vrot.lane.b32.xlu1 %v6277_v50, %s5431_s27  ;;  %9372 = vst [vmem:[#allocation48_spill] sm:$0xff] %v6391_v8 }
 0x104   : > { %1731 = vrot.lane.b32.xlu0 %v6310_v55, %s5432_s28 }
 0x105   : > { %v6318_v25 = vpop.permute.xlu1 %777 }
 0x106   : > { %v6320_v29 = vpop.permute.xlu0 %941 }
 0x107   : > { %971 = vrot.lane.b32.xlu1 %v911_v59, %s5427_s9  ;;  %v1217_v59 = vsel %vm1204_vm6, %v1186_v41, %v6307_v36 }
 0x108   : > { %1135 = vrot.lane.b32.xlu0 %v1075_v15, %s5428_s10  ;;  %v915_v15 = vrot.slane %v5755_v13, 3  ;;  %v1248_v51 = vsel %vm1235_vm7, %v1217_v59, %v6320_v29 }
 0x109   : > { %v6330_v56 = vpop.permute.xlu1 %943 }
 0x10a   : > { %v1108_v2 = vpop.permute.xlu0 %1107  ;;  %v916_v36 = vsel %vm841_vm3, %v913_v3, %v915_v15 }
 0x10b   : > { %1445 = vrot.lane.b32.xlu1 %v6242_v57, %s5429_s16  ;;  %v6439_v58 = vsel %vm1266_vm8, %v1248_v51, %v1108_v2  ;;  %v1187_v2 = vsel %vm1173_vm5, %v9375_v4, %v9374_v34  ;;  %v9378_v51 = vld [vmem:[#allocation28_spill] sm:$0xff]  ;;  %v9380_v34 = vld [vmem:[#allocation29_spill] sm:$0xff] }
 0x10c   : > { %1733 = vrot.lane.b32.xlu0 %v6333_v16, %s5432_s28  ;;  %v1218_v23 = vsel %vm1204_vm6, %v1187_v2, %v6318_v25  ;;  %v1082_v25 = vsel %vm1007_vm4, %v1079_v45, %v1081_v42  ;;  %v9381_v4 = vld [vmem:[#allocation9_spill] sm:$0xff] }
 0x10d   : > { %v6340_v47 = vpop.permute.xlu1 %1109  ;;  %v1249_v21 = vsel %vm1235_vm7, %v1218_v23, %v6330_v56  ;;  %v307_v56 = vld [vmem:[%s5507_s29 + $0xe0] sm:$0xff]  ;;  %v1189_v2 = vsel %vm1173_vm5, %v9381_v4, %v9380_v34 }
 0x10e   : > { %v6342_v5 = vpop.permute.xlu0 %779  ;;  %v6467_v17 = vsel %vm1266_vm8, %v1249_v21, %v6340_v47  ;;  %v389_v47 = vrot.slane %v307_v56, 6 }
 0x10f   : > { %1137 = vrot.lane.b32.xlu1 %v1077_v54, %s5428_s10 }
 0x110   : > { %1447 = vrot.lane.b32.xlu0 %v6245_v28, %s5429_s16  ;;  %v6500_v45 = vsel %vm344_vm0, 0.0, %v389_v47 }
 0x111   : > { %v6347_v46 = vpop.permute.xlu1 %781  ;;  %9377 = vst [vmem:[#allocation27_spill] sm:$0xff] %v6500_v45  ;;  %v1299_v56 = vrot.slane %v6500_v45, 1 }
 0x112   : > { %v6349_v9 = vpop.permute.xlu0 %945  ;;  %v1220_v21 = vsel %vm1204_vm6, %v1189_v2, %v6347_v46 }
 0x113   : > { %1543 = vrot.lane.b32.xlu1 %v6261_v52, %s5430_s19 }
 0x114   : > { %1545 = vrot.lane.b32.xlu0 %v6277_v50, %s5430_s19 }
 0x115   : > { %v6355_v39 = vpop.permute.xlu1 %947 }
 0x116   : > { %v6357_v1 = vpop.permute.xlu0 %1111 }
 0x117   : > { %1639 = vrot.lane.b32.xlu1 %v6310_v55, %s5431_s27 }
 0x118   : > { %1641 = vrot.lane.b32.xlu0 %v6333_v16, %s5431_s27 }
 0x119   : > { %v6368_v53 = vpop.permute.xlu1 %1113 }
 0x11a   : > { %v6370_v33 = vpop.permute.xlu0 %783 }
 0x11b   : > { %1735 = vrot.lane.b32.xlu1 %v6373_v30, %s5432_s28 }
 0x11c   : > { %1449 = vrot.lane.b32.xlu0 %v6261_v52, %s5429_s16 }
 0x11d   : > { %v6386_v19 = vpop.permute.xlu1 %785 }
 0x11e   : > { %v6388_v35 = vpop.permute.xlu0 %949 }
 0x11f   : > { %1737 = vrot.lane.b32.xlu1 %v6391_v8, %s5432_s28 }
 0x120   : > { %1451 = vrot.lane.b32.xlu0 %v6277_v50, %s5429_s16 }
 0x121   : > { %v6398_v37 = vpop.permute.xlu1 %951 }
 0x122   : > { %v6400_v0 = vpop.permute.xlu0 %1115 }
 0x123   : > { %1547 = vrot.lane.b32.xlu1 %v6310_v55, %s5430_s19 }
 0x124   : > { %807 = vrot.lane.b32.xlu0 %v748_v60, %s5426_s8 }
 0x125   : > { %v6408_v22 = vpop.permute.xlu1 %1117 }
 0x126   : > { %v6410_v27 = vpop.permute.xlu0 %787 }
 0x127   : > { %1549 = vrot.lane.b32.xlu1 %v6333_v16, %s5430_s19 }
 0x128   : > { %1643 = vrot.lane.b32.xlu0 %v6373_v30, %s5431_s27 }
 0x129   : > { %v6418_v61 = vpop.permute.xlu1 %789 }
 0x12a   : > { %v6420_v10 = vpop.permute.xlu0 %953 }
 0x12b   : > { %809 = vrot.lane.b32.xlu1 %v750_v32, %s5426_s8 }
 0x12c   : > { %973 = vrot.lane.b32.xlu0 %v914_v24, %s5427_s9  ;;  %v390_v24 = vrot.slane %v308_v26, 6 }
 0x12d   : > { %v6434_v40 = vpop.permute.xlu1 %955 }
 0x12e   : > { %v6436_v54 = vpop.permute.xlu0 %1119  ;;  %v6492_v41 = vsel %vm344_vm0, %v389_v47, %v390_v24  ;;  %v477_v20 = vsel %vm344_vm0, %v390_v24, 0.0  ;;  %v1251_v47 = vsel %vm1235_vm7, %v1220_v21, %v6355_v39 }
 0x12f   : > { %1645 = vrot.lane.b32.xlu1 %v6391_v8, %s5431_s27  ;;  %9376 = vst [vmem:[#allocation6_spill] sm:$0xff] %v6492_v41  ;;  %v1300_v23 = vrot.slane %v6492_v41, 1  ;;  %v1311_v46 = vrot.slane %v6492_v41, 2  ;;  %v1324_v21 = vrot.slane %v477_v20, 3 }
 0x130   : > { %1739 = vrot.lane.b32.xlu0 %v6439_v58, %s5432_s28 }
 0x131   : > { %v6447_v38 = vpop.permute.xlu1 %1121 }
 0x132   : > { %v6449_v29 = vpop.permute.xlu0 %791 }
 0x133   : > { %975 = vrot.lane.b32.xlu1 %v916_v36, %s5427_s9  ;;  %v9379_v36 = vld [vmem:[#allocation8_spill] sm:$0xff] }
 0x134   : > { %1139 = vrot.lane.b32.xlu0 %v1080_v48, %s5428_s10  ;;  %v1188_v48 = vsel %vm1173_vm5, %v9379_v36, %v9378_v51 }
 0x135   : > { %v6461_v49 = vpop.permute.xlu1 %793  ;;  %v1219_v42 = vsel %vm1204_vm6, %v1188_v48, %v6342_v5  ;;  %v6532_v5 = vsel %vm1266_vm8, %v1251_v47, %v6368_v53  ;;  %v1301_v48 = vsel %vm509_vm1, %v1299_v56, %v1300_v23 }
 0x136   : > { %v6463_v60 = vpop.permute.xlu0 %957  ;;  %v1250_v26 = vsel %vm1235_vm7, %v1219_v42, %v6349_v9  ;;  %v1313_v9 = vrot.slane %v477_v20, 2  ;;  %v1322_v42 = vrot.slane %v6492_v41, 3 }
 0x137   : > { %1453 = vrot.lane.b32.xlu1 %v6310_v55, %s5429_s16  ;;  %v6528_v36 = vsel %vm1266_vm8, %v1250_v26, %v6357_v1  ;;  %v1310_v1 = vrot.slane %v6500_v45, 2 }
 0x138   : > { %1741 = vrot.lane.b32.xlu0 %v6467_v17, %s5432_s28  ;;  %v1314_v53 = vsel %vm675_vm2, %v1311_v46, %v1313_v9  ;;  %v1325_v26 = vsel %vm841_vm3, %v1322_v42, %v1324_v21  ;;  %v1332_v9 = vrot.slane %v6500_v45, 4 }
 0x139   : > { %v6474_v13 = vpop.permute.xlu1 %959  ;;  %v1312_v2 = vsel %vm675_vm2, %v1310_v1, %v1311_v46  ;;  %v1333_v46 = vrot.slane %v6492_v41, 4 }
 0x13a   : > { %v6476_v3 = vpop.permute.xlu0 %1123 }
 0x13b   : > { %1141 = vrot.lane.b32.xlu1 %v1082_v25, %s5428_s10  ;;  %v1302_v25 = vrot.slane %v477_v20, 1  ;;  %v1334_v1 = vsel %vm1007_vm4, %v1332_v9, %v1333_v46 }
 0x13c   : > { %1455 = vrot.lane.b32.xlu0 %v6333_v16, %s5429_s16 }
 0x13d   : > { %v6483_v32 = vpop.permute.xlu1 %1125  ;;  %v1303_v39 = vsel %vm509_vm1, %v1300_v23, %v1302_v25  ;;  %v1321_v25 = vrot.slane %v6500_v45, 3  ;;  %v310_v45 = vld [vmem:[%s5507_s29 + $0xf8] sm:$0xff] }
 0x13e   : > { %v6485_v31 = vpop.permute.xlu0 %795 }
 0x13f   : > { %1551 = vrot.lane.b32.xlu1 %v6373_v30, %s5430_s19  ;;  %v1323_v47 = vsel %vm841_vm3, %v1321_v25, %v1322_v42 }
 0x140   : > { %1553 = vrot.lane.b32.xlu0 %v6391_v8, %s5430_s19 }
 0x141   : > { %v6494_v59 = vpop.permute.xlu1 %797 }
 0x142   : > { %v6496_v15 = vpop.permute.xlu0 %961 }
 0x143   : > { %1647 = vrot.lane.b32.xlu1 %v6439_v58, %s5431_s27 }
 0x144   : > { %1649 = vrot.lane.b32.xlu0 %v6467_v17, %s5431_s27 }
 0x145   : > { %v6522_v24 = vpop.permute.xlu1 %963 }
 0x146   : > { %v6524_v51 = vpop.permute.xlu0 %1127 }
 0x147   : > { %1743 = vrot.lane.b32.xlu1 %v6528_v36, %s5432_s28 }
 0x148   : > { %1745 = vrot.lane.b32.xlu0 %v6532_v5, %s5432_s28 }
 0x149   : > { %v6542_v34 = vpop.permute.xlu1 %1129 }
 0x14a   : > { %v6544_v4 = vpop.permute.xlu0 %799 }
 0x14b   : > { %1304 = vrot.lane.b32.xlu1 %v1301_v48, %s5425_s30 }
 0x14c   : > { %1306 = vrot.lane.b32.xlu0 %v1303_v39, %s5425_s30 }
 0x14d   : > { %v6552_v23 = vpop.permute.xlu1 %801 }
 0x14e   : > { %v6554_v56 = vpop.permute.xlu0 %965 }
 0x14f   : > { %1315 = vrot.lane.b32.xlu1 %v1312_v2, %s5426_s8 }
 0x150   : > { %1317 = vrot.lane.b32.xlu0 %v1314_v53, %s5426_s8  ;;  %v1335_v53 = vrot.slane %v477_v20, 4 }
 0x151   : > { %v6562_v39 = vpop.permute.xlu1 %967 }
 0x152   : > { %v6564_v48 = vpop.permute.xlu0 %1131  ;;  %v1336_v42 = vsel %vm1007_vm4, %v1333_v46, %v1335_v53  ;;  %v393_v46 = vrot.slane %v310_v45, 6 }
 0x153   : > { %1326 = vrot.lane.b32.xlu1 %v1323_v47, %s5427_s9 }
 0x154   : > { %1328 = vrot.lane.b32.xlu0 %v1325_v26, %s5427_s9  ;;  %v309_v26 = vld [vmem:[%s5507_s29 + $0xf0] sm:$0xff] }
 0x155   : > { %v5170_v2 = vpop.permute.xlu1 %5169 }
 0x156   : > { %v6569_v21 = vpop.permute.xlu0 %1133  ;;  %v5171_v25 = vunpack.i.l.bf16 %v5170_v2  ;;  %v5172_v20 = vunpack.i.h.bf16 %v5170_v2 }
 0x157   : > { %1337 = vrot.lane.b32.xlu1 %v1334_v1, %s5428_s10 }
 0x158   : > { %1457 = vrot.lane.b32.xlu0 %v6373_v30, %s5429_s16  ;;  %v1818_v47 = vsel %vm1817_vm9, %v6177_v62, %v5171_v25  ;;  %v392_v30 = vrot.slane %v309_v26, 6  ;;  %v1819_v2 = vsel %vm1817_vm9, %v6180_v18, %v5172_v20  ;;  %v6594_v26 = vsel %vm344_vm0, %v393_v46, 0.0  ;;  %v9384_v20 = vld [vmem:[#allocation31_spill] sm:$0xff] }
 0x159   : > { %v1536_v11 = vpop.permute.xlu1 %1535 }
 0x15a   : > { %v1538_v14 = vpop.permute.xlu0 %1537  ;;  %v1851_v53 = vsel %vm1850_vm10, %v1818_v47, %v1536_v11  ;;  %v6591_v45 = vsel %vm344_vm0, %v392_v30, %v393_v46  ;;  %v6598_v55 = vsel %vm344_vm0, 0.0, %v392_v30  ;;  %v9382_v11 = vld [vmem:[#allocation30_spill] sm:$0xff]  ;;  %v9383_v47 = vld [vmem:[#allocation11_spill] sm:$0xff] }
 0x15b   : > { %1339 = vrot.lane.b32.xlu1 %v1336_v42, %s5428_s10  ;;  %v1190_v16 = vsel %vm1173_vm5, %v9383_v47, %v9382_v11  ;;  %v1354_v30 = vrot.slane %v6591_v45, 1 }
 0x15c   : > { %1459 = vrot.lane.b32.xlu0 %v6391_v8, %s5429_s16 }
 0x15d   : > { %v1632_v9 = vpop.permute.xlu1 %1631 }
 0x15e   : > { %v1634_v1 = vpop.permute.xlu0 %1633  ;;  %v1884_v42 = vsel %vm1883_vm11, %v1851_v53, %v1632_v9  ;;  %v1191_v9 = vsel %vm1173_vm5, %v9385_v12, %v9384_v20  ;;  %v1852_v53 = vsel %vm1850_vm10, %v1819_v2, %v1538_v14  ;;  %v1221_v12 = vsel %vm1204_vm6, %v1190_v16, %v6370_v33 }
 0x15f   : > { %1555 = vrot.lane.b32.xlu1 %v6439_v58, %s5430_s19  ;;  %v1222_v46 = vsel %vm1204_vm6, %v1191_v9, %v6386_v19  ;;  %v1353_v19 = vrot.slane %v6598_v55, 1  ;;  %v1252_v14 = vsel %vm1235_vm7, %v1221_v12, %v6388_v35  ;;  %v1365_v35 = vrot.slane %v6591_v45, 2 }
 0x160   : > { %1557 = vrot.lane.b32.xlu0 %v6467_v17, %s5430_s19  ;;  %v6631_v16 = vsel %vm1266_vm8, %v1252_v14, %v6400_v0  ;;  %v1364_v9 = vrot.slane %v6598_v55, 2 }
 0x161   : > { %v1728_v25 = vpop.permute.xlu1 %1727  ;;  %v1355_v0 = vsel %vm509_vm1, %v1353_v19, %v1354_v30 }
 0x162   : > { %v1442_v8 = vpop.permute.xlu0 %1441  ;;  %v1917_v41 = vsel %vm1916_vm12, %v1884_v42, %v1728_v25  ;;  %v1356_v42 = vrot.slane %v6594_v26, 1  ;;  %v1885_v25 = vsel %vm1883_vm11, %v1852_v53, %v1634_v1  ;;  %v1376_v53 = vrot.slane %v6591_v45, 3 }
 0x163   : > { %4978 = vmatprep.mubr.msk.f32.mxu0 %vm1969_vm13, %v1917_v41  ;;  %1651 = vrot.lane.b32.xlu1 %v6528_v36, %s5431_s27  ;;  %v1253_v41 = vsel %vm1235_vm7, %v1222_v46, %v6398_v37  ;;  %v1367_v37 = vrot.slane %v6594_v26, 2 }
 0x164   : > { %1653 = vrot.lane.b32.xlu0 %v6532_v5, %s5431_s27  ;;  %v6626_v2 = vsel %vm1266_vm8, %v1253_v41, %v6408_v22  ;;  %v1357_v33 = vsel %vm509_vm1, %v1354_v30, %v1356_v42  ;;  %v1378_v42 = vrot.slane %v6594_v26, 3 }
 0x165   : > { %v1730_v11 = vpop.permute.xlu1 %1729  ;;  %v1368_v46 = vsel %vm675_vm2, %v1365_v35, %v1367_v37  ;;  %v1387_v37 = vrot.slane %v6591_v45, 4 }
 0x166   : > { %v1444_v47 = vpop.permute.xlu0 %1443  ;;  %v1918_v20 = vsel %vm1916_vm12, %v1885_v25, %v1730_v11  ;;  %v1366_v25 = vsel %vm675_vm2, %v1364_v9, %v1365_v35  ;;  %v1375_v11 = vrot.slane %v6598_v55, 3  ;;  %v1379_v30 = vsel %vm841_vm3, %v1376_v53, %v1378_v42 }
 0x167   : > { %4979 = vmatmul.mubr.msk.f32.vlgmr.msra.gmra.mxu0 %vm1969_vm13, %v1918_v20  ;;  %1747 = vrot.lane.b32.xlu1 %v6631_v16, %s5432_s28  ;;  %v1820_v35 = vsel %vm1817_vm9, %v6177_v62, %v1442_v8 }
 0x168   : > { %1749 = vrot.lane.b32.xlu0 %v6626_v2, %s5432_s28  ;;  %v1377_v20 = vsel %vm841_vm3, %v1375_v11, %v1376_v53  ;;  %v1389_v53 = vrot.slane %v6594_v26, 4 }
 0x169   : > { %v1540_v22 = vpop.permute.xlu1 %1539 }
 0x16a   : > { %v6641_v1 = vpop.permute.xlu0 %803 }
 0x16b   : > { %1358 = vrot.lane.b32.xlu1 %v1355_v0, %s5425_s30  ;;  %v1853_v0 = vsel %vm1850_vm10, %v1820_v35, %v1540_v22  ;;  %v1390_v22 = vsel %vm1007_vm4, %v1387_v37, %v1389_v53 }
 0x16c   : > { %1360 = vrot.lane.b32.xlu0 %v1357_v33, %s5425_s30  ;;  %v1386_v33 = vrot.slane %v6598_v55, 4 }
 0x16d   : > { %v1542_v12 = vpop.permute.xlu1 %1541 }
 0x16e   : > { %v1636_v41 = vpop.permute.xlu0 %1635 }
 0x16f   : > { %1369 = vrot.lane.b32.xlu1 %v1366_v25, %s5426_s8  ;;  %v1886_v9 = vsel %vm1883_vm11, %v1853_v0, %v1636_v41  ;;  %v1388_v25 = vsel %vm1007_vm4, %v1386_v33, %v1387_v37  ;;  %v1821_v41 = vsel %vm1817_vm9, %v6180_v18, %v1444_v47  ;;  %v9387_v37 = vld [vmem:[#allocation13_spill] sm:$0xff] }
 0x170   : > { %1371 = vrot.lane.b32.xlu0 %v1368_v46, %s5426_s8  ;;  %v1854_v26 = vsel %vm1850_vm10, %v1821_v41, %v1542_v12  ;;  %v9386_v12 = vld [vmem:[#allocation33_spill] sm:$0xff] }
 0x171   : > { %v6655_v19 = vpop.permute.xlu1 %805  ;;  %v1193_v0 = vsel %vm1173_vm5, %v9387_v37, %v9386_v12 }
 0x172   : > { %v6657_v14 = vpop.permute.xlu0 %969 }
 0x173   : > { %1380 = vrot.lane.b32.xlu1 %v1377_v20, %s5427_s9 }
 0x174   : > { %1382 = vrot.lane.b32.xlu0 %v1379_v30, %s5427_s9 }
 0x175   : > { %v1638_v46 = vpop.permute.xlu1 %1637 }
 0x176   : > { %v1732_v42 = vpop.permute.xlu0 %1731  ;;  %v1887_v30 = vsel %vm1883_vm11, %v1854_v26, %v1638_v46  ;;  %v9389_v46 = vld [vmem:[#allocation12_spill] sm:$0xff] }
 0x177   : > { %v1919_v11 = vsel %vm1916_vm12, %v1886_v9, %v1732_v42  ;;  %1391 = vrot.lane.b32.xlu1 %v1388_v25, %s5428_s10  ;;  %v9388_v9 = vld [vmem:[#allocation32_spill] sm:$0xff]  ;;  %v1224_v25 = vsel %vm1204_vm6, %v1193_v0, %v6418_v61 }
 0x178   : > { %1461 = vrot.lane.b32.xlu0 %v6439_v58, %s5429_s16  ;;  %4981 = vmatprep.mubr.msk.f32.mxu0 %vm1969_vm13, %v1919_v11  ;;  %v1192_v42 = vsel %vm1173_vm5, %v9389_v46, %v9388_v9  ;;  %v1255_v11 = vsel %vm1235_vm7, %v1224_v25, %v6434_v40  ;;  %v9391_v25 = vld [vmem:[#allocation14_spill] sm:$0xff] }
 0x179   : > { %v6675_v62 = vpop.permute.xlu1 %971  ;;  %v1223_v53 = vsel %vm1204_vm6, %v1192_v42, %v6410_v27  ;;  %v9390_v42 = vld [vmem:[#allocation35_spill] sm:$0xff] }
 0x17a   : > { %v6677_v8 = vpop.permute.xlu0 %1135  ;;  %v1254_v26 = vsel %vm1235_vm7, %v1223_v53, %v6420_v10  ;;  %v9393_v53 = vld [vmem:[#allocation15_spill] sm:$0xff] }
 0x17b   : > { %1393 = vrot.lane.b32.xlu1 %v1390_v22, %s5428_s10  ;;  %v6719_v61 = vsel %vm1266_vm8, %v1254_v26, %v6436_v54 }
 0x17c   : > { %1463 = vrot.lane.b32.xlu0 %v6467_v17, %s5429_s16 }
 0x17d   : > { %v1446_v20 = vpop.permute.xlu1 %1445 }
 0x17e   : > { %v1734_v33 = vpop.permute.xlu0 %1733 }
 0x17f   : > { %v1920_v35 = vsel %vm1916_vm12, %v1887_v30, %v1734_v33  ;;  %1559 = vrot.lane.b32.xlu1 %v6528_v36, %s5430_s19  ;;  %v6715_v30 = vsel %vm1266_vm8, %v1255_v11, %v6447_v38  ;;  %v1822_v33 = vsel %vm1817_vm9, %v6216_v63, %v1446_v20 }
 0x180   : > { %1561 = vrot.lane.b32.xlu0 %v6532_v5, %s5430_s19  ;;  %4982 = vmatmul.mubr.msk.f32.gmra.mxu0 %vm1969_vm13, %v1920_v35 }
 0x181   : > { %v6693_v18 = vpop.permute.xlu1 %1137 }
 0x182   : > { %v1448_v47 = vpop.permute.xlu0 %1447 }
 0x183   : > { %1655 = vrot.lane.b32.xlu1 %v6631_v16, %s5431_s27  ;;  %v1823_v37 = vsel %vm1817_vm9, %v6219_v7, %v1448_v47  ;;  %v1195_v7 = vsel %vm1173_vm5, %v9391_v25, %v9390_v42  ;;  %v9392_v47 = vld [vmem:[#allocation34_spill] sm:$0xff] }
 0x184   : > { %1657 = vrot.lane.b32.xlu0 %v6626_v2, %s5431_s27  ;;  %v1194_v11 = vsel %vm1173_vm5, %v9393_v53, %v9392_v47 }
 0x185   : > { %v1544_v22 = vpop.permute.xlu1 %1543 }
 0x186   : > { %v1546_v41 = vpop.permute.xlu0 %1545  ;;  %v1855_v10 = vsel %vm1850_vm10, %v1822_v33, %v1544_v22  ;;  %v1226_v22 = vsel %vm1204_vm6, %v1195_v7, %v6461_v49 }
 0x187   : > { %1751 = vrot.lane.b32.xlu1 %v6719_v61, %s5432_s28  ;;  %v1856_v63 = vsel %vm1850_vm10, %v1823_v37, %v1546_v41  ;;  %v1225_v41 = vsel %vm1204_vm6, %v1194_v11, %v6449_v29  ;;  %v1257_v26 = vsel %vm1235_vm7, %v1226_v22, %v6474_v13 }
 0x188   : > { %1753 = vrot.lane.b32.xlu0 %v6715_v30, %s5432_s28  ;;  %v1256_v33 = vsel %vm1235_vm7, %v1225_v41, %v6463_v60 }
 0x189   : > { %v1640_v27 = vpop.permute.xlu1 %1639  ;;  %v6771_v49 = vsel %vm1266_vm8, %v1256_v33, %v6476_v3 }
 0x18a   : > { %v1642_v40 = vpop.permute.xlu0 %1641  ;;  %v1888_v54 = vsel %vm1883_vm11, %v1855_v10, %v1640_v27  ;;  %v6767_v10 = vsel %vm1266_vm8, %v1257_v26, %v6483_v32 }
 0x18b   : > { %1465 = vrot.lane.b32.xlu1 %v6528_v36, %s5429_s16  ;;  %v1889_v20 = vsel %vm1883_vm11, %v1856_v63, %v1642_v40 }
 0x18c   : > { %1467 = vrot.lane.b32.xlu0 %v6532_v5, %s5429_s16 }
 0x18d   : > { %v1736_v38 = vpop.permute.xlu1 %1735 }
 0x18e   : > { %v1450_v35 = vpop.permute.xlu0 %1449  ;;  %v1921_v12 = vsel %vm1916_vm12, %v1888_v54, %v1736_v38 }
 0x18f   : > { %4984 = vmatprep.mubr.msk.f32.mxu0 %vm1969_vm13, %v1921_v12  ;;  %1563 = vrot.lane.b32.xlu1 %v6631_v16, %s5430_s19  ;;  %v1824_v3 = vsel %vm1817_vm9, %v6242_v57, %v1450_v35  ;;  %v9396_v57 = vld [vmem:[#allocation36_spill] sm:$0xff]  ;;  %v9397_v35 = vld [vmem:[#allocation17_spill] sm:$0xff] }
 0x190   : > { %1565 = vrot.lane.b32.xlu0 %v6626_v2, %s5430_s19  ;;  %v1196_v42 = vsel %vm1173_vm5, %v9397_v35, %v9396_v57 }
 0x191   : > { %v1738_v0 = vpop.permute.xlu1 %1737  ;;  %v1227_v7 = vsel %vm1204_vm6, %v1196_v42, %v6485_v31 }
 0x192   : > { %v1452_v9 = vpop.permute.xlu0 %1451  ;;  %v1922_v46 = vsel %vm1916_vm12, %v1889_v20, %v1738_v0  ;;  %v9394_v20 = vld [vmem:[#allocation37_spill] sm:$0xff]  ;;  %v9395_v0 = vld [vmem:[#allocation16_spill] sm:$0xff]  ;;  %v1258_v22 = vsel %vm1235_vm7, %v1227_v7, %v6496_v15 }
 0x193   : > { %4985 = vmatmul.mubr.msk.f32.gmra.mxu0 %vm1969_vm13, %v1922_v46  ;;  %1659 = vrot.lane.b32.xlu1 %v6719_v61, %s5431_s27  ;;  %v1197_v46 = vsel %vm1173_vm5, %v9395_v0, %v9394_v20  ;;  %v1825_v31 = vsel %vm1817_vm9, %v6245_v28, %v1452_v9 }
 0x194   : > { %1661 = vrot.lane.b32.xlu0 %v6715_v30, %s5431_s27  ;;  %v1228_v25 = vsel %vm1204_vm6, %v1197_v46, %v6494_v59  ;;  %v6823_v59 = vsel %vm1266_vm8, %v1258_v22, %v6524_v51 }
 0x195   : > { %v1548_v27 = vpop.permute.xlu1 %1547  ;;  %v1259_v47 = vsel %vm1235_vm7, %v1228_v25, %v6522_v24 }
 0x196   : > { %v6761_v40 = vpop.permute.xlu0 %807  ;;  %v1857_v54 = vsel %vm1850_vm10, %v1824_v3, %v1548_v27  ;;  %v6819_v41 = vsel %vm1266_vm8, %v1259_v47, %v6542_v34 }
 0x197   : > { %1755 = vrot.lane.b32.xlu1 %v6771_v49, %s5432_s28 }
 0x198   : > { %1757 = vrot.lane.b32.xlu0 %v6767_v10, %s5432_s28 }
 0x199   : > { %v1550_v29 = vpop.permute.xlu1 %1549 }
 0x19a   : > { %v1644_v13 = vpop.permute.xlu0 %1643  ;;  %v1858_v24 = vsel %vm1850_vm10, %v1825_v31, %v1550_v29  ;;  %v9398_v29 = vld [vmem:[#allocation39_spill] sm:$0xff] }
 0x19b   : > { %1469 = vrot.lane.b32.xlu1 %v6631_v16, %s5429_s16  ;;  %v1890_v38 = vsel %vm1883_vm11, %v1857_v54, %v1644_v13  ;;  %v9399_v13 = vld [vmem:[#allocation19_spill] sm:$0xff]  ;;  %v9400_v54 = vld [vmem:[#allocation38_spill] sm:$0xff] }
 0x19c   : > { %1471 = vrot.lane.b32.xlu0 %v6626_v2, %s5429_s16  ;;  %v1199_v3 = vsel %vm1173_vm5, %v9399_v13, %v9398_v29 }
 0x19d   : > { %v6781_v60 = vpop.permute.xlu1 %809 }
 0x19e   : > { %v6783_v32 = vpop.permute.xlu0 %973 }
 0x19f   : > { %1567 = vrot.lane.b32.xlu1 %v6719_v61, %s5430_s19 }
 0x1a0   : > { %1569 = vrot.lane.b32.xlu0 %v6715_v30, %s5430_s19 }
 0x1a1   : > { %v1646_v12 = vpop.permute.xlu1 %1645 }
 0x1a2   : > { %v1740_v37 = vpop.permute.xlu0 %1739  ;;  %v1891_v15 = vsel %vm1883_vm11, %v1858_v24, %v1646_v12 }
 0x1a3   : > { %v1923_v63 = vsel %vm1916_vm12, %v1890_v38, %v1740_v37  ;;  %1663 = vrot.lane.b32.xlu1 %v6771_v49, %s5431_s27  ;;  %v9401_v38 = vld [vmem:[#allocation18_spill] sm:$0xff]  ;;  %v1230_v37 = vsel %vm1204_vm6, %v1199_v3, %v6552_v23 }
 0x1a4   : > { %1665 = vrot.lane.b32.xlu0 %v6767_v10, %s5431_s27  ;;  %4987 = vmatprep.mubr.msk.f32.mxu0 %vm1969_vm13, %v1923_v63  ;;  %v1198_v12 = vsel %vm1173_vm5, %v9401_v38, %v9400_v54  ;;  %v1261_v20 = vsel %vm1235_vm7, %v1230_v37, %v6562_v39  ;;  %v9404_v54 = vld [vmem:[#allocation43_spill] sm:$0xff]  ;;  %v9406_v37 = vld [vmem:[#allocation20_spill] sm:$0xff] }
 0x1a5   : > { %v6811_v53 = vpop.permute.xlu1 %975  ;;  %v1229_v63 = vsel %vm1204_vm6, %v1198_v12, %v6544_v4  ;;  %v6865_v35 = vsel %vm1266_vm8, %v1261_v20, %v6569_v21  ;;  %v1203_v38 = vsel %vm1173_vm5, %v5749_v6, %v9404_v54  ;;  %v9405_v12 = vld [vmem:[#allocation42_spill] sm:$0xff] }
 0x1a6   : > { %v6813_v11 = vpop.permute.xlu0 %1139  ;;  %v1260_v57 = vsel %vm1235_vm7, %v1229_v63, %v6554_v56  ;;  %v1202_v63 = vsel %vm1173_vm5, %v9406_v37, %v9405_v12  ;;  %v1234_v20 = vsel %vm1204_vm6, %v1203_v38, %v6781_v60 }
 0x1a7   : > { %1759 = vrot.lane.b32.xlu1 %v6823_v59, %s5432_s28  ;;  %v6869_v23 = vsel %vm1266_vm8, %v1260_v57, %v6564_v48 }
 0x1a8   : > { %1761 = vrot.lane.b32.xlu0 %v6819_v41, %s5432_s28 }
 0x1a9   : > { %v1454_v26 = vpop.permute.xlu1 %1453 }
 0x1aa   : > { %v1742_v34 = vpop.permute.xlu0 %1741  ;;  %v1826_v42 = vsel %vm1817_vm9, %v6261_v52, %v1454_v26 }
 0x1ab   : > { %v1924_v27 = vsel %vm1916_vm12, %v1891_v15, %v1742_v34  ;;  %1473 = vrot.lane.b32.xlu1 %v6719_v61, %s5429_s16  ;;  %v9402_v15 = vld [vmem:[#allocation41_spill] sm:$0xff]  ;;  %v9403_v34 = vld [vmem:[#allocation40_spill] sm:$0xff] }
 0x1ac   : > { %1475 = vrot.lane.b32.xlu0 %v6715_v30, %s5429_s16  ;;  %4988 = vmatmul.mubr.msk.f32.gmra.mxu0 %vm1969_vm13, %v1924_v27  ;;  %v1201_v26 = vsel %vm1173_vm5, %v5733_v43, %v9402_v15  ;;  %v1200_v27 = vsel %vm1173_vm5, %v5736_v44, %v9403_v34 }
 0x1ad   : > { %v6839_v28 = vpop.permute.xlu1 %1141 }
 0x1ae   : > { %v1456_v51 = vpop.permute.xlu0 %1455 }
 0x1af   : > { %1571 = vrot.lane.b32.xlu1 %v6771_v49, %s5430_s19  ;;  %v1827_v4 = vsel %vm1817_vm9, %v6277_v50, %v1456_v51  ;;  %v1232_v51 = vsel %vm1204_vm6, %v1201_v26, %v6655_v19  ;;  %v9409_v26 = vld [vmem:[#allocation6_spill] sm:$0xff] }
 0x1b0   : > { %1573 = vrot.lane.b32.xlu0 %v6767_v10, %s5430_s19 }
 0x1b1   : > { %v1552_v9 = vpop.permute.xlu1 %1551 }
 0x1b2   : > { %v1554_v33 = vpop.permute.xlu0 %1553  ;;  %v1859_v39 = vsel %vm1850_vm10, %v1826_v42, %v1552_v9  ;;  %v1231_v9 = vsel %vm1204_vm6, %v1200_v27, %v6641_v1 }
 0x1b3   : > { %1667 = vrot.lane.b32.xlu1 %v6823_v59, %s5431_s27  ;;  %v1860_v56 = vsel %vm1850_vm10, %v1827_v4, %v1554_v33  ;;  %v1263_v33 = vsel %vm1235_vm7, %v1232_v51, %v6675_v62  ;;  %v1262_v13 = vsel %vm1235_vm7, %v1231_v9, %v6657_v14  ;;  %v9410_v51 = vld [vmem:[#allocation27_spill] sm:$0xff] }
 0x1b4   : > { %1669 = vrot.lane.b32.xlu0 %v6819_v41, %s5431_s27  ;;  %v6921_v44 = vsel %vm1266_vm8, %v1263_v33, %v6693_v18  ;;  %v6925_v19 = vsel %vm1266_vm8, %v1262_v13, %v6677_v8 }
 0x1b5   : > { %v1648_v0 = vpop.permute.xlu1 %1647 }
 0x1b6   : > { %v1650_v46 = vpop.permute.xlu0 %1649  ;;  %v1892_v21 = vsel %vm1883_vm11, %v1859_v39, %v1648_v0  ;;  %v1233_v0 = vsel %vm1204_vm6, %v1202_v63, %v6761_v40  ;;  %v9407_v39 = vld [vmem:[#allocation46_spill] sm:$0xff]  ;;  %v9408_v40 = vld [vmem:[#allocation45_spill] sm:$0xff] }
 0x1b7   : > { %1763 = vrot.lane.b32.xlu1 %v6869_v23, %s5432_s28  ;;  %v1893_v48 = vsel %vm1883_vm11, %v1860_v56, %v1650_v46  ;;  %v1265_v46 = vsel %vm1235_vm7, %v1234_v20, %v6811_v53  ;;  %v1264_v57 = vsel %vm1235_vm7, %v1233_v0, %v6783_v32 }
 0x1b8   : > { %1765 = vrot.lane.b32.xlu0 %v6865_v35, %s5432_s28  ;;  %v6959_v42 = vsel %vm1266_vm8, %v1265_v46, %v6839_v28  ;;  %v6963_v60 = vsel %vm1266_vm8, %v1264_v57, %v6813_v11  ;;  %v9411_v57 = vld [vmem:[#allocation48_spill] sm:$0xff] }
 0x1b9   : > { %v1744_v25 = vpop.permute.xlu1 %1743 }
 0x1ba   : > { %v1746_v7 = vpop.permute.xlu0 %1745  ;;  %v1925_v52 = vsel %vm1916_vm12, %v1892_v21, %v1744_v25 }
 0x1bb   : > { %v1926_v50 = vsel %vm1916_vm12, %v1893_v48, %v1746_v7  ;;  %4990 = vmatprep.mubr.msk.f32.mxu0 %vm1969_vm13, %v1925_v52  ;;  %1477 = vrot.lane.b32.xlu1 %v6771_v49, %s5429_s16 }
 0x1bc   : > { %1479 = vrot.lane.b32.xlu0 %v6767_v10, %s5429_s16  ;;  %4991 = vmatmul.mubr.msk.f32.gmra.mxu0 %vm1969_vm13, %v1926_v50 }
 0x1bd   : > { %v6891_v47 = vpop.permute.xlu1 %1304 }
 0x1be   : > { %v1307_v22 = vpop.permute.xlu0 %1306  ;;  %v1343_v9 = vsel %vm1173_vm5, %v9410_v51, %v6891_v47 }
 0x1bf   : > { %1575 = vrot.lane.b32.xlu1 %v6823_v59, %s5430_s19  ;;  %v1344_v34 = vsel %vm1173_vm5, %v9409_v26, %v1307_v22 }
 0x1c0   : > { %1577 = vrot.lane.b32.xlu0 %v6819_v41, %s5430_s19 }
 0x1c1   : > { %v6897_v31 = vpop.permute.xlu1 %1315 }
 0x1c2   : > { %v6899_v24 = vpop.permute.xlu0 %1317 }
 0x1c3   : > { %1671 = vrot.lane.b32.xlu1 %v6869_v23, %s5431_s27  ;;  %v1346_v13 = vsel %vm1204_vm6, %v1344_v34, %v6899_v24 }
 0x1c4   : > { %1673 = vrot.lane.b32.xlu0 %v6865_v35, %s5431_s27 }
 0x1c5   : > { %v1327_v43 = vpop.permute.xlu1 %1326 }
 0x1c6   : > { %v1329_v29 = vpop.permute.xlu0 %1328 }
 0x1c7   : > { %1767 = vrot.lane.b32.xlu1 %v6925_v19, %s5432_s28  ;;  %v1348_v22 = vsel %vm1235_vm7, %v1346_v13, %v1329_v29 }
 0x1c8   : > { %1769 = vrot.lane.b32.xlu0 %v6921_v44, %s5432_s28 }
 0x1c9   : > { %v1338_v1 = vpop.permute.xlu1 %1337 }
 0x1ca   : > { %v1458_v62 = vpop.permute.xlu0 %1457 }
 0x1cb   : > { %1481 = vrot.lane.b32.xlu1 %v6823_v59, %s5429_s16  ;;  %v1828_v53 = vsel %vm1817_vm9, %v9408_v40, %v1458_v62  ;;  %v1345_v62 = vsel %vm1204_vm6, %v1343_v9, %v6897_v31 }
 0x1cc   : > { %1483 = vrot.lane.b32.xlu0 %v6819_v41, %s5429_s16 }
 0x1cd   : > { %v1340_v14 = vpop.permute.xlu1 %1339 }
 0x1ce   : > { %v1460_v18 = vpop.permute.xlu0 %1459  ;;  %v7005_v47 = vsel %vm1266_vm8, %v1348_v22, %v1340_v14 }
 0x1cf   : > { %1579 = vrot.lane.b32.xlu1 %v6869_v23, %s5430_s19  ;;  %v1829_v56 = vsel %vm1817_vm9, %v9407_v39, %v1460_v18  ;;  %v9412_v39 = vld [vmem:[#allocation47_spill] sm:$0xff] }
 0x1d0   : > { %1581 = vrot.lane.b32.xlu0 %v6865_v35, %s5430_s19 }
 0x1d1   : > { %v1556_v8 = vpop.permute.xlu1 %1555 }
 0x1d2   : > { %v1558_v3 = vpop.permute.xlu0 %1557  ;;  %v1861_v28 = vsel %vm1850_vm10, %v1828_v53, %v1556_v8  ;;  %v1347_v8 = vsel %vm1235_vm7, %v1345_v62, %v1327_v43 }
 0x1d3   : > { %1675 = vrot.lane.b32.xlu1 %v6925_v19, %s5431_s27  ;;  %v1862_v32 = vsel %vm1850_vm10, %v1829_v56, %v1558_v3  ;;  %v1349_v54 = vsel %vm1266_vm8, %v1347_v8, %v1338_v1 }
 0x1d4   : > { %1677 = vrot.lane.b32.xlu0 %v6921_v44, %s5431_s27 }
 0x1d5   : > { %v1652_v4 = vpop.permute.xlu1 %1651 }
 0x1d6   : > { %v1654_v6 = vpop.permute.xlu0 %1653  ;;  %v1894_v48 = vsel %vm1883_vm11, %v1861_v28, %v1652_v4 }
 0x1d7   : > { %1771 = vrot.lane.b32.xlu1 %v6963_v60, %s5432_s28  ;;  %v1895_v21 = vsel %vm1883_vm11, %v1862_v32, %v1654_v6 }
 0x1d8   : > { %1773 = vrot.lane.b32.xlu0 %v6959_v42, %s5432_s28 }
 0x1d9   : > { %v1748_v25 = vpop.permute.xlu1 %1747 }
 0x1da   : > { %v1750_v11 = vpop.permute.xlu0 %1749  ;;  %v1927_v52 = vsel %vm1916_vm12, %v1894_v48, %v1748_v25 }
 0x1db   : > { %v1928_v7 = vsel %vm1916_vm12, %v1895_v21, %v1750_v11  ;;  %1485 = vrot.lane.b32.xlu1 %v6869_v23, %s5429_s16  ;;  %4993 = vmatprep.mubr.msk.f32.mxu0 %vm1969_vm13, %v1927_v52 }
 0x1dc   : > { %1487 = vrot.lane.b32.xlu0 %v6865_v35, %s5429_s16  ;;  %4994 = vmatmul.mubr.msk.f32.gmra.mxu0 %vm1969_vm13, %v1928_v7 }
 0x1dd   : > { %v1359_v15 = vpop.permute.xlu1 %1358 }
 0x1de   : > { %v1361_v50 = vpop.permute.xlu0 %1360  ;;  %v1397_v14 = vsel %vm1173_vm5, %v6598_v55, %v1359_v15 }
 0x1df   : > { %1583 = vrot.lane.b32.xlu1 %v6925_v19, %s5430_s19  ;;  %v1398_v29 = vsel %vm1173_vm5, %v6591_v45, %v1361_v50 }
 0x1e0   : > { %1585 = vrot.lane.b32.xlu0 %v6921_v44, %s5430_s19 }
 0x1e1   : > { %v1370_v33 = vpop.permute.xlu1 %1369 }
 0x1e2   : > { %v1372_v27 = vpop.permute.xlu0 %1371  ;;  %v1399_v63 = vsel %vm1204_vm6, %v1397_v14, %v1370_v33  ;;  %v9413_v33 = vld [vmem:[#allocation44_spill] sm:$0xff] }
 0x1e3   : > { %1679 = vrot.lane.b32.xlu1 %v6963_v60, %s5431_s27  ;;  %v1400_v37 = vsel %vm1204_vm6, %v1398_v29, %v1372_v27 }
 0x1e4   : > { %1681 = vrot.lane.b32.xlu0 %v6959_v42, %s5431_s27 }
 0x1e5   : > { %v1381_v3 = vpop.permute.xlu1 %1380 }
 0x1e6   : > { %v1383_v18 = vpop.permute.xlu0 %1382  ;;  %v1401_v46 = vsel %vm1235_vm7, %v1399_v63, %v1381_v3 }
 0x1e7   : > { %1775 = vrot.lane.b32.xlu1 %v1349_v54, %s5432_s28  ;;  %v1402_v20 = vsel %vm1235_vm7, %v1400_v37, %v1383_v18  ;;  %vm3860_vm7 = vcmask 982016  }
 0x1e8   : > { %1777 = vrot.lane.b32.xlu0 %v7005_v47, %s5432_s28 }
 0x1e9   : > { %v1392_v38 = vpop.permute.xlu1 %1391 }
 0x1ea   : > { %v1462_v24 = vpop.permute.xlu0 %1461  ;;  %v1403_v55 = vsel %vm1266_vm8, %v1401_v46, %v1392_v38 }
 0x1eb   : > { %1489 = vrot.lane.b32.xlu1 %v6925_v19, %s5429_s16  ;;  %v1830_v56 = vsel %vm1817_vm9, %v9412_v39, %v1462_v24 }
 0x1ec   : > { %1491 = vrot.lane.b32.xlu0 %v6921_v44, %s5429_s16 }
 0x1ed   : > { %v1394_v43 = vpop.permute.xlu1 %1393 }
 0x1ee   : > { %v1464_v31 = vpop.permute.xlu0 %1463  ;;  %v1404_v45 = vsel %vm1266_vm8, %v1402_v20, %v1394_v43 }
 0x1ef   : > { %1587 = vrot.lane.b32.xlu1 %v6963_v60, %s5430_s19  ;;  %v1831_v4 = vsel %vm1817_vm9, %v9411_v57, %v1464_v31  ;;  %v7091_v57 = vld [vmem:[%s9250_s2] ss:$0 sm:$0xff] }
 0x1f0   : > { %1589 = vrot.lane.b32.xlu0 %v6959_v42, %s5430_s19 }
 0x1f1   : > { %v1560_v12 = vpop.permute.xlu1 %1559 }
 0x1f2   : > { %v1562_v1 = vpop.permute.xlu0 %1561  ;;  %v1863_v53 = vsel %vm1850_vm10, %v1830_v56, %v1560_v12 }
 0x1f3   : > { %1683 = vrot.lane.b32.xlu1 %v1349_v54, %s5431_s27  ;;  %v1864_v40 = vsel %vm1850_vm10, %v1831_v4, %v1562_v1 }
 0x1f4   : > { %1685 = vrot.lane.b32.xlu0 %v7005_v47, %s5431_s27 }
 0x1f5   : > { %v1656_v6 = vpop.permute.xlu1 %1655 }
 0x1f6   : > { %v1658_v0 = vpop.permute.xlu0 %1657  ;;  %v1896_v21 = vsel %vm1883_vm11, %v1863_v53, %v1656_v6 }
 0x1f7   : > { %1779 = vrot.lane.b32.xlu1 %v1403_v55, %s5432_s28  ;;  %v1897_v32 = vsel %vm1883_vm11, %v1864_v40, %v1658_v0 }
 0x1f8   : > { %1781 = vrot.lane.b32.xlu0 %v1404_v45, %s5432_s28 }
 0x1f9   : > { %v1752_v11 = vpop.permute.xlu1 %1751 }
 0x1fa   : > { %v1754_v28 = vpop.permute.xlu0 %1753  ;;  %v1929_v25 = vsel %vm1916_vm12, %v1896_v21, %v1752_v11 }
 0x1fb   : > { %v1930_v48 = vsel %vm1916_vm12, %v1897_v32, %v1754_v28  ;;  %1493 = vrot.lane.b32.xlu1 %v6963_v60, %s5429_s16  ;;  %4996 = vmatprep.mubr.msk.f32.mxu0 %vm1969_vm13, %v1929_v25 }
 0x1fc   : > { %1495 = vrot.lane.b32.xlu0 %v6959_v42, %s5429_s16  ;;  %4997 = vmatmul.mubr.msk.f32.gmra.mxu0 %vm1969_vm13, %v1930_v48 }
 0x1fd   : > { %v1466_v52 = vpop.permute.xlu1 %1465 }
 0x1fe   : > { %v1468_v7 = vpop.permute.xlu0 %1467  ;;  %v1832_v51 = vsel %vm1817_vm9, %v6439_v58, %v1466_v52 }
 0x1ff   : > { %1591 = vrot.lane.b32.xlu1 %v1349_v54, %s5430_s19  ;;  %v1833_v27 = vsel %vm1817_vm9, %v6467_v17, %v1468_v7 }
 0x200   : > { %1593 = vrot.lane.b32.xlu0 %v7005_v47, %s5430_s19 }
 0x201   : > { %v1564_v15 = vpop.permute.xlu1 %1563 }
 0x202   : > { %v1566_v50 = vpop.permute.xlu0 %1565  ;;  %v1865_v13 = vsel %vm1850_vm10, %v1832_v51, %v1564_v15 }
 0x203   : > { %1687 = vrot.lane.b32.xlu1 %v1403_v55, %s5431_s27  ;;  %v1866_v9 = vsel %vm1850_vm10, %v1833_v27, %v1566_v50 }
 0x204   : > { %1689 = vrot.lane.b32.xlu0 %v1404_v45, %s5431_s27 }
 0x205   : > { %v1660_v34 = vpop.permute.xlu1 %1659 }
 0x206   : > { %v1662_v26 = vpop.permute.xlu0 %1661  ;;  %v1898_v18 = vsel %vm1883_vm11, %v1865_v13, %v1660_v34 }
 0x207   : > { %5174 = vrot.lane.b32.xlu1 %v9413_v33, %s5432_s28  ;;  %v1899_v62 = vsel %vm1883_vm11, %v1866_v9, %v1662_v26 }
 0x208   : > { %1497 = vrot.lane.b32.xlu0 %v1349_v54, %s5429_s16 }
 0x209   : > { %v1756_v8 = vpop.permute.xlu1 %1755 }
 0x20a   : > { %v1758_v22 = vpop.permute.xlu0 %1757  ;;  %v1931_v3 = vsel %vm1916_vm12, %v1898_v18, %v1756_v8 }
 0x20b   : > { %v1932_v17 = vsel %vm1916_vm12, %v1899_v62, %v1758_v22  ;;  %1499 = vrot.lane.b32.xlu1 %v7005_v47, %s5429_s16  ;;  %4999 = vmatprep.mubr.msk.f32.mxu0 %vm1969_vm13, %v1931_v3 }
 0x20c   : > { %1595 = vrot.lane.b32.xlu0 %v1403_v55, %s5430_s19  ;;  %5000 = vmatmul.mubr.msk.f32.gmra.mxu0 %vm1969_vm13, %v1932_v17  ;;  %v9414_v17 = vld [vmem:[#allocation4_spill] sm:$0xff] }
 0x20d   : > { %v1470_v54 = vpop.permute.xlu1 %1469 }
 0x20e   : > { %v1472_v58 = vpop.permute.xlu0 %1471  ;;  %v1834_v47 = vsel %vm1817_vm9, %v6528_v36, %v1470_v54 }
 0x20f   : > { %1597 = vrot.lane.b32.xlu1 %v1404_v45, %s5430_s19  ;;  %v1835_v29 = vsel %vm1817_vm9, %v6532_v5, %v1472_v58 }
 0x210   : > { %5179 = vrot.lane.b32.xlu0 %v9413_v33, %s5431_s27 }
 0x211   : > { %v1568_v38 = vpop.permute.xlu1 %1567 }
 0x212   : > { %v1570_v24 = vpop.permute.xlu0 %1569  ;;  %v1867_v14 = vsel %vm1850_vm10, %v1834_v47, %v1568_v38 }
 0x213   : > { %v1868_v1 = vsel %vm1850_vm10, %v1835_v29, %v1570_v24 }
 0x215   : > { %v1664_v43 = vpop.permute.xlu1 %1663 }
 0x216   : > { %v1666_v31 = vpop.permute.xlu0 %1665  ;;  %v1900_v63 = vsel %vm1883_vm11, %v1867_v14, %v1664_v43 }
 0x217   : > { %v1901_v12 = vsel %vm1883_vm11, %v1868_v1, %v1666_v31 }
 0x219   : > { %v1760_v20 = vpop.permute.xlu1 %1759 }
 0x21a   : > { %v1762_v37 = vpop.permute.xlu0 %1761  ;;  %v1933_v46 = vsel %vm1916_vm12, %v1900_v63, %v1760_v20 }
 0x21b   : > { %v1934_v0 = vsel %vm1916_vm12, %v1901_v12, %v1762_v37  ;;  %5002 = vmatprep.mubr.msk.f32.mxu0 %vm1969_vm13, %v1933_v46 }
 0x21c   : > { %5003 = vmatmul.mubr.msk.f32.gmra.mxu0 %vm1969_vm13, %v1934_v0 }
 0x21d   : > { %v1474_v36 = vpop.permute.xlu1 %1473 }
 0x21e   : > { %v1476_v5 = vpop.permute.xlu0 %1475  ;;  %v1836_v40 = vsel %vm1817_vm9, %v6631_v16, %v1474_v36 }
 0x21f   : > { %v1837_v39 = vsel %vm1817_vm9, %v6626_v2, %v1476_v5 }
 0x221   : > { %v1572_v6 = vpop.permute.xlu1 %1571 }
 0x222   : > { %v1574_v45 = vpop.permute.xlu0 %1573  ;;  %v1869_v28 = vsel %vm1850_vm10, %v1836_v40, %v1572_v6 }
 0x223   : > { %v1870_v53 = vsel %vm1850_vm10, %v1837_v39, %v1574_v45 }
 0x225   : > { %v1668_v4 = vpop.permute.xlu1 %1667 }
 0x226   : > { %v1670_v55 = vpop.permute.xlu0 %1669  ;;  %v1902_v25 = vsel %vm1883_vm11, %v1869_v28, %v1668_v4 }
 0x227   : > { %v4980_v56 = vpop.f32.mrf.mxu0  ;;  %v1903_v21 = vsel %vm1883_vm11, %v1870_v53, %v1670_v55 }
 0x228   : > { %v2141_v32 = vadd.f32 %v4980_v56, %v7091_v57 }
 0x229   : > { %v2135_v11 = vpop.f32.mrf.mxu0  ;;  %v1764_v52 = vpop.permute.xlu1 %1763 }
 0x22a   : > { %v1766_v48 = vpop.permute.xlu0 %1765  ;;  %v2295_v7 = vmax.f32 %v2141_v32, 0.0  ;;  %v2136_v2 = vadd.f32 %v7091_v57, %v2135_v11  ;;  %v1935_v16 = vsel %vm1916_vm12, %v1902_v25, %v1764_v52 }
 0x22b   : > { %v1936_v50 = vsel %vm1916_vm12, %v1903_v21, %v1766_v48  ;;  %5005 = vmatprep.mubr.msk.f32.mxu0 %vm1969_vm13, %v1935_v16 }
 0x22c   : > { %v2359_v15 = vrot.slane %v2295_v7, 6  ;;  %v2294_v26 = vmax.f32 %v2136_v2, 0.0  ;;  %5006 = vmatmul.mubr.msk.f32.gmra.mxu0 %vm1969_vm13, %v1936_v50 }
 0x22d   : > { %v1478_v9 = vpop.permute.xlu1 %1477 }
 0x22e   : > { %v1480_v34 = vpop.permute.xlu0 %1479  ;;  %v7108_v27 = vsel %vm344_vm0, %v2359_v15, 0.0  ;;  %v7110_v51 = vrot.slane %v2294_v26, 6  ;;  %v1838_v38 = vsel %vm1817_vm9, %v6719_v61, %v1478_v9 }
 0x22f   : > { %v2517_v13 = vrot.slane %v7108_v27, 1  ;;  %v1839_v24 = vsel %vm1817_vm9, %v6715_v30, %v1480_v34 }
 0x230   : > { %v7114_v33 = vsel %vm344_vm0, %v7110_v51, %v2359_v15 }
 0x231   : > { %v2515_v62 = vrot.slane %v7114_v33, 1  ;;  %v1576_v18 = vpop.permute.xlu1 %1575 }
 0x232   : > { %v1578_v22 = vpop.permute.xlu0 %1577  ;;  %v1871_v43 = vsel %vm1850_vm10, %v1838_v38, %v1576_v18 }
 0x233   : > { %v2518_v8 = vsel %vm509_vm1, %v2515_v62, %v2517_v13  ;;  %v1872_v31 = vsel %vm1850_vm10, %v1839_v24, %v1578_v22 }
 0x234   : > { %v5183_v3 = vpack.i.bf16 %v9414_v17, %v2518_v8 }
 0x235   : > { %v1672_v54 = vpop.permute.xlu1 %1671 }
 0x236   : > { %v1674_v58 = vpop.permute.xlu0 %1673  ;;  %5184 = vrot.lane.b32.xlu1 %v5183_v3, %s5426_s8  ;;  %v1904_v1 = vsel %vm1883_vm11, %v1871_v43, %v1672_v54 }
 0x237   : > { %v1905_v29 = vsel %vm1883_vm11, %v1872_v31, %v1674_v58 }
 0x239   : > { %v1768_v14 = vpop.permute.xlu1 %1767 }
 0x23a   : > { %v1770_v47 = vpop.permute.xlu0 %1769  ;;  %v1937_v37 = vsel %vm1916_vm12, %v1904_v1, %v1768_v14 }
 0x23b   : > { %v1938_v12 = vsel %vm1916_vm12, %v1905_v29, %v1770_v47  ;;  %5008 = vmatprep.mubr.msk.f32.mxu0 %vm1969_vm13, %v1937_v37 }
 0x23c   : > { %5009 = vmatmul.mubr.msk.f32.gmra.mxu0 %vm1969_vm13, %v1938_v12 }
 0x23d   : > { %v1482_v61 = vpop.permute.xlu1 %1481 }
 0x23e   : > { %v1484_v30 = vpop.permute.xlu0 %1483  ;;  %v1840_v32 = vsel %vm1817_vm9, %v6771_v49, %v1482_v61 }
 0x23f   : > { %v1841_v53 = vsel %vm1817_vm9, %v6767_v10, %v1484_v30 }
 0x240   : > { %v4983_v63 = vpop.f32.mrf.mxu0 }
 0x241   : > { %v2151_v20 = vadd.f32 %v4983_v63, %v7091_v57  ;;  %v1580_v36 = vpop.permute.xlu1 %1579 }
 0x242   : > { %v2145_v0 = vpop.f32.mrf.mxu0  ;;  %v1582_v46 = vpop.permute.xlu0 %1581  ;;  %v1873_v48 = vsel %vm1850_vm10, %v1840_v32, %v1580_v36  ;;  %v2835_v32 = vrot.slane %v7114_v33, 3 }
 0x243   : > { %v2297_v5 = vmax.f32 %v2151_v20, 0.0  ;;  %v2146_v45 = vadd.f32 %v7091_v57, %v2145_v0  ;;  %v1874_v21 = vsel %vm1850_vm10, %v1841_v53, %v1582_v46  ;;  %v2677_v20 = vrot.slane %v7108_v27, 2 }
 0x245   : > { %v2362_v6 = vrot.slane %v2297_v5, 6  ;;  %v2296_v55 = vmax.f32 %v2146_v45, 0.0  ;;  %v1676_v40 = vpop.permute.xlu1 %1675 }
 0x246   : > { %v1678_v4 = vpop.permute.xlu0 %1677  ;;  %v1906_v10 = vsel %vm1883_vm11, %v1873_v48, %v1676_v40  ;;  %v9415_v40 = vld [vmem:[#allocation21_spill] sm:$0xff] }
 0x247   : > { %v7138_v39 = vsel %vm344_vm0, %v2362_v6, 0.0  ;;  %v7140_v56 = vrot.slane %v2296_v55, 6  ;;  %v1907_v25 = vsel %vm1883_vm11, %v1874_v21, %v1678_v4 }
 0x248   : > { %v2522_v11 = vrot.slane %v7138_v39, 1 }
 0x249   : > { %v7148_v28 = vsel %vm344_vm0, %v7140_v56, %v2362_v6  ;;  %v1772_v2 = vpop.permute.xlu1 %1771 }
 0x24a   : > { %v1774_v7 = vpop.permute.xlu0 %1773  ;;  %v2520_v52 = vrot.slane %v7148_v28, 1  ;;  %v1939_v50 = vsel %vm1916_vm12, %v1906_v10, %v1772_v2 }
 0x24b   : > { %v1940_v49 = vsel %vm1916_vm12, %v1907_v25, %v1774_v7  ;;  %5011 = vmatprep.mubr.msk.f32.mxu0 %vm1969_vm13, %v1939_v50 }
 0x24c   : > { %v2523_v16 = vsel %vm509_vm1, %v2520_v52, %v2522_v11  ;;  %5012 = vmatmul.mubr.msk.f32.gmra.mxu0 %vm1969_vm13, %v1940_v49  ;;  %v2837_v11 = vrot.slane %v7108_v27, 3 }
 0x24d   : > { %2594 = vrot.lane.b32.xlu0 %v2523_v16, %s5426_s8  ;;  %v1486_v26 = vpop.permute.xlu1 %1485 }
 0x24e   : > { %v1488_v15 = vpop.permute.xlu0 %1487  ;;  %v1842_v31 = vsel %vm1817_vm9, %v6823_v59, %v1486_v26  ;;  %v2838_v49 = vsel %vm841_vm3, %v2835_v32, %v2837_v11 }
 0x24f   : > { %v1843_v54 = vsel %vm1817_vm9, %v6819_v41, %v1488_v15  ;;  %v2675_v41 = vrot.slane %v7114_v33, 2 }
 0x251   : > { %v1584_v9 = vpop.permute.xlu1 %1583  ;;  %v2678_v6 = vsel %vm675_vm2, %v2675_v41, %v2677_v20 }
 0x252   : > { %v1586_v34 = vpop.permute.xlu0 %1585  ;;  %v1875_v47 = vsel %vm1850_vm10, %v1842_v31, %v1584_v9  ;;  %v5188_v53 = vpack.i.bf16 %v9415_v40, %v2678_v6 }
 0x253   : > { %v4986_v13 = vpop.f32.mrf.mxu0  ;;  %v1876_v43 = vsel %vm1850_vm10, %v1843_v54, %v1586_v34  ;;  %v2997_v54 = vrot.slane %v7108_v27, 4 }
 0x254   : > { %v2161_v22 = vadd.f32 %v4986_v13, %v7091_v57 }
 0x255   : > { %v2155_v18 = vpop.f32.mrf.mxu0  ;;  %v1680_v58 = vpop.permute.xlu1 %1679 }
 0x256   : > { %v1682_v8 = vpop.permute.xlu0 %1681  ;;  %v2299_v17 = vmax.f32 %v2161_v22, 0.0  ;;  %v2156_v3 = vadd.f32 %v7091_v57, %v2155_v18  ;;  %v1908_v30 = vsel %vm1883_vm11, %v1875_v47, %v1680_v58  ;;  %v9416_v22 = vld [vmem:[#allocation23_spill] sm:$0xff] }
 0x257   : > { %v1909_v12 = vsel %vm1883_vm11, %v1876_v43, %v1682_v8  ;;  %v5193_v18 = vpack.i.bf16 %v9416_v22, %v2838_v49  ;;  %v2995_v8 = vrot.slane %v7114_v33, 4  ;;  %v2682_v49 = vrot.slane %v7138_v39, 2 }
 0x258   : > { %v2365_v24 = vrot.slane %v2299_v17, 6  ;;  %v2298_v38 = vmax.f32 %v2156_v3, 0.0 }
 0x259   : > { %v1776_v37 = vpop.permute.xlu1 %1775 }
 0x25a   : > { %v1778_v29 = vpop.permute.xlu0 %1777  ;;  %v7173_v1 = vsel %vm344_vm0, %v2365_v24, 0.0  ;;  %v7175_v14 = vrot.slane %v2298_v38, 6  ;;  %v1941_v63 = vsel %vm1916_vm12, %v1908_v30, %v1776_v37  ;;  %v2998_v37 = vsel %vm1007_vm4, %v2995_v8, %v2997_v54 }
 0x25b   : > { %v1942_v61 = vsel %vm1916_vm12, %v1909_v12, %v1778_v29  ;;  %v2527_v0 = vrot.slane %v7173_v1, 1  ;;  %5014 = vmatprep.mubr.msk.f32.mxu0 %vm1969_vm13, %v1941_v63  ;;  %v2687_v48 = vrot.slane %v7173_v1, 2 }
 0x25c   : > { %v7183_v59 = vsel %vm344_vm0, %v7175_v14, %v2365_v24  ;;  %5015 = vmatmul.mubr.msk.f32.gmra.mxu0 %vm1969_vm13, %v1942_v61  ;;  %v2847_v24 = vrot.slane %v7173_v1, 3 }
 0x25d   : > { %v2525_v5 = vrot.slane %v7183_v59, 1  ;;  %v1490_v36 = vpop.permute.xlu1 %1489  ;;  %v2685_v21 = vrot.slane %v7183_v59, 2  ;;  %v2845_v3 = vrot.slane %v7183_v59, 3 }
 0x25e   : > { %v1492_v46 = vpop.permute.xlu0 %1491  ;;  %v1844_v50 = vsel %vm1817_vm9, %v6869_v23, %v1490_v36 }
 0x25f   : > { %v2528_v45 = vsel %vm509_vm1, %v2525_v5, %v2527_v0  ;;  %v1845_v10 = vsel %vm1817_vm9, %v6865_v35, %v1492_v46  ;;  %v2688_v2 = vsel %vm675_vm2, %v2685_v21, %v2687_v48  ;;  %v2848_v12 = vsel %vm841_vm3, %v2845_v3, %v2847_v24  ;;  %v9417_v46 = vld [vmem:[#allocation25_spill] sm:$0xff] }
 0x260   : > { %2598 = vrot.lane.b32.xlu1 %v2528_v45, %s5426_s8  ;;  %v5198_v36 = vpack.i.bf16 %v9417_v46, %v2998_v37  ;;  %v3000_v45 = vrot.slane %v7148_v28, 4  ;;  %v2680_v48 = vrot.slane %v7148_v28, 2 }
 0x261   : > { %v1588_v4 = vpop.permute.xlu1 %1587 }
 0x262   : > { %v1590_v55 = vpop.permute.xlu0 %1589  ;;  %v1877_v15 = vsel %vm1850_vm10, %v1844_v50, %v1588_v4  ;;  %v7264_v50 = vsel %vm344_vm0, 0.0, %v7140_v56  ;;  %v2683_v22 = vsel %vm675_vm2, %v2680_v48, %v2682_v49 }
 0x263   : > { %v1878_v16 = vsel %vm1850_vm10, %v1845_v10, %v1590_v55  ;;  %v3002_v55 = vrot.slane %v7138_v39, 4 }
 0x264   : > { %5189 = vrot.lane.b32.xlu1 %v5188_v53, %s5428_s10 }
 0x265   : > { %v1684_v7 = vpop.permute.xlu1 %1683 }
 0x266   : > { %v1686_v25 = vpop.permute.xlu0 %1685  ;;  %v1910_v34 = vsel %vm1883_vm11, %v1877_v15, %v1684_v7  ;;  %v3003_v7 = vsel %vm1007_vm4, %v3000_v45, %v3002_v55 }
 0x267   : > { %v1911_v26 = vsel %vm1883_vm11, %v1878_v16, %v1686_v25 }
 0x268   : > { %2758 = vrot.lane.b32.xlu1 %v2688_v2, %s5428_s10 }
 0x269   : > { %v1780_v9 = vpop.permute.xlu1 %1779 }
 0x26a   : > { %v1782_v35 = vpop.permute.xlu0 %1781  ;;  %v1943_v23 = vsel %vm1916_vm12, %v1910_v34, %v1780_v9 }
 0x26b   : > { %v1944_v13 = vsel %vm1916_vm12, %v1911_v26, %v1782_v35  ;;  %5017 = vmatprep.mubr.msk.f32.mxu0 %vm1969_vm13, %v1943_v23 }
 0x26c   : > { %v4989_v17 = vpop.f32.mrf.mxu0  ;;  %5194 = vrot.lane.b32.xlu1 %v5193_v18, %s5433_s11  ;;  %5018 = vmatmul.mubr.msk.f32.gmra.mxu0 %vm1969_vm13, %v1944_v13 }
 0x26d   : > { %v2171_v58 = vadd.f32 %v4989_v17, %v7091_v57  ;;  %v1494_v29 = vpop.permute.xlu1 %1493 }
 0x26e   : > { %v2165_v38 = vpop.f32.mrf.mxu0  ;;  %v1496_v31 = vpop.permute.xlu0 %1495  ;;  %v1846_v15 = vsel %vm1817_vm9, %v6925_v19, %v1494_v29 }
 0x26f   : > { %v2301_v43 = vmax.f32 %v2171_v58, 0.0  ;;  %v2166_v47 = vadd.f32 %v7091_v57, %v2165_v38  ;;  %v1847_v26 = vsel %vm1817_vm9, %v6921_v44, %v1496_v31 }
 0x270   : > { %2918 = vrot.lane.b32.xlu1 %v2848_v12, %s5433_s11 }
 0x271   : > { %v2368_v30 = vrot.slane %v2301_v43, 6  ;;  %v2300_v27 = vmax.f32 %v2166_v47, 0.0  ;;  %v1592_v0 = vpop.permute.xlu1 %1591  ;;  %v2679_v47 = vrot.slane %v7264_v50, 2 }
 0x272   : > { %v1594_v61 = vpop.permute.xlu0 %1593  ;;  %v1879_v34 = vsel %vm1850_vm10, %v1846_v15, %v1592_v0 }
 0x273   : > { %v7239_v63 = vsel %vm344_vm0, %v2368_v30, 0.0  ;;  %v2367_v20 = vrot.slane %v2300_v27, 6  ;;  %v1880_v9 = vsel %vm1850_vm10, %v1847_v26, %v1594_v61  ;;  %v2842_v27 = vrot.slane %v7138_v39, 3 }
 0x274   : > { %5199 = vrot.lane.b32.xlu1 %v5198_v36, %s5434_s12  ;;  %v2532_v4 = vrot.slane %v7239_v63, 1  ;;  %v3012_v16 = vrot.slane %v7239_v63, 4  ;;  %v2692_v54 = vrot.slane %v7239_v63, 2  ;;  %v2852_v49 = vrot.slane %v7239_v63, 3 }
 0x275   : > { %v7244_v6 = vsel %vm344_vm0, %v2367_v20, %v2368_v30  ;;  %v1688_v11 = vpop.permute.xlu1 %1687  ;;  %v7252_v25 = vsel %vm344_vm0, 0.0, %v2367_v20  ;;  %v2840_v30 = vrot.slane %v7148_v28, 3  ;;  %v2519_v63 = vrot.slane %v7264_v50, 1 }
 0x276   : > { %v1690_v40 = vpop.permute.xlu0 %1689  ;;  %v2530_v53 = vrot.slane %v7244_v6, 1  ;;  %v3010_v2 = vrot.slane %v7244_v6, 4  ;;  %v2529_v18 = vrot.slane %v7252_v25, 1  ;;  %v2690_v19 = vrot.slane %v7244_v6, 2 }
 0x277   : > { %v1912_v44 = vsel %vm1883_vm11, %v1879_v34, %v1688_v11  ;;  %v1913_v58 = vsel %vm1883_vm11, %v1880_v9, %v1690_v40  ;;  %v2843_v11 = vsel %vm841_vm3, %v2840_v30, %v2842_v27  ;;  %v2839_v34 = vrot.slane %v7264_v50, 3 }
 0x278   : > { %v2533_v10 = vsel %vm509_vm1, %v2530_v53, %v2532_v4  ;;  %3074 = vrot.lane.b32.xlu1 %v3003_v7, %s5434_s12  ;;  %v3013_v17 = vsel %vm1007_vm4, %v3010_v2, %v3012_v16  ;;  %v2531_v12 = vsel %vm509_vm1, %v2529_v18, %v2530_v53  ;;  %v2693_v37 = vsel %vm675_vm2, %v2690_v19, %v2692_v54 }
 0x279   : > { %2602 = vrot.lane.b32.xlu0 %v2533_v10, %s5426_s8  ;;  %v5175_v13 = vpop.permute.xlu1 %5174  ;;  %v2681_v4 = vsel %vm675_vm2, %v2679_v47, %v2680_v48  ;;  %v2689_v7 = vrot.slane %v7252_v25, 2  ;;  %v2841_v18 = vsel %vm841_vm3, %v2839_v34, %v2840_v30 }
 0x27a   : > { %v1498_v35 = vpop.permute.xlu0 %1497  ;;  %v5177_v56 = vunpack.i.h.bf16 %v5175_v13  ;;  %v5176_v23 = vunpack.i.l.bf16 %v5175_v13 }
 0x27b   : > { %v1848_v40 = vsel %vm1817_vm9, %v6963_v60, %v1498_v35  ;;  %v2691_v35 = vsel %vm675_vm2, %v2689_v7, %v2690_v19  ;;  %v7331_v19 = vsel %vm344_vm0, 0.0, %v7175_v14 }
 0x27c   : > { %3082 = vrot.lane.b32.xlu1 %v3013_v17, %s5434_s12  ;;  %v1945_v24 = vsel %vm1916_vm12, %v1912_v44, %v5176_v23  ;;  %v1946_v31 = vsel %vm1916_vm12, %v1913_v58, %v5177_v56  ;;  %v4992_v43 = vpop.f32.mrf.mxu0  ;;  %v3005_v17 = vrot.slane %v7183_v59, 4  ;;  %v3007_v58 = vrot.slane %v7173_v1, 4 }
 0x27d   : > { %2754 = vrot.lane.b32.xlu0 %v2683_v22, %s5428_s10  ;;  %v1500_v29 = vpop.permute.xlu1 %1499  ;;  %5020 = vmatprep.mubr.msk.f32.mxu0 %vm1969_vm13, %v1945_v24  ;;  %v2181_v26 = vadd.f32 %v4992_v43, %v7091_v57 }
 0x27e   : > { %v1596_v38 = vpop.permute.xlu0 %1595  ;;  %5021 = vmatmul.mubr.msk.f32.gmra.mxu0 %vm1969_vm13, %v1946_v31  ;;  %v1849_v20 = vsel %vm1817_vm9, %v6959_v42, %v1500_v29  ;;  %v2175_v0 = vpop.f32.mrf.mxu0  ;;  %v2850_v42 = vrot.slane %v7244_v6, 3  ;;  %v2524_v31 = vrot.slane %v7331_v19, 1  ;;  %v3009_v29 = vrot.slane %v7252_v25, 4 }
 0x27f   : > { %v1881_v39 = vsel %vm1850_vm10, %v1848_v40, %v1596_v38  ;;  %v2176_v10 = vadd.f32 %v7091_v57, %v2175_v0  ;;  %v2303_v22 = vmax.f32 %v2181_v26, 0.0  ;;  %v2999_v38 = vrot.slane %v7264_v50, 4 }
 0x280   : > { %2600 = vrot.lane.b32.xlu1 %v2531_v12, %s5426_s8  ;;  %v2853_v9 = vsel %vm841_vm3, %v2850_v42, %v2852_v49  ;;  %v2526_v47 = vsel %vm509_vm1, %v2524_v31, %v2525_v5 }
 0x281   : > { %2762 = vrot.lane.b32.xlu0 %v2693_v37, %s5428_s10  ;;  %v1598_v46 = vpop.permute.xlu1 %1597  ;;  %v2302_v13 = vmax.f32 %v2176_v10, 0.0  ;;  %v2371_v54 = vrot.slane %v2303_v22, 6  ;;  %v3001_v1 = vsel %vm1007_vm4, %v2999_v38, %v3000_v45  ;;  %v3011_v45 = vsel %vm1007_vm4, %v3009_v29, %v3010_v2 }
 0x282   : > { %v5180_v61 = vpop.permute.xlu0 %5179  ;;  %v1882_v53 = vsel %vm1850_vm10, %v1849_v20, %v1598_v46 }
 0x283   : > { %v5182_v36 = vunpack.i.h.bf16 %v5180_v61  ;;  %v5181_v55 = vunpack.i.l.bf16 %v5180_v61  ;;  %v2370_v44 = vrot.slane %v2302_v13, 6  ;;  %v7361_v30 = vsel %vm344_vm0, %v2371_v54, 0.0 }
 0x284   : > { %2752 = vrot.lane.b32.xlu1 %v2681_v4, %s5428_s10  ;;  %v2684_v61 = vrot.slane %v7331_v19, 2  ;;  %v2537_v5 = vrot.slane %v7361_v30, 1  ;;  %v3017_v29 = vrot.slane %v7361_v30, 4 }
 0x285   : > { %2914 = vrot.lane.b32.xlu0 %v2843_v11, %s5433_s11  ;;  %v1914_v48 = vsel %vm1883_vm11, %v1881_v39, %v5181_v55  ;;  %v1915_v60 = vsel %vm1883_vm11, %v1882_v53, %v5182_v36  ;;  %v7343_v14 = vsel %vm344_vm0, %v2370_v44, %v2371_v54  ;;  %v7346_v43 = vsel %vm344_vm0, 0.0, %v2370_v44 }
 0x286   : > { %v1947_v16 = vsel %vm1916_vm12, %v1914_v48, %v5176_v23  ;;  %v1948_v15 = vsel %vm1916_vm12, %v1915_v60, %v5177_v56  ;;  %v2849_v56 = vrot.slane %v7252_v25, 3  ;;  %v2521_v23 = vsel %vm509_vm1, %v2519_v63, %v2520_v52  ;;  %9418 = vst [vmem:[#allocation7_spill] sm:$0xff] %v7343_v14 }
 0x287   : > { %5023 = vmatprep.mubr.msk.f32.mxu0 %vm1969_vm13, %v1947_v16  ;;  %v3008_v52 = vsel %vm1007_vm4, %v3005_v17, %v3007_v58  ;;  %v2534_v12 = vrot.slane %v7346_v43, 1  ;;  %v2535_v37 = vrot.slane %v7343_v14, 1  ;;  %v2855_v0 = vrot.slane %v7343_v14, 3 }
 0x288   : > { %5024 = vmatmul.mubr.msk.f32.gmra.mxu0 %vm1969_vm13, %v1948_v15  ;;  %2760 = vrot.lane.b32.xlu1 %v2691_v35, %s5428_s10  ;;  %v2851_v24 = vsel %vm841_vm3, %v2849_v56, %v2850_v42  ;;  %v2686_v2 = vsel %vm675_vm2, %v2684_v61, %v2685_v21  ;;  %v2694_v46 = vrot.slane %v7346_v43, 2  ;;  %v2695_v36 = vrot.slane %v7343_v14, 2 }
 0x289   : > { %2922 = vrot.lane.b32.xlu0 %v2853_v9, %s5433_s11  ;;  %v2536_v27 = vsel %vm509_vm1, %v2534_v12, %v2535_v37  ;;  %v2538_v20 = vsel %vm509_vm1, %v2535_v37, %v2537_v5  ;;  %v2857_v55 = vrot.slane %v7361_v30, 3  ;;  %v2844_v42 = vrot.slane %v7331_v19, 3 }
 0x28a   : > { %v2696_v21 = vsel %vm675_vm2, %v2694_v46, %v2695_v36  ;;  %v2854_v16 = vrot.slane %v7346_v43, 3  ;;  %v3004_v63 = vrot.slane %v7331_v19, 4  ;;  %v3015_v44 = vrot.slane %v7343_v14, 4 }
 0x28b   : > { %v2858_v11 = vsel %vm841_vm3, %v2855_v0, %v2857_v55  ;;  %v2846_v49 = vsel %vm841_vm3, %v2844_v42, %v2845_v3 }
 0x28c   : > { %2912 = vrot.lane.b32.xlu1 %v2841_v18, %s5433_s11  ;;  %v2856_v9 = vsel %vm841_vm3, %v2854_v16, %v2855_v0  ;;  %v3006_v56 = vsel %vm1007_vm4, %v3004_v63, %v3005_v17 }
 0x28d   : > { %2592 = vrot.lane.b32.xlu0 %v2521_v23, %s5426_s8  ;;  %v3014_v23 = vrot.slane %v7346_v43, 4 }
 0x290   : > { %2920 = vrot.lane.b32.xlu1 %v2851_v24, %s5433_s11  ;;  %v3016_v24 = vsel %vm1007_vm4, %v3014_v23, %v3015_v44 }
 0x291   : > { %3078 = vrot.lane.b32.xlu0 %v3008_v52, %s5434_s12  ;;  %v2697_v52 = vrot.slane %v7361_v30, 2 }
 0x293   : > { %v2698_v31 = vsel %vm675_vm2, %v2695_v36, %v2697_v52 }
 0x294   : > { %3072 = vrot.lane.b32.xlu1 %v3001_v1, %s5434_s12 }
 0x295   : > { %2596 = vrot.lane.b32.xlu0 %v2526_v47, %s5426_s8  ;;  %v3018_v47 = vsel %vm1007_vm4, %v3015_v44, %v3017_v29 }
 0x298   : > { %3080 = vrot.lane.b32.xlu1 %v3011_v45, %s5434_s12 }
 0x299   : > { %2604 = vrot.lane.b32.xlu0 %v2536_v27, %s5426_s8 }
 0x29c   : > { %2606 = vrot.lane.b32.xlu1 %v2538_v20, %s5426_s8  ;;  %v4995_v4 = vpop.f32.mrf.mxu0 }
 0x29d   : > { %2756 = vrot.lane.b32.xlu0 %v2686_v2, %s5428_s10  ;;  %v2191_v40 = vadd.f32 %v4995_v4, %v7091_v57 }
 0x29e   : > { %v2185_v53 = vpop.f32.mrf.mxu0 }
 0x29f   : > { %v2305_v7 = vmax.f32 %v2191_v40, 0.0  ;;  %v2186_v39 = vadd.f32 %v7091_v57, %v2185_v53 }
 0x2a0   : > { %2926 = vrot.lane.b32.xlu1 %v2858_v11, %s5433_s11 }
 0x2a1   : > { %2764 = vrot.lane.b32.xlu0 %v2696_v21, %s5428_s10  ;;  %v2304_v10 = vmax.f32 %v2186_v39, 0.0  ;;  %v2374_v48 = vrot.slane %v2305_v7, 6 }
 0x2a3   : > { %v2373_v60 = vrot.slane %v2304_v10, 6  ;;  %v2475_v18 = vsel %vm344_vm0, %v2374_v48, 0.0 }
 0x2a4   : > { %v2542_v54 = vrot.slane %v2475_v18, 1  ;;  %v2862_v17 = vrot.slane %v2475_v18, 3  ;;  %v2702_v36 = vrot.slane %v2475_v18, 2  ;;  %v3022_v11 = vrot.slane %v2475_v18, 4 }
 0x2a5   : > { %2916 = vrot.lane.b32.xlu0 %v2846_v49, %s5433_s11  ;;  %v7394_v15 = vsel %vm344_vm0, %v2373_v60, %v2374_v48  ;;  %v7397_v26 = vsel %vm344_vm0, 0.0, %v2373_v60 }
 0x2a6   : > { %9419 = vst [vmem:[#allocation28_spill] sm:$0xff] %v7394_v15  ;;  %9420 = vst [vmem:[#allocation8_spill] sm:$0xff] %v7397_v26  ;;  %v2539_v35 = vrot.slane %v7397_v26, 1  ;;  %v2540_v34 = vrot.slane %v7394_v15, 1  ;;  %v2859_v13 = vrot.slane %v7397_v26, 3  ;;  %v2860_v22 = vrot.slane %v7394_v15, 3 }
 0x2a7   : > { %v2699_v12 = vrot.slane %v7397_v26, 2  ;;  %v2700_v37 = vrot.slane %v7394_v15, 2  ;;  %v3019_v27 = vrot.slane %v7397_v26, 4  ;;  %v3020_v61 = vrot.slane %v7394_v15, 4 }
 0x2a8   : > { %v2541_v3 = vsel %vm509_vm1, %v2539_v35, %v2540_v34  ;;  %v2861_v58 = vsel %vm841_vm3, %v2859_v13, %v2860_v22  ;;  %v2543_v38 = vsel %vm509_vm1, %v2540_v34, %v2542_v54  ;;  %v2863_v1 = vsel %vm841_vm3, %v2860_v22, %v2862_v17  ;;  %v7463_v18 = vpop.permute.xlu1 %5184 }
 0x2a9   : > { %2924 = vrot.lane.b32.xlu0 %v2856_v9, %s5433_s11  ;;  %2608 = vrot.lane.b32.xlu1 %v2541_v3, %s5426_s8  ;;  %v2701_v45 = vsel %vm675_vm2, %v2699_v12, %v2700_v37  ;;  %v3021_v46 = vsel %vm1007_vm4, %v3019_v27, %v3020_v61  ;;  %v2703_v53 = vsel %vm675_vm2, %v2700_v37, %v2702_v36 }
 0x2aa   : > { %v3023_v10 = vsel %vm1007_vm4, %v3020_v61, %v3022_v11  ;;  %9423 = vst [vmem:[#allocation30_spill] sm:$0xff] %v7463_v18 }
 0x2ad   : > { %3076 = vrot.lane.b32.xlu0 %v3006_v56, %s5434_s12  ;;  %2928 = vrot.lane.b32.xlu1 %v2861_v58, %s5433_s11 }
 0x2b1   : > { %3084 = vrot.lane.b32.xlu0 %v3016_v24, %s5434_s12  ;;  %2610 = vrot.lane.b32.xlu1 %v2543_v38, %s5426_s8 }
 0x2b5   : > { %2766 = vrot.lane.b32.xlu0 %v2698_v31, %s5428_s10  ;;  %2930 = vrot.lane.b32.xlu1 %v2863_v1, %s5433_s11 }
 0x2b9   : > { %3086 = vrot.lane.b32.xlu0 %v3018_v47, %s5434_s12 }
 0x2bc   : > { %v4998_v5 = vpop.f32.mrf.mxu0 }
 0x2bd   : > { %2768 = vrot.lane.b32.xlu0 %v2701_v45, %s5428_s10  ;;  %v2201_v30 = vadd.f32 %v4998_v5, %v7091_v57 }
 0x2be   : > { %v2195_v20 = vpop.f32.mrf.mxu0 }
 0x2bf   : > { %v2307_v0 = vmax.f32 %v2201_v30, 0.0  ;;  %v2196_v2 = vadd.f32 %v7091_v57, %v2195_v20 }
 0x2c1   : > { %3088 = vrot.lane.b32.xlu0 %v3021_v46, %s5434_s12  ;;  %v2306_v55 = vmax.f32 %v2196_v2, 0.0  ;;  %v2377_v4 = vrot.slane %v2307_v0, 6 }
 0x2c3   : > { %v2376_v40 = vrot.slane %v2306_v55, 6  ;;  %v2476_v34 = vsel %vm344_vm0, %v2377_v4, 0.0 }
 0x2c4   : > { %v2547_v23 = vrot.slane %v2476_v34, 1  ;;  %v2707_v52 = vrot.slane %v2476_v34, 2  ;;  %v2867_v1 = vrot.slane %v2476_v34, 3  ;;  %v3027_v45 = vrot.slane %v2476_v34, 4 }
 0x2c5   : > { %2770 = vrot.lane.b32.xlu0 %v2703_v53, %s5428_s10  ;;  %v7442_v7 = vsel %vm344_vm0, %v2376_v40, %v2377_v4  ;;  %v7445_v39 = vsel %vm344_vm0, 0.0, %v2376_v40 }
 0x2c6   : > { %9421 = vst [vmem:[#allocation29_spill] sm:$0xff] %v7442_v7  ;;  %9422 = vst [vmem:[#allocation9_spill] sm:$0xff] %v7445_v39  ;;  %v2544_v21 = vrot.slane %v7445_v39, 1  ;;  %v2545_v42 = vrot.slane %v7442_v7, 1  ;;  %v2704_v48 = vrot.slane %v7445_v39, 2  ;;  %v2705_v60 = vrot.slane %v7442_v7, 2 }
 0x2c7   : > { %v2864_v16 = vrot.slane %v7445_v39, 3  ;;  %v2865_v35 = vrot.slane %v7442_v7, 3  ;;  %v3024_v63 = vrot.slane %v7445_v39, 4  ;;  %v3025_v3 = vrot.slane %v7442_v7, 4  ;;  %v7806_v7 = vld [vmem:[%s9251_s3 + $0xc0] sm:$0xff] }
 0x2c8   : > { %v2546_v49 = vsel %vm509_vm1, %v2544_v21, %v2545_v42  ;;  %v2706_v9 = vsel %vm675_vm2, %v2704_v48, %v2705_v60  ;;  %v2548_v38 = vsel %vm509_vm1, %v2545_v42, %v2547_v23  ;;  %v2708_v12 = vsel %vm675_vm2, %v2705_v60, %v2707_v52 }
 0x2c9   : > { %3090 = vrot.lane.b32.xlu0 %v3023_v10, %s5434_s12  ;;  %2612 = vrot.lane.b32.xlu1 %v2546_v49, %s5426_s8  ;;  %v2866_v22 = vsel %vm841_vm3, %v2864_v16, %v2865_v35  ;;  %v3026_v24 = vsel %vm1007_vm4, %v3024_v63, %v3025_v3  ;;  %v2868_v37 = vsel %vm841_vm3, %v2865_v35, %v2867_v1 }
 0x2ca   : > { %v3028_v0 = vsel %vm1007_vm4, %v3025_v3, %v3027_v45 }
 0x2cc   : > { %v5001_v13 = vpop.f32.mrf.mxu0 }
 0x2cd   : > { %2772 = vrot.lane.b32.xlu0 %v2706_v9, %s5428_s10  ;;  %v2211_v56 = vadd.f32 %v5001_v13, %v7091_v57  ;;  %2932 = vrot.lane.b32.xlu1 %v2866_v22, %s5433_s11 }
 0x2ce   : > { %v2205_v44 = vpop.f32.mrf.mxu0 }
 0x2cf   : > { %v2309_v58 = vmax.f32 %v2211_v56, 0.0  ;;  %v2206_v54 = vadd.f32 %v7091_v57, %v2205_v44 }
 0x2d1   : > { %3092 = vrot.lane.b32.xlu0 %v3026_v24, %s5434_s12  ;;  %v2308_v17 = vmax.f32 %v2206_v54, 0.0  ;;  %2614 = vrot.lane.b32.xlu1 %v2548_v38, %s5426_s8  ;;  %v2380_v29 = vrot.slane %v2309_v58, 6  ;;  %v7518_v38 = vpop.permute.xlu0 %2594 }
 0x2d2   : > { %v7472_v31 = vpop.permute.xlu1 %2598 }
 0x2d3   : > { %v2379_v47 = vrot.slane %v2308_v17, 6  ;;  %v2477_v53 = vsel %vm344_vm0, %v2380_v29, 0.0 }
 0x2d4   : > { %v2552_v16 = vrot.slane %v2477_v53, 1  ;;  %v2712_v13 = vrot.slane %v2477_v53, 2  ;;  %v2872_v23 = vrot.slane %v2477_v53, 3  ;;  %v3032_v52 = vrot.slane %v2477_v53, 4 }
 0x2d5   : > { %2774 = vrot.lane.b32.xlu0 %v2708_v12, %s5428_s10  ;;  %v7478_v27 = vsel %vm344_vm0, %v2379_v47, %v2380_v29  ;;  %v7481_v61 = vsel %vm344_vm0, 0.0, %v2379_v47  ;;  %2934 = vrot.lane.b32.xlu1 %v2868_v37, %s5433_s11 }
 0x2d6   : > { %9424 = vst [vmem:[#allocation11_spill] sm:$0xff] %v7478_v27  ;;  %9425 = vst [vmem:[#allocation31_spill] sm:$0xff] %v7481_v61  ;;  %v7484_v5 = vpop.permute.xlu1 %5189  ;;  %v2549_v30 = vrot.slane %v7481_v61, 1  ;;  %v2550_v20 = vrot.slane %v7478_v27, 1  ;;  %v2709_v2 = vrot.slane %v7481_v61, 2  ;;  %v2710_v46 = vrot.slane %v7478_v27, 2 }
 0x2d7   : > { %9426 = vst [vmem:[#allocation10_spill] sm:$0xff] %v7484_v5  ;;  %v2869_v55 = vrot.slane %v7481_v61, 3  ;;  %v2870_v4 = vrot.slane %v7478_v27, 3  ;;  %v3029_v21 = vrot.slane %v7481_v61, 4  ;;  %v3030_v42 = vrot.slane %v7478_v27, 4 }
 0x2d8   : > { %v2551_v36 = vsel %vm509_vm1, %v2549_v30, %v2550_v20  ;;  %v2711_v11 = vsel %vm675_vm2, %v2709_v2, %v2710_v46  ;;  %v2553_v3 = vsel %vm509_vm1, %v2550_v20, %v2552_v16  ;;  %v2713_v54 = vsel %vm675_vm2, %v2710_v46, %v2712_v13  ;;  %v3940_v13 = vld [vmem:[%s9251_s3 + $0x78] sm:$0xff] }
 0x2d9   : > { %3094 = vrot.lane.b32.xlu0 %v3028_v0, %s5434_s12  ;;  %2616 = vrot.lane.b32.xlu1 %v2551_v36, %s5426_s8  ;;  %v2871_v48 = vsel %vm841_vm3, %v2869_v55, %v2870_v4  ;;  %v3031_v63 = vsel %vm1007_vm4, %v3029_v21, %v3030_v42  ;;  %v2873_v24 = vsel %vm841_vm3, %v2870_v4, %v2872_v23 }
 0x2da   : > { %v7496_v40 = vpop.permute.xlu1 %2758  ;;  %v3033_v37 = vsel %vm1007_vm4, %v3030_v42, %v3032_v52  ;;  %5103 = vmatpush1.msra.mxu1 %v3940_v13  ;;  %4055 = vmatpush1.msra.mxu0 %v3940_v13 }
 0x2dc   : > { %v5004_v10 = vpop.f32.mrf.mxu0 }
 0x2dd   : > { %2776 = vrot.lane.b32.xlu0 %v2711_v11, %s5428_s10  ;;  %v2221_v60 = vadd.f32 %v5004_v10, %v7091_v57  ;;  %2936 = vrot.lane.b32.xlu1 %v2871_v48, %s5433_s11 }
 0x2de   : > { %v7506_v49 = vpop.permute.xlu1 %5194  ;;  %v2215_v35 = vpop.f32.mrf.mxu0 }
 0x2df   : > { %v2311_v34 = vmax.f32 %v2221_v60, 0.0  ;;  %v2216_v9 = vadd.f32 %v7091_v57, %v2215_v35 }
 0x2e1   : > { %3096 = vrot.lane.b32.xlu0 %v3031_v63, %s5434_s12  ;;  %v2310_v22 = vmax.f32 %v2216_v9, 0.0  ;;  %2618 = vrot.lane.b32.xlu1 %v2553_v3, %s5426_s8  ;;  %v2383_v44 = vrot.slane %v2311_v34, 6 }
 0x2e2   : > { %v7513_v56 = vpop.permute.xlu1 %2918 }
 0x2e3   : > { %v2382_v58 = vrot.slane %v2310_v22, 6  ;;  %v2478_v55 = vsel %vm344_vm0, %v2383_v44, 0.0 }
 0x2e4   : > { %v2557_v16 = vrot.slane %v2478_v55, 1  ;;  %v2717_v22 = vrot.slane %v2478_v55, 2 }
 0x2e5   : > { %2778 = vrot.lane.b32.xlu0 %v2713_v54, %s5428_s10  ;;  %v7521_v17 = vsel %vm344_vm0, %v2382_v58, %v2383_v44  ;;  %v7524_v1 = vsel %vm344_vm0, 0.0, %v2382_v58  ;;  %2938 = vrot.lane.b32.xlu1 %v2873_v24, %s5433_s11  ;;  %v9429_v54 = vmov 0.0  }
 0x2e6   : > { %9427 = vst [vmem:[#allocation33_spill] sm:$0xff] %v7521_v17  ;;  %9428 = vst [vmem:[#allocation13_spill] sm:$0xff] %v7524_v1  ;;  %v7527_v29 = vpop.permute.xlu1 %5199  ;;  %v2554_v47 = vrot.slane %v7524_v1, 1  ;;  %v2555_v12 = vrot.slane %v7521_v17, 1  ;;  %v2714_v45 = vrot.slane %v7524_v1, 2  ;;  %v2715_v30 = vrot.slane %v7521_v17, 2  ;;  %5079 = vmatprep.subr.mxu1 %v9429_v54  ;;  %4056 = vmatprep.subr.mxu0 %v9429_v54 }
 0x2e7   : > { %v2874_v0 = vrot.slane %v7524_v1, 3  ;;  %v2875_v2 = vrot.slane %v7521_v17, 3  ;;  %v3034_v53 = vrot.slane %v7524_v1, 4  ;;  %v3035_v11 = vrot.slane %v7521_v17, 4  ;;  %v7761_v1 = vld [vmem:[%s9251_s3 + $0x10] sm:$0xff] }
 0x2e8   : > { %v2556_v20 = vsel %vm509_vm1, %v2554_v47, %v2555_v12  ;;  %v2716_v4 = vsel %vm675_vm2, %v2714_v45, %v2715_v30  ;;  %v2558_v3 = vsel %vm509_vm1, %v2555_v12, %v2557_v16  ;;  %v2718_v47 = vsel %vm675_vm2, %v2715_v30, %v2717_v22 }
 0x2e9   : > { %3098 = vrot.lane.b32.xlu0 %v3033_v37, %s5434_s12  ;;  %2620 = vrot.lane.b32.xlu1 %v2556_v20, %s5426_s8  ;;  %v2876_v42 = vsel %vm841_vm3, %v2874_v0, %v2875_v2  ;;  %v3036_v63 = vsel %vm1007_vm4, %v3034_v53, %v3035_v11  ;;  %v7572_v12 = vsel %vm344_vm0, 0.0, %v7110_v51  ;;  %v3037_v45 = vrot.slane %v2478_v55, 4  ;;  %v3939_v51 = vld [vmem:[%s9251_s3 + $0x70] sm:$0xff] }
 0x2ea   : > { %v7539_v46 = vpop.permute.xlu1 %3074  ;;  %9430 = vst [vmem:[#allocation32_spill] sm:$0xff] %v7572_v12  ;;  %5104 = vmatpush1.msra.mxu1 %v3939_v51  ;;  %4057 = vmatpush1.msra.mxu0 %v3939_v51  ;;  %v2514_v53 = vrot.slane %v7572_v12, 1 }
 0x2eb   : > { %v7541_v36 = vpop.permute.xlu0 %2602  ;;  %5080 = vmatprep.subr.mxu1 %v9429_v54  ;;  %4058 = vmatprep.subr.mxu0 %v9429_v54 }
 0x2ec   : > { %v5007_v21 = vpop.f32.mrf.mxu0  ;;  %v2516_v22 = vsel %vm509_vm1, %v2514_v53, %v2515_v62  ;;  %v3935_v62 = vld [vmem:[%s9251_s3 + $0x50] sm:$0xff]  ;;  %v9433_v53 = vld [vmem:[#allocation5_spill] sm:$0xff] }
 0x2ed   : > { %2780 = vrot.lane.b32.xlu0 %v2716_v4, %s5428_s10  ;;  %v2231_v10 = vadd.f32 %v5007_v21, %v7091_v57  ;;  %2940 = vrot.lane.b32.xlu1 %v2876_v42, %s5433_s11  ;;  %v3938_v4 = vld [vmem:[%s9251_s3 + $0x68] sm:$0xff]  ;;  %v3038_v42 = vsel %vm1007_vm4, %v3035_v11, %v3037_v45  ;;  %v3937_v11 = vld [vmem:[%s9251_s3 + $0x60] sm:$0xff] }
 0x2ee   : > { %v7551_v48 = vpop.permute.xlu1 %3082  ;;  %v2225_v35 = vpop.f32.mrf.mxu0  ;;  %5105 = vmatpush1.msra.mxu1 %v3938_v4  ;;  %4059 = vmatpush1.msra.mxu0 %v3938_v4 }
 0x2ef   : > { %v7553_v60 = vpop.permute.xlu0 %2754  ;;  %v2313_v34 = vmax.f32 %v2231_v10, 0.0  ;;  %v2226_v9 = vadd.f32 %v7091_v57, %v2225_v35  ;;  %v2877_v57 = vrot.slane %v2478_v55, 3  ;;  %5081 = vmatprep.subr.mxu1 %v9429_v54  ;;  %4060 = vmatprep.subr.mxu0 %v9429_v54 }
 0x2f0   : > { %5106 = vmatpush1.msra.mxu1 %v3937_v11  ;;  %4061 = vmatpush1.msra.mxu0 %v3937_v11 }
 0x2f1   : > { %3100 = vrot.lane.b32.xlu0 %v3036_v63, %s5434_s12  ;;  %v2312_v23 = vmax.f32 %v2226_v9, 0.0  ;;  %2622 = vrot.lane.b32.xlu1 %v2558_v3, %s5426_s8  ;;  %v2386_v24 = vrot.slane %v2313_v34, 6  ;;  %v2878_v37 = vsel %vm841_vm3, %v2875_v2, %v2877_v57  ;;  %v3936_v3 = vld [vmem:[%s9251_s3 + $0x58] sm:$0xff] }
 0x2f2   : > { %v7563_v44 = vpop.permute.xlu1 %2600  ;;  %5082 = vmatprep.subr.mxu1 %v9429_v54  ;;  %4062 = vmatprep.subr.mxu0 %v9429_v54 }
 0x2f3   : > { %v7565_v58 = vpop.permute.xlu0 %2762  ;;  %v2385_v52 = vrot.slane %v2312_v23, 6  ;;  %v2674_v23 = vrot.slane %v7572_v12, 2  ;;  %5107 = vmatpush1.msra.mxu1 %v3936_v3  ;;  %v7639_v51 = vsel %vm344_vm0, %v2386_v24, 0.0  ;;  %4063 = vmatpush1.msra.mxu0 %v3936_v3 }
 0x2f4   : > { %5083 = vmatprep.subr.mxu1 %v9429_v54  ;;  %4064 = vmatprep.subr.mxu0 %v9429_v54 }
 0x2f5   : > { %2782 = vrot.lane.b32.xlu0 %v2718_v47, %s5428_s10  ;;  %v7577_v20 = vsel %vm344_vm0, %v2385_v52, %v2386_v24  ;;  %v7580_v0 = vsel %vm344_vm0, 0.0, %v2385_v52  ;;  %2942 = vrot.lane.b32.xlu1 %v2878_v37, %s5433_s11 }
 0x2f6   : > { %9431 = vst [vmem:[#allocation12_spill] sm:$0xff] %v7577_v20  ;;  %9432 = vst [vmem:[#allocation35_spill] sm:$0xff] %v7580_v0  ;;  %v2559_v2 = vrot.slane %v7580_v0, 1  ;;  %v2560_v55 = vrot.slane %v7577_v20, 1  ;;  %v7594_v21 = vpop.permute.xlu1 %2752  ;;  %v2719_v10 = vrot.slane %v7580_v0, 2  ;;  %v2720_v16 = vrot.slane %v7577_v20, 2  ;;  %5108 = vmatpush1.msra.mxu1 %v3935_v62  ;;  %4065 = vmatpush1.msra.mxu0 %v3935_v62 }
 0x2f7   : > { %v7583_v30 = vpop.permute.xlu0 %2914  ;;  %v2879_v34 = vrot.slane %v7580_v0, 3  ;;  %v2880_v9 = vrot.slane %v7577_v20, 3  ;;  %v3039_v47 = vrot.slane %v7580_v0, 4  ;;  %v9292_v37 = vrot.slane %v7577_v20, 4  ;;  %5084 = vmatprep.subr.mxu1 %v9429_v54  ;;  %4066 = vmatprep.subr.mxu0 %v9429_v54  ;;  %v7727_v62 = vld [vmem:[%s9251_s3 + $0x20] sm:$0xff] }
 0x2f8   : > { %v2561_v35 = vsel %vm509_vm1, %v2559_v2, %v2560_v55  ;;  %v2721_v13 = vsel %vm675_vm2, %v2719_v10, %v2720_v16  ;;  %v7648_v10 = vld [vmem:[%s9251_s3 + $0x48] sm:$0xff] }
 0x2f9   : > { %3102 = vrot.lane.b32.xlu0 %v3038_v42, %s5434_s12  ;;  %2624 = vrot.lane.b32.xlu1 %v2561_v35, %s5426_s8  ;;  %v2881_v52 = vsel %vm841_vm3, %v2879_v34, %v2880_v9  ;;  %v5203_v42 = vpack.i.bf16 %v9433_v53, %v2516_v22  ;;  %v7653_v35 = vld [vmem:[%s9250_s2] ss:$0 sm:$0xff]  ;;  %v3041_v11 = vsel %vm1007_vm4, %v3039_v47, %v9292_v37  ;;  %v2994_v37 = vrot.slane %v7572_v12, 4 }
 0x2fa   : > { %v7635_v45 = vpop.permute.xlu1 %2760  ;;  %v2676_v22 = vsel %vm675_vm2, %v2674_v23, %v2675_v41  ;;  %5109 = vmatpush1.msra.mxu1 %v7648_v10  ;;  %v7681_v41 = vld [vmem:[%s9251_s3 + $0x38] sm:$0xff]  ;;  %4067 = vmatpush1.msra.mxu0 %v7648_v10 }
 0x2fb   : > { %v7611_v63 = vpop.permute.xlu0 %2922  ;;  %5085 = vmatprep.subr.mxu1 %v9429_v54  ;;  %4068 = vmatprep.subr.mxu0 %v9429_v54 }
 0x2fc   : > { %v5010_v57 = vpop.f32.mrf.mxu0 }
 0x2fd   : > { %2784 = vrot.lane.b32.xlu0 %v2721_v13, %s5428_s10  ;;  %2944 = vrot.lane.b32.xlu1 %v2881_v52, %s5433_s11  ;;  %v2241_v24 = vadd.f32 %v7653_v35, %v5010_v57  ;;  %v2834_v13 = vrot.slane %v7572_v12, 3  ;;  %v7670_v57 = vld [vmem:[%s9251_s3 + $0x40] sm:$0xff]  ;;  %v2562_v52 = vrot.slane %v7639_v51, 1 }
 0x2fe   : > { %v2235_v4 = vpop.f32.mrf.mxu0  ;;  %v7683_v47 = vpop.permute.xlu1 %2912  ;;  %5110 = vmatpush1.msra.mxu1 %v7670_v57  ;;  %4069 = vmatpush1.msra.mxu0 %v7670_v57  ;;  %v7820_v57 = vld [vmem:[%s9251_s3 + $0xb8] sm:$0xff] }
 0x2ff   : > { %v7641_v2 = vpop.permute.xlu0 %2592  ;;  %v2236_v34 = vadd.f32 %v7653_v35, %v2235_v4  ;;  %v2315_v23 = vmax.f32 %v2241_v24, 0.0  ;;  %v2836_v3 = vsel %vm841_vm3, %v2834_v13, %v2835_v32  ;;  %5086 = vmatprep.subr.mxu1 %v9429_v54  ;;  %v2722_v24 = vrot.slane %v7639_v51, 2  ;;  %v7711_v32 = vld [vmem:[%s9251_s3 + $0x28] sm:$0xff]  ;;  %4070 = vmatprep.subr.mxu0 %v9429_v54 }
 0x300   : > { %5111 = vmatpush1.msra.mxu1 %v7681_v41  ;;  %4071 = vmatpush1.msra.mxu0 %v7681_v41  ;;  %v3158_v26 = vsel %vm1204_vm6, %v7264_v50, %v7641_v2  ;;  %v5186_v41 = vunpack.i.l.bf16 %v7463_v18  ;;  %v5196_v18 = vunpack.i.l.bf16 %v7506_v49 }
 0x301   : > { %5204 = vrot.lane.b32.xlu0 %v5203_v42, %s5426_s8  ;;  %v2314_v4 = vmax.f32 %v2236_v34, 0.0  ;;  %3104 = vrot.lane.b32.xlu1 %v3041_v11, %s5434_s12  ;;  %v2563_v42 = vsel %vm509_vm1, %v2560_v55, %v2562_v52  ;;  %v9434_v34 = vld [vmem:[#allocation22_spill] sm:$0xff]  ;;  %v7700_v55 = vld [vmem:[%s9251_s3 + $0x30] sm:$0xff]  ;;  %v2389_v13 = vrot.slane %v2315_v23, 6 }
 0x302   : > { %v5208_v11 = vpack.i.bf16 %v9434_v34, %v2676_v22  ;;  %5087 = vmatprep.subr.mxu1 %v9429_v54  ;;  %4072 = vmatprep.subr.mxu0 %v9429_v54 }
 0x303   : > { %v7675_v53 = vpop.permute.xlu0 %3078  ;;  %v2388_v22 = vrot.slane %v2314_v4, 6  ;;  %v9435_v4 = vld [vmem:[#allocation24_spill] sm:$0xff]  ;;  %5112 = vmatpush1.msra.mxu1 %v7700_v55  ;;  %4073 = vmatpush1.msra.mxu0 %v7700_v55 }
 0x304   : > { %v5213_v34 = vpack.i.bf16 %v9435_v4, %v2836_v3  ;;  %5088 = vmatprep.subr.mxu1 %v9429_v54  ;;  %4074 = vmatprep.subr.mxu0 %v9429_v54 }
 0x305   : > { %2626 = vrot.lane.b32.xlu0 %v2563_v42, %s5426_s8  ;;  %5209 = vrot.lane.b32.xlu1 %v5208_v11, %s5428_s10  ;;  %v2723_v42 = vsel %vm675_vm2, %v2720_v16, %v2722_v24  ;;  %v2996_v11 = vsel %vm1007_vm4, %v2994_v37, %v2995_v8  ;;  %v2882_v16 = vrot.slane %v7639_v51, 3  ;;  %v7731_v23 = vsel %vm344_vm0, %v2388_v22, %v2389_v13  ;;  %v7736_v24 = vpop.permute.xlu1 %2920  ;;  %v7746_v37 = vld [vmem:[%s9251_s3 + $0x18] sm:$0xff] }
 0x306   : > { %v7734_v3 = vsel %vm344_vm0, 0.0, %v2388_v22  ;;  %5113 = vmatpush1.msra.mxu1 %v7711_v32  ;;  %v2565_v12 = vrot.slane %v7731_v23, 1  ;;  %4075 = vmatpush1.msra.mxu0 %v7711_v32  ;;  %v3159_v32 = vsel %vm1204_vm6, %v7148_v28, %v7518_v38 }
 0x307   : > { %v7705_v52 = vpop.permute.xlu0 %2596  ;;  %9436 = vst [vmem:[#allocation14_spill] sm:$0xff] %v7734_v3  ;;  %5089 = vmatprep.subr.mxu1 %v9429_v54  ;;  %v2883_v22 = vsel %vm841_vm3, %v2880_v9, %v2882_v16  ;;  %v2564_v17 = vrot.slane %v7734_v3, 1  ;;  %v2724_v61 = vrot.slane %v7734_v3, 2  ;;  %v2884_v10 = vrot.slane %v7734_v3, 3  ;;  %4076 = vmatprep.subr.mxu0 %v9429_v54 }
 0x308   : > { %5114 = vmatpush1.msra.mxu1 %v7727_v62  ;;  %4077 = vmatpush1.msra.mxu0 %v7727_v62 }
 0x309   : > { %2786 = vrot.lane.b32.xlu0 %v2723_v42, %s5428_s10  ;;  %5214 = vrot.lane.b32.xlu1 %v5213_v34, %s5433_s11  ;;  %v9437_v42 = vld [vmem:[#allocation26_spill] sm:$0xff]  ;;  %v3042_v34 = vrot.slane %v7639_v51, 4 }
 0x30a   : > { %v5218_v4 = vpack.i.bf16 %v9437_v42, %v2996_v11  ;;  %5090 = vmatprep.subr.mxu1 %v9429_v54  ;;  %v9438_v11 = vrot.slane %v7577_v20, 4  ;;  %v7777_v42 = vpop.permute.xlu1 %3072  ;;  %v2725_v20 = vrot.slane %v7731_v23, 2  ;;  %4078 = vmatprep.subr.mxu0 %v9429_v54 }
 0x30b   : > { %v7740_v8 = vpop.permute.xlu0 %2604  ;;  %5115 = vmatpush1.msra.mxu1 %v7746_v37  ;;  %4079 = vmatpush1.msra.mxu0 %v7746_v37 }
 0x30c   : > { %v5013_v0 = vpop.f32.mrf.mxu0  ;;  %v3043_v16 = vsel %vm1007_vm4, %v9438_v11, %v3042_v34  ;;  %5091 = vmatprep.subr.mxu1 %v9429_v54  ;;  %v2566_v34 = vsel %vm509_vm1, %v2564_v17, %v2565_v12  ;;  %v2885_v11 = vrot.slane %v7731_v23, 3  ;;  %4080 = vmatprep.subr.mxu0 %v9429_v54 }
 0x30d   : > { %2946 = vrot.lane.b32.xlu0 %v2883_v22, %s5433_s11  ;;  %5219 = vrot.lane.b32.xlu1 %v5218_v4, %s5434_s12  ;;  %v7774_v22 = vld [vmem:[%s9251_s3 + $0x8] sm:$0xff]  ;;  %v2251_v4 = vadd.f32 %v7653_v35, %v5013_v0  ;;  %v7793_v0 = vld [vmem:[%s9251_s3] sm:$0xff] }
 0x30e   : > { %v2245_v9 = vpop.f32.mrf.mxu0  ;;  %5116 = vmatpush1.msra.mxu1 %v7761_v1  ;;  %4081 = vmatpush1.msra.mxu0 %v7761_v1 }
 0x30f   : > { %v7765_v51 = vpop.permute.xlu0 %2756  ;;  %v2246_v27 = vadd.f32 %v7653_v35, %v2245_v9  ;;  %5092 = vmatprep.subr.mxu1 %v9429_v54  ;;  %v2317_v39 = vmax.f32 %v2251_v4, 0.0  ;;  %4082 = vmatprep.subr.mxu0 %v9429_v54 }
 0x310   : > { %5117 = vmatpush1.msra.mxu1 %v7774_v22  ;;  %4083 = vmatpush1.msra.mxu0 %v7774_v22 }
 0x311   : > { %3106 = vrot.lane.b32.xlu0 %v3043_v16, %s5434_s12  ;;  %v2316_v9 = vmax.f32 %v2246_v27, 0.0  ;;  %2628 = vrot.lane.b32.xlu1 %v2566_v34, %s5426_s8  ;;  %v7798_v16 = vsel %vm344_vm0, %v2389_v13, 0.0  ;;  %v2726_v27 = vsel %vm675_vm2, %v2724_v61, %v2725_v20  ;;  %v3044_v34 = vrot.slane %v7734_v3, 4  ;;  %v7822_v61 = vpop.permute.xlu1 %3080 }
 0x312   : > { %5093 = vmatprep.subr.mxu1 %v9429_v54  ;;  %v2886_v13 = vsel %vm841_vm3, %v2884_v10, %v2885_v11  ;;  %9439 = vst [vmem:[#allocation34_spill] sm:$0xff] %v7822_v61  ;;  %v2567_v15 = vrot.slane %v7798_v16, 1  ;;  %v7833_v10 = vld [vmem:[%s9251_s3 + $0xb0] sm:$0xff]  ;;  %4084 = vmatprep.subr.mxu0 %v9429_v54 }
 0x313   : > { %v7800_v17 = vpop.permute.xlu0 %2764  ;;  %5118 = vmatpush1.msra.mxu1 %v7793_v0  ;;  %v2391_v4 = vrot.slane %v2316_v9, 6  ;;  %v9440_v9 = vrot.slane %v7731_v23, 4  ;;  %4085 = vmatpush1.msra.mxu0 %v7793_v0 }
 0x314   : > { %5094 = vmatprep.subr.mxu1 %v9429_v54  ;;  %v2568_v14 = vsel %vm509_vm1, %v2565_v12, %v2567_v15  ;;  %v5191_v15 = vunpack.i.l.bf16 %v7484_v5  ;;  %v2887_v12 = vrot.slane %v7798_v16, 3  ;;  %4100 = vmatprep.subr.mxu0 %v9429_v54 }
 0x315   : > { %2788 = vrot.lane.b32.xlu0 %v2726_v27, %s5428_s10  ;;  %2948 = vrot.lane.b32.xlu1 %v2886_v13, %s5433_s11  ;;  %v7836_v27 = vrot.slane %v2317_v39, 6  ;;  %v3046_v13 = vsel %vm1007_vm4, %v3044_v34, %v9440_v9  ;;  %v7852_v39 = vld [vmem:[%s9251_s3 + $0xa8] sm:$0xff]  ;;  %v2727_v34 = vrot.slane %v7798_v16, 2  ;;  %v7861_v50 = vsel %vm344_vm0, 0.0, %v2391_v4 }
 0x316   : > { %5119 = vmatpush2.msra.mxu1 %v7806_v7  ;;  %9442 = vst [vmem:[#allocation37_spill] sm:$0xff] %v7861_v50  ;;  %v2569_v61 = vrot.slane %v7861_v50, 1  ;;  %4101 = vmatpush2.msra.mxu0 %v7806_v7 }
 0x317   : > { %v7827_v3 = vpop.permute.xlu0 %2916  ;;  %5095 = vmatprep.subr.mxu1 %v9429_v54  ;;  %v7858_v9 = vsel %vm344_vm0, %v2391_v4, %v7836_v27  ;;  %v7878_v4 = vpop.permute.xlu1 %2606  ;;  %v2728_v5 = vsel %vm675_vm2, %v2725_v20, %v2727_v34  ;;  %v3157_v20 = vsel %vm1204_vm6, %v7114_v33, %v5186_v41  ;;  %v7907_v33 = vld [vmem:[%s9251_s3 + $0x90] sm:$0xff]  ;;  %v9444_v41 = vrot.slane %v7731_v23, 4  ;;  %4102 = vmatprep.subr.mxu0 %v9429_v54 }
 0x318   : > { %5120 = vmatpush2.msra.mxu1 %v7820_v57  ;;  %9441 = vst [vmem:[#allocation15_spill] sm:$0xff] %v7858_v9  ;;  %v2570_v55 = vrot.slane %v7858_v9, 1  ;;  %4103 = vmatpush2.msra.mxu0 %v7820_v57 }
 0x319   : > { %3108 = vrot.lane.b32.xlu0 %v3046_v13, %s5434_s12  ;;  %5096 = vmatprep.subr.mxu1 %v9429_v54  ;;  %v7873_v13 = vld [vmem:[%s9251_s3 + $0xa0] sm:$0xff] }
 0x31a   : > { %2630 = vrot.lane.b32.xlu1 %v2568_v14, %s5426_s8  ;;  %5121 = vmatpush2.msra.mxu1 %v7833_v10  ;;  %v3188_v14 = vsel %vm1266_vm8, %v3158_v26, %v7594_v21  ;;  %v7892_v26 = vld [vmem:[%s9251_s3 + $0x98] sm:$0xff]  ;;  %v5201_v21 = vunpack.i.l.bf16 %v7527_v29 }
 0x31b   : > { %v7867_v2 = vpop.permute.xlu0 %2924  ;;  %5097 = vmatprep.subr.mxu1 %v9429_v54  ;;  %v3219_v34 = vsel %vm3214_vm14, %v3188_v14, %v7683_v47  ;;  %v2729_v47 = vrot.slane %v7861_v50, 2  ;;  %v7943_v38 = vpop.permute.xlu1 %2926  ;;  %4104 = vmatprep.subr.mxu0 %v9429_v54 }
 0x31c   : > { %9443 = vst [vmem:[#allocation16_spill] sm:$0xff] %v7867_v2  ;;  %5122 = vmatpush2.msra.mxu1 %v7852_v39  ;;  %v2888_v2 = vsel %vm841_vm3, %v2885_v11, %v2887_v12  ;;  %v3187_v11 = vsel %vm1266_vm8, %v3157_v20, %v5191_v15  ;;  %v7933_v20 = vld [vmem:[%s9251_s3 + $0x88] sm:$0xff]  ;;  %4105 = vmatpush2.msra.mxu0 %v7833_v10 }
 0x31d   : > { %2790 = vrot.lane.b32.xlu0 %v2728_v5, %s5428_s10  ;;  %5098 = vmatprep.subr.mxu1 %v9429_v54  ;;  %v3047_v5 = vrot.slane %v7798_v16, 4  ;;  %v7912_v16 = vsel %vm3245_vm15, %v3219_v34, %v7777_v42  ;;  %v3218_v14 = vsel %vm3214_vm14, %v3187_v11, %v5196_v18  ;;  %v2571_v42 = vsel %vm509_vm1, %v2569_v61, %v2570_v55 }
 0x31e   : > { %2950 = vrot.lane.b32.xlu1 %v2888_v2, %s5433_s11  ;;  %5123 = vmatpush2.msra.mxu1 %v7873_v13  ;;  %v2730_v2 = vrot.slane %v7858_v9, 2  ;;  %v7938_v28 = vsel %vm3245_vm15, %v3218_v14, %v5201_v21  ;;  %v3160_v18 = vsel %vm1204_vm6, %v7331_v19, %v7705_v52  ;;  %v5016_v21 = vpop.f32.mrf.mxu0  ;;  %v7959_v19 = vld [vmem:[%s9251_s3 + $0x80] sm:$0xff]  ;;  %v3163_v14 = vsel %vm1204_vm6, %v7244_v6, %v7541_v36 }
 0x31f   : > { %v3077_v12 = vpop.permute.xlu0 %3076  ;;  %5099 = vmatprep.subr.mxu1 %v9429_v54  ;;  %v3048_v15 = vsel %vm1007_vm4, %v9444_v41, %v3047_v5  ;;  %v3189_v5 = vsel %vm1266_vm8, %v3159_v32, %v7553_v60  ;;  %v5223_v11 = vpack.i.bf16 %v7912_v16, %v7938_v28  ;;  %v3190_v60 = vsel %vm1266_vm8, %v3160_v18, %v7765_v51  ;;  %v7976_v62 = vpop.permute.xlu1 %2608 }
 0x320   : > { %5124 = vmatpush2.msra.mxu1 %v7892_v26  ;;  %v3220_v61 = vsel %vm3214_vm14, %v3189_v5, %v7583_v30  ;;  %v3221_v30 = vsel %vm3214_vm14, %v3190_v60, %v7827_v3  ;;  %v2731_v52 = vsel %vm675_vm2, %v2729_v47, %v2730_v2  ;;  %v2889_v51 = vrot.slane %v7861_v50, 3  ;;  %v2255_v47 = vpop.f32.mrf.mxu0  ;;  %4106 = vmatprep.subr.mxu0 %v9429_v54 }
 0x321   : > { %3110 = vrot.lane.b32.xlu0 %v3048_v15, %s5434_s12  ;;  %5100 = vmatprep.subr.mxu1 %v9429_v54  ;;  %v2890_v41 = vrot.slane %v7858_v9, 3  ;;  %v7972_v15 = vsel %vm3245_vm15, %v3221_v30, %v3077_v12  ;;  %v7982_v3 = vsel %vm3245_vm15, %v3220_v61, %v7539_v46  ;;  %v3161_v12 = vsel %vm1204_vm6, %v7183_v59, %v7472_v31 }
 0x322   : > { %2632 = vrot.lane.b32.xlu1 %v2571_v42, %s5426_s8  ;;  %5125 = vmatpush2.msra.mxu1 %v7907_v33  ;;  %v7998_v46 = vpack.i.bf16 %v7972_v15, %v7982_v3  ;;  %v3191_v37 = vsel %vm1266_vm8, %v3161_v12, %v7496_v40  ;;  %v3193_v59 = vsel %vm1266_vm8, %v3163_v14, %v7565_v58  ;;  %v3049_v5 = vrot.slane %v7861_v50, 4 }
 0x323   : > { %v7953_v34 = vpop.permute.xlu0 %3084  ;;  %5101 = vmatprep.subr.mxu1 %v9429_v54  ;;  %v2891_v42 = vsel %vm841_vm3, %v2889_v51, %v2890_v41  ;;  %v3222_v6 = vsel %vm3214_vm14, %v3191_v37, %v7513_v56  ;;  %v3224_v31 = vsel %vm3214_vm14, %v3193_v59, %v7611_v63  ;;  %v2256_v36 = vadd.f32 %v7653_v35, %v2255_v47  ;;  %v8027_v63 = vpop.permute.xlu1 %2928 }
 0x324   : > { %5126 = vmatpush2.msra.mxu1 %v7933_v20  ;;  %v8017_v40 = vsel %vm3245_vm15, %v3222_v6, %v7675_v53  ;;  %v8024_v56 = vsel %vm344_vm0, %v7836_v27, 0.0  ;;  %v2261_v1 = vadd.f32 %v7653_v35, %v5016_v21  ;;  %v3050_v18 = vrot.slane %v7858_v9, 4  ;;  %4107 = vmatpush2.msra.mxu0 %v7852_v39 }
 0x325   : > { %2792 = vrot.lane.b32.xlu0 %v2731_v52, %s5428_s10  ;;  %5102 = vmatprep.subr.mxu1 %v9429_v54  ;;  %v8034_v53 = vsel %vm3245_vm15, %v3224_v31, %v7551_v48  ;;  %v2318_v22 = vmax.f32 %v2256_v36, 0.0  ;;  %v2572_v27 = vrot.slane %v8024_v56, 1  ;;  %v2732_v60 = vrot.slane %v8024_v56, 2 }
 0x326   : > { %5224 = vrot.lane.b32.xlu1 %v5223_v11, %s5430_s19  ;;  %5127 = vmatpush2.msra.mxu1 %v7959_v19  ;;  %9445 = vst [vmem:[#allocation36_spill] sm:$0xff] %v8034_v53  ;;  %v2319_v48 = vmax.f32 %v2261_v1, 0.0  ;;  %v3051_v11 = vsel %vm1007_vm4, %v3049_v5, %v3050_v18  ;;  %v2892_v7 = vrot.slane %v8024_v56, 3  ;;  %v3052_v37 = vrot.slane %v8024_v56, 4 }
 0x327   : > { %v7984_v32 = vpop.permute.xlu0 %2766  ;;  %v2573_v0 = vsel %vm509_vm1, %v2570_v55, %v2572_v27  ;;  %v2394_v21 = vrot.slane %v2318_v22, 6  ;;  %v8054_v30 = vpop.permute.xlu1 %2610  ;;  %v2733_v57 = vsel %vm675_vm2, %v2730_v2, %v2732_v60  ;;  %v3162_v55 = vsel %vm1204_vm6, %v7252_v25, %v7563_v44  ;;  %4108 = vmatprep.subr.mxu0 %v9429_v54 }
 0x328   : > { %v2395_v51 = vrot.slane %v2319_v48, 6  ;;  %v2893_v47 = vsel %vm841_vm3, %v2890_v41, %v2892_v7  ;;  %v3192_v10 = vsel %vm1266_vm8, %v3162_v55, %v7635_v45  ;;  %v3164_v2 = vsel %vm1204_vm6, %v7346_v43, %v7740_v8  ;;  %4109 = vmatpush2.msra.mxu0 %v7873_v13  ;;  %v9448_v43 = vld [vmem:[#allocation34_spill] sm:$0xff]  ;;  %v9449_v41 = vld [vmem:[#allocation16_spill] sm:$0xff] }
 0x329   : > { %2952 = vrot.lane.b32.xlu0 %v2891_v42, %s5433_s11  ;;  %v8083_v25 = vsel %vm344_vm0, 0.0, %v2394_v21  ;;  %v3223_v44 = vsel %vm3214_vm14, %v3192_v10, %v7736_v24  ;;  %v3194_v45 = vsel %vm1266_vm8, %v3164_v2, %v7800_v17  ;;  %4110 = vmatprep.subr.mxu0 %v9429_v54  ;;  %v3053_v6 = vsel %vm1007_vm4, %v3050_v18, %v3052_v37 }
 0x32a   : > { %5229 = vrot.lane.b32.xlu1 %v7998_v46, %s5432_s28  ;;  %v8080_v12 = vsel %vm344_vm0, %v2394_v21, %v2395_v51  ;;  %9447 = vst [vmem:[#allocation39_spill] sm:$0xff] %v8083_v25  ;;  %v8096_v8 = vsel %vm3245_vm15, %v3223_v44, %v9448_v43  ;;  %v3225_v14 = vsel %vm3214_vm14, %v3194_v45, %v9449_v41  ;;  %v2574_v17 = vrot.slane %v8083_v25, 1 }
 0x32b   : > { %v8019_v58 = vpop.permute.xlu0 %3086  ;;  %9446 = vst [vmem:[#allocation17_spill] sm:$0xff] %v8080_v12  ;;  %v8100_v42 = vpop.permute.xlu1 %2930  ;;  %v8105_v24 = vsel %vm3245_vm15, %v3225_v14, %v7953_v34  ;;  %v2575_v13 = vrot.slane %v8080_v12, 1  ;;  %4111 = vmatpush2.msra.mxu0 %v7892_v26  ;;  %v2734_v31 = vrot.slane %v8083_v25, 2  ;;  %v2735_v36 = vrot.slane %v8080_v12, 2 }
 0x32c   : > { %9450 = vst [vmem:[#allocation19_spill] sm:$0xff] %v8105_v24  ;;  %4112 = vmatprep.subr.mxu0 %v9429_v54  ;;  %v5019_v56 = vpop.f32.mrf.mxu0  ;;  %v2895_v22 = vrot.slane %v8080_v12, 3  ;;  %v5238_v60 = vpack.i.bf16 %v8096_v8, %v8017_v40  ;;  %v2482_v21 = vsel %vm344_vm0, %v2395_v51, 0.0 }
 0x32d   : > { %3616 = vrot.lane.b32.xlu0 %v8017_v40, %s5435_s13  ;;  %4113 = vmatpush2.msra.mxu0 %v7907_v33  ;;  %v2576_v26 = vsel %vm509_vm1, %v2574_v17, %v2575_v13  ;;  %v2736_v18 = vsel %vm675_vm2, %v2734_v31, %v2735_v36  ;;  %v2894_v33 = vrot.slane %v8083_v25, 3  ;;  %v2737_v41 = vrot.slane %v2482_v21, 2 }
 0x32e   : > { %3712 = vrot.lane.b32.xlu1 %v8034_v53, %s5434_s12  ;;  %4114 = vmatprep.subr.mxu0 %v9429_v54  ;;  %v2897_v17 = vrot.slane %v2482_v21, 3 }
 0x32f   : > { %v8043_v61 = vpop.permute.xlu0 %2768  ;;  %4115 = vmatpush2.msra.mxu0 %v7933_v20  ;;  %v2265_v20 = vpop.f32.mrf.mxu0 }
 0x330   : > { %4116 = vmatprep.subr.mxu0 %v9429_v54  ;;  %v9451_v54 = vld [vmem:[#allocation7_spill] sm:$0xff] }
 0x331   : > { %3112 = vrot.lane.b32.xlu0 %v3051_v11, %s5434_s12  ;;  %4117 = vmatpush2.msra.mxu0 %v7959_v19  ;;  %v3165_v48 = vsel %vm1204_vm6, %v9451_v54, %v7878_v4 }
 0x332   : > { %2634 = vrot.lane.b32.xlu1 %v2573_v0, %s5426_s8  ;;  %v2896_v0 = vsel %vm841_vm3, %v2894_v33, %v2895_v22  ;;  %v3195_v19 = vsel %vm1266_vm8, %v3165_v48, %v7984_v32  ;;  %v3055_v32 = vrot.slane %v8080_v12, 4 }
 0x333   : > { %v8059_v52 = vpop.permute.xlu0 %3088  ;;  %v3226_v4 = vsel %vm3214_vm14, %v3195_v19, %v7943_v38  ;;  %v2577_v38 = vrot.slane %v2482_v21, 1  ;;  %v3057_v19 = vrot.slane %v2482_v21, 4 }
 0x334   : > { %v8168_v10 = vsel %vm3245_vm15, %v3226_v4, %v8019_v58 }
 0x335   : > { %2794 = vrot.lane.b32.xlu0 %v2733_v57, %s5428_s10  ;;  %v2271_v57 = vadd.f32 %v7653_v35, %v5019_v56  ;;  %9452 = vst [vmem:[#allocation38_spill] sm:$0xff] %v8168_v10  ;;  %v2578_v58 = vsel %vm509_vm1, %v2575_v13, %v2577_v38  ;;  %v2898_v13 = vsel %vm841_vm3, %v2895_v22, %v2897_v17 }
 0x336   : > { %2954 = vrot.lane.b32.xlu1 %v2893_v47, %s5433_s11  ;;  %v3054_v47 = vrot.slane %v8083_v25, 4  ;;  %v3058_v4 = vsel %vm1007_vm4, %v3055_v32, %v3057_v19 }
 0x337   : > { %v8091_v39 = vpop.permute.xlu0 %2770  ;;  %v2321_v44 = vmax.f32 %v2271_v57, 0.0 }
 0x338   : > { %v3056_v43 = vsel %vm1007_vm4, %v3054_v47, %v3055_v32 }
 0x339   : > { %3618 = vrot.lane.b32.xlu0 %v8096_v8, %s5435_s13 }
 0x33a   : > { %3714 = vrot.lane.b32.xlu1 %v8105_v24, %s5434_s12 }
 0x33b   : > { %v8115_v59 = vpop.permute.xlu0 %3090  ;;  %v8118_v34 = vpop.permute.xlu1 %2612 }
 0x33d   : > { %3114 = vrot.lane.b32.xlu0 %v3053_v6, %s5434_s12  ;;  %v9453_v6 = vld [vmem:[#allocation8_spill] sm:$0xff] }
 0x33e   : > { %2636 = vrot.lane.b32.xlu1 %v2576_v26, %s5426_s8  ;;  %v3166_v31 = vsel %vm1204_vm6, %v9453_v6, %v7976_v62  ;;  %v2398_v26 = vrot.slane %v2321_v44, 6  ;;  %v5022_v21 = vpop.f32.mrf.mxu0 }
 0x33f   : > { %v8129_v1 = vpop.permute.xlu0 %2772  ;;  %v8132_v5 = vpop.permute.xlu1 %2932  ;;  %v3196_v33 = vsel %vm1266_vm8, %v3166_v31, %v8043_v61 }
 0x341   : > { %2796 = vrot.lane.b32.xlu0 %v2736_v18, %s5428_s10  ;;  %v2738_v18 = vsel %vm675_vm2, %v2735_v36, %v2737_v41  ;;  %v3227_v36 = vsel %vm3214_vm14, %v3196_v33, %v8027_v63 }
 0x342   : > { %5234 = vrot.lane.b32.xlu1 %v7998_v46, %s5430_s19  ;;  %v2266_v46 = vadd.f32 %v7653_v35, %v2265_v20  ;;  %v8209_v61 = vsel %vm3245_vm15, %v3227_v36, %v8059_v52 }
 0x343   : > { %v8141_v27 = vpop.permute.xlu0 %3092  ;;  %v8146_v11 = vpop.permute.xlu1 %2614  ;;  %9456 = vst [vmem:[#allocation40_spill] sm:$0xff] %v8209_v61 }
 0x344   : > { %v2320_v51 = vmax.f32 %v2266_v46, 0.0 }
 0x345   : > { %2956 = vrot.lane.b32.xlu0 %v2896_v0, %s5433_s11 }
 0x346   : > { %5239 = vrot.lane.b32.xlu1 %v5238_v60, %s5432_s28  ;;  %v2397_v14 = vrot.slane %v2320_v51, 6 }
 0x347   : > { %v8157_v7 = vpop.permute.xlu0 %2774  ;;  %v8162_v55 = vpop.permute.xlu1 %2934 }
 0x348   : > { %v8195_v20 = vsel %vm344_vm0, %v2397_v14, %v2398_v26  ;;  %v8198_v54 = vsel %vm344_vm0, 0.0, %v2397_v14  ;;  %v9457_v14 = vld [vmem:[#allocation28_spill] sm:$0xff] }
 0x349   : > { %3620 = vrot.lane.b32.xlu0 %v8034_v53, %s5435_s13  ;;  %9454 = vst [vmem:[#allocation18_spill] sm:$0xff] %v8195_v20  ;;  %9455 = vst [vmem:[#allocation41_spill] sm:$0xff] %v8198_v54  ;;  %v2579_v22 = vrot.slane %v8198_v54, 1  ;;  %v2580_v0 = vrot.slane %v8195_v20, 1  ;;  %v2739_v52 = vrot.slane %v8198_v54, 2  ;;  %v2740_v57 = vrot.slane %v8195_v20, 2 }
 0x34a   : > { %3716 = vrot.lane.b32.xlu1 %v8168_v10, %s5434_s12  ;;  %v2900_v32 = vrot.slane %v8195_v20, 3  ;;  %v3167_v17 = vsel %vm1204_vm6, %v9457_v14, %v8054_v30 }
 0x34b   : > { %v8174_v2 = vpop.permute.xlu0 %3094  ;;  %v8176_v45 = vpop.permute.xlu1 %2616  ;;  %v2581_v47 = vsel %vm509_vm1, %v2579_v22, %v2580_v0  ;;  %v2741_v44 = vsel %vm675_vm2, %v2739_v52, %v2740_v57  ;;  %v3197_v33 = vsel %vm1266_vm8, %v3167_v17, %v8091_v39  ;;  %v2281_v22 = vadd.f32 %v7653_v35, %v5022_v21 }
 0x34c   : > { %v3228_v30 = vsel %vm3214_vm14, %v3197_v33, %v8100_v42  ;;  %v3060_v39 = vrot.slane %v8195_v20, 4  ;;  %v9459_v33 = vld [vmem:[#allocation9_spill] sm:$0xff] }
 0x34d   : > { %3116 = vrot.lane.b32.xlu0 %v3056_v43, %s5434_s12  ;;  %v2899_v43 = vrot.slane %v8198_v54, 3  ;;  %v8263_v52 = vsel %vm3245_vm15, %v3228_v30, %v8115_v59  ;;  %v2323_v21 = vmax.f32 %v2281_v22, 0.0 }
 0x34e   : > { %2638 = vrot.lane.b32.xlu1 %v2578_v58, %s5426_s8  ;;  %v2275_v58 = vpop.f32.mrf.mxu0  ;;  %9458 = vst [vmem:[#allocation43_spill] sm:$0xff] %v8263_v52 }
 0x34f   : > { %v8182_v37 = vpop.permute.xlu0 %2776  ;;  %v8187_v56 = vpop.permute.xlu1 %2936  ;;  %v2901_v31 = vsel %vm841_vm3, %v2899_v43, %v2900_v32  ;;  %v2401_v30 = vrot.slane %v2323_v21, 6 }
 0x351   : > { %2798 = vrot.lane.b32.xlu0 %v2738_v18, %s5428_s10  ;;  %v5248_v18 = vpack.i.bf16 %v8105_v24, %v8034_v53 }
 0x352   : > { %2958 = vrot.lane.b32.xlu1 %v2898_v13, %s5433_s11  ;;  %v2483_v13 = vsel %vm344_vm0, %v2398_v26, 0.0 }
 0x353   : > { %v8201_v62 = vpop.permute.xlu0 %3096  ;;  %v8205_v48 = vpop.permute.xlu1 %2618  ;;  %v2582_v42 = vrot.slane %v2483_v13, 1  ;;  %v2902_v17 = vrot.slane %v2483_v13, 3 }
 0x355   : > { %3622 = vrot.lane.b32.xlu0 %v8105_v24, %s5435_s13  ;;  %v2583_v59 = vsel %vm509_vm1, %v2580_v0, %v2582_v42  ;;  %v2903_v0 = vsel %vm841_vm3, %v2900_v32, %v2902_v17 }
 0x356   : > { %3718 = vrot.lane.b32.xlu1 %v8209_v61, %s5434_s12 }
 0x357   : > { %v8217_v46 = vpop.permute.xlu0 %2778  ;;  %v8219_v63 = vpop.permute.xlu1 %2938 }
 0x359   : > { %3118 = vrot.lane.b32.xlu0 %v3058_v4, %s5434_s12  ;;  %v3059_v4 = vrot.slane %v8198_v54, 4 }
 0x35a   : > { %2640 = vrot.lane.b32.xlu1 %v2581_v47, %s5426_s8 }
 0x35b   : > { %v8227_v51 = vpop.permute.xlu0 %3098  ;;  %v8229_v38 = vpop.permute.xlu1 %2620  ;;  %v3061_v43 = vsel %vm1007_vm4, %v3059_v4, %v3060_v39 }
 0x35d   : > { %2800 = vrot.lane.b32.xlu0 %v2741_v44, %s5428_s10 }
 0x35e   : > { %5244 = vrot.lane.b32.xlu1 %v5238_v60, %s5430_s19  ;;  %v2276_v60 = vadd.f32 %v7653_v35, %v2275_v58  ;;  %v2742_v58 = vrot.slane %v2483_v13, 2 }
 0x35f   : > { %v8236_v41 = vpop.permute.xlu0 %2780  ;;  %v8241_v6 = vpop.permute.xlu1 %2940 }
 0x360   : > { %v2322_v26 = vmax.f32 %v2276_v60, 0.0  ;;  %v3168_v60 = vsel %vm1204_vm6, %v9459_v33, %v8118_v34  ;;  %v2743_v4 = vsel %vm675_vm2, %v2740_v57, %v2742_v58  ;;  %v3062_v58 = vrot.slane %v2483_v13, 4  ;;  %v5025_v13 = vpop.f32.mrf.mxu0 }
 0x361   : > { %2960 = vrot.lane.b32.xlu0 %v2901_v31, %s5433_s11 }
 0x362   : > { %5249 = vrot.lane.b32.xlu1 %v5248_v18, %s5432_s28  ;;  %v2400_v14 = vrot.slane %v2322_v26, 6  ;;  %v3063_v17 = vsel %vm1007_vm4, %v3060_v39, %v3062_v58  ;;  %v2285_v58 = vpop.f32.mrf.mxu0 }
 0x363   : > { %v8252_v36 = vpop.permute.xlu0 %3100  ;;  %v8257_v19 = vpop.permute.xlu1 %2622 }
 0x364   : > { %v8290_v26 = vsel %vm344_vm0, %v2400_v14, %v2401_v30  ;;  %v8293_v42 = vsel %vm344_vm0, 0.0, %v2400_v14 }
 0x365   : > { %3624 = vrot.lane.b32.xlu0 %v8168_v10, %s5435_s13  ;;  %9460 = vst [vmem:[#allocation42_spill] sm:$0xff] %v8290_v26  ;;  %9461 = vst [vmem:[#allocation20_spill] sm:$0xff] %v8293_v42  ;;  %v3278_v32 = vrot.slane %v8293_v42, 1  ;;  %v3290_v33 = vrot.slane %v8290_v26, 2  ;;  %v3301_v39 = vrot.slane %v8290_v26, 3 }
 0x366   : > { %3720 = vrot.lane.b32.xlu1 %v8263_v52, %s5434_s12 }
 0x367   : > { %v8269_v47 = vpop.permute.xlu0 %2782  ;;  %v8271_v44 = vpop.permute.xlu1 %2942 }
 0x369   : > { %3120 = vrot.lane.b32.xlu0 %v3061_v43, %s5434_s12  ;;  %v3198_v43 = vsel %vm1266_vm8, %v3168_v60, %v8129_v1 }
 0x36a   : > { %2642 = vrot.lane.b32.xlu1 %v2583_v59, %s5426_s8  ;;  %v3229_v57 = vsel %vm3214_vm14, %v3198_v43, %v8132_v5  ;;  %v3279_v59 = vrot.slane %v8290_v26, 1 }
 0x36b   : > { %v8277_v31 = vpop.permute.xlu0 %3102  ;;  %v8282_v22 = vpop.permute.xlu1 %2624  ;;  %v8304_v1 = vsel %vm3245_vm15, %v3229_v57, %v8141_v27  ;;  %v3289_v27 = vrot.slane %v8293_v42, 2  ;;  %v3300_v57 = vrot.slane %v8293_v42, 3 }
 0x36c   : > { %9462 = vst [vmem:[#allocation46_spill] sm:$0xff] %v8304_v1  ;;  %v3280_v60 = vsel %vm509_vm1, %v3278_v32, %v3279_v59  ;;  %v9463_v32 = vld [vmem:[#allocation29_spill] sm:$0xff] }
 0x36d   : > { %2802 = vrot.lane.b32.xlu0 %v2743_v4, %s5428_s10  ;;  %v3302_v53 = vsel %vm841_vm3, %v3300_v57, %v3301_v39  ;;  %v2291_v57 = vadd.f32 %v7653_v35, %v5025_v13 }
 0x36e   : > { %2962 = vrot.lane.b32.xlu1 %v2903_v0, %s5433_s11  ;;  %v3291_v0 = vsel %vm675_vm2, %v3289_v27, %v3290_v33  ;;  %v5258_v27 = vpack.i.bf16 %v8209_v61, %v8168_v10 }
 0x36f   : > { %v8296_v34 = vpop.permute.xlu0 %2784  ;;  %v8300_v21 = vpop.permute.xlu1 %2944 }
 0x371   : > { %3626 = vrot.lane.b32.xlu0 %v8209_v61, %s5435_s13  ;;  %v3311_v61 = vrot.slane %v8293_v42, 4  ;;  %v9464_v42 = vld [vmem:[#allocation31_spill] sm:$0xff] }
 0x372   : > { %3722 = vrot.lane.b32.xlu1 %v8304_v1, %s5434_s12 }
 0x373   : > { %v8312_v14 = vpop.permute.xlu0 %5204  ;;  %v8314_v5 = vpop.permute.xlu1 %3104 }
 0x375   : > { %3122 = vrot.lane.b32.xlu0 %v3063_v17, %s5434_s12 }
 0x376   : > { %3283 = vrot.lane.b32.xlu1 %v3280_v60, %s5426_s8  ;;  %v3169_v60 = vsel %vm1204_vm6, %v9463_v32, %v8146_v11 }
 0x377   : > { %v8322_v4 = vpop.permute.xlu0 %2626  ;;  %v8324_v43 = vpop.permute.xlu1 %5209  ;;  %v3199_v20 = vsel %vm1266_vm8, %v3169_v60, %v8157_v7  ;;  %v3312_v7 = vrot.slane %v8290_v26, 4 }
 0x378   : > { %v3230_v11 = vsel %vm3214_vm14, %v3199_v20, %v8162_v55 }
 0x379   : > { %3294 = vrot.lane.b32.xlu0 %v3291_v0, %s5428_s10  ;;  %v2484_v0 = vsel %vm344_vm0, %v2401_v30, 0.0 }
 0x37a   : > { %5254 = vrot.lane.b32.xlu1 %v5248_v18, %s5430_s19  ;;  %v2286_v18 = vadd.f32 %v7653_v35, %v2285_v58  ;;  %v3281_v55 = vrot.slane %v2484_v0, 1  ;;  %v2325_v35 = vmax.f32 %v2291_v57, 0.0  ;;  %v3313_v58 = vsel %vm1007_vm4, %v3311_v61, %v3312_v7 }
 0x37b   : > { %v8331_v17 = vpop.permute.xlu0 %2786  ;;  %v8336_v24 = vpop.permute.xlu1 %5214  ;;  %v3292_v60 = vrot.slane %v2484_v0, 2  ;;  %v3170_v57 = vsel %vm1204_vm6, %v9464_v42, %v8176_v45 }
 0x37c   : > { %v2324_v30 = vmax.f32 %v2286_v18, 0.0  ;;  %v3303_v18 = vrot.slane %v2484_v0, 3  ;;  %v2404_v26 = vrot.slane %v2325_v35, 6 }
 0x37d   : > { %3305 = vrot.lane.b32.xlu0 %v3302_v53, %s5433_s11  ;;  %v8358_v53 = vsel %vm3245_vm15, %v3230_v11, %v8174_v2  ;;  %v3282_v2 = vsel %vm509_vm1, %v3279_v59, %v3281_v55  ;;  %v3293_v61 = vsel %vm675_vm2, %v3290_v33, %v3292_v60 }
 0x37e   : > { %5259 = vrot.lane.b32.xlu1 %v5258_v27, %s5432_s28  ;;  %v2403_v11 = vrot.slane %v2324_v30, 6  ;;  %v3304_v59 = vsel %vm841_vm3, %v3301_v39, %v3303_v18 }
 0x37f   : > { %v8347_v54 = vpop.permute.xlu0 %2946  ;;  %v8352_v32 = vpop.permute.xlu1 %5219 }
 0x380   : > { %v8385_v30 = vsel %vm344_vm0, %v2403_v11, %v2404_v26  ;;  %v8388_v55 = vsel %vm344_vm0, 0.0, %v2403_v11  ;;  %v5222_v50 = vunpack.i.h.bf16 %v8352_v32 }
 0x381   : > { %3628 = vrot.lane.b32.xlu0 %v8263_v52, %s5435_s13  ;;  %9465 = vst [vmem:[#allocation45_spill] sm:$0xff] %v8385_v30  ;;  %9466 = vst [vmem:[#allocation6_spill] sm:$0xff] %v8388_v55  ;;  %v3332_v39 = vrot.slane %v8388_v55, 1  ;;  %v3333_v35 = vrot.slane %v8385_v30, 1  ;;  %v3344_v18 = vrot.slane %v8385_v30, 2 }
 0x382   : > { %3724 = vrot.lane.b32.xlu1 %v8358_v53, %s5434_s12 }
 0x383   : > { %v8364_v20 = vpop.permute.xlu0 %3106  ;;  %v8366_v13 = vpop.permute.xlu1 %2628 }
 0x385   : > { %3316 = vrot.lane.b32.xlu0 %v3313_v58, %s5434_s12  ;;  %v3200_v58 = vsel %vm1266_vm8, %v3170_v57, %v8182_v37  ;;  %v3334_v57 = vsel %vm509_vm1, %v3332_v39, %v3333_v35  ;;  %v5212_v39 = vunpack.i.h.bf16 %v8324_v43 }
 0x386   : > { %3285 = vrot.lane.b32.xlu1 %v3282_v2, %s5426_s8  ;;  %v3231_v42 = vsel %vm3214_vm14, %v3200_v58, %v8187_v56  ;;  %v3314_v2 = vrot.slane %v2484_v0, 4 }
 0x387   : > { %v8372_v10 = vpop.permute.xlu0 %2788  ;;  %v8377_v12 = vpop.permute.xlu1 %2948  ;;  %v8399_v37 = vsel %vm3245_vm15, %v3231_v42, %v8201_v62  ;;  %v3343_v62 = vrot.slane %v8388_v55, 2  ;;  %v5207_v42 = vunpack.i.h.bf16 %v8312_v14 }
 0x388   : > { %v3315_v11 = vsel %vm1007_vm4, %v3312_v7, %v3314_v2  ;;  %v3355_v7 = vrot.slane %v8385_v30, 3 }
 0x389   : > { %3296 = vrot.lane.b32.xlu0 %v3293_v61, %s5428_s10  ;;  %v3345_v58 = vsel %vm675_vm2, %v3343_v62, %v3344_v18  ;;  %v5217_v62 = vunpack.i.h.bf16 %v8336_v24 }
 0x38a   : > { %3307 = vrot.lane.b32.xlu1 %v3304_v59, %s5433_s11  ;;  %v3354_v59 = vrot.slane %v8388_v55, 3 }
 0x38b   : > { %v8391_v45 = vpop.permute.xlu0 %3108 }
 0x38c   : > { %v8395_v33 = vpop.permute.xlu1 %2630  ;;  %v3356_v9 = vsel %vm841_vm3, %v3354_v59, %v3355_v7  ;;  %v2485_v59 = vsel %vm344_vm0, %v2404_v26, 0.0  ;;  %vm3957_vm0 = vcmask 588800  }
 0x38d   : > { %3630 = vrot.lane.b32.xlu0 %v8304_v1, %s5435_s13 }
 0x38e   : > { %3726 = vrot.lane.b32.xlu1 %v8399_v37, %s5434_s12 }
 0x38f   : > { %v8407_v60 = vpop.permute.xlu0 %2790 }
 0x390   : > { %v8409_v56 = vpop.permute.xlu1 %2950 }
 0x391   : > { %3318 = vrot.lane.b32.xlu0 %v3315_v11, %s5434_s12  ;;  %v9469_v11 = vld [vmem:[#allocation11_spill] sm:$0xff] }
 0x392   : > { %3337 = vrot.lane.b32.xlu1 %v3334_v57, %s5426_s8  ;;  %v3171_v57 = vsel %vm1204_vm6, %v9469_v11, %v8205_v48 }
 0x393   : > { %v8417_v0 = vpop.permute.xlu0 %3110 }
 0x394   : > { %v8419_v61 = vpop.permute.xlu1 %2632 }
 0x395   : > { %9467 = vst [vmem:[#allocation27_spill] sm:$0xff] %v8419_v61  ;;  %3348 = vrot.lane.b32.xlu0 %v3345_v58, %s5428_s10  ;;  %v8439_v58 = vpack.i.bf16 %v8304_v1, %v8263_v52  ;;  %v3365_v61 = vrot.slane %v8388_v55, 4 }
 0x396   : > { %5264 = vrot.lane.b32.xlu1 %v5258_v27, %s5430_s19  ;;  %v3201_v27 = vsel %vm1266_vm8, %v3171_v57, %v8217_v46 }
 0x397   : > { %v8428_v2 = vpop.permute.xlu0 %2792  ;;  %v3232_v46 = vsel %vm3214_vm14, %v3201_v27, %v8219_v63 }
 0x398   : > { %9468 = vst [vmem:[#allocation48_spill] sm:$0xff] %v8428_v2  ;;  %v8434_v25 = vpop.permute.xlu1 %5224  ;;  %v9470_v2 = vld [vmem:[#allocation2_spill] sm:$0xff] }
 0x399   : > { %3359 = vrot.lane.b32.xlu0 %v3356_v9, %s5433_s11  ;;  %v3155_v48 = vsel %vm1204_vm6, %v9470_v2, %v5207_v42  ;;  %v5226_v11 = vunpack.i.l.bf16 %v8434_v25  ;;  %v3366_v42 = vrot.slane %v8385_v30, 4  ;;  %v8461_v2 = vsel %vm3245_vm15, %v3232_v46, %v8227_v51 }
 0x39a   : > { %5269 = vrot.lane.b32.xlu1 %v8439_v58, %s5432_s28  ;;  %v3185_v1 = vsel %vm1266_vm8, %v3155_v48, %v5212_v39  ;;  %v3357_v30 = vrot.slane %v2485_v59, 3 }
 0x39b   : > { %v8452_v52 = vpop.permute.xlu0 %2952  ;;  %v3216_v57 = vsel %vm3214_vm14, %v3185_v1, %v5217_v62  ;;  %v3335_v1 = vrot.slane %v2485_v59, 1 }
 0x39c   : > { %v5230_v9 = vpop.permute.xlu1 %5229  ;;  %v8464_v26 = vsel %vm3245_vm15, %v3216_v57, %v5222_v50  ;;  %v3367_v50 = vsel %vm1007_vm4, %v3365_v61, %v3366_v42  ;;  %v3346_v57 = vrot.slane %v2485_v59, 2 }
 0x39d   : > { %v5231_v39 = vunpack.i.l.bf16 %v5230_v9  ;;  %3632 = vrot.lane.b32.xlu0 %v8358_v53, %s5435_s13  ;;  %v3799_v63 = vsel %vm1850_vm10, %v8464_v26, %v5226_v11  ;;  %v3336_v46 = vsel %vm509_vm1, %v3333_v35, %v3335_v1 }
 0x39e   : > { %3728 = vrot.lane.b32.xlu1 %v8461_v2, %s5434_s12  ;;  %v3347_v35 = vsel %vm675_vm2, %v3344_v18, %v3346_v57 }
 0x39f   : > { %v3617_v62 = vpop.permute.xlu0 %3616  ;;  %v3831_v27 = vsel %vm1916_vm12, %v3799_v63, %v5231_v39  ;;  %v9471_v39 = vld [vmem:[#allocation13_spill] sm:$0xff]  ;;  %v5206_v63 = vunpack.i.l.bf16 %v8312_v14 }
 0x3a0   : > { %v3713_v51 = vpop.permute.xlu1 %3712  ;;  %v3864_v11 = vsel %vm3860_vm7, %v3831_v27, %v3617_v62  ;;  %v3172_v61 = vsel %vm1204_vm6, %v9471_v39, %v8229_v38  ;;  %v5216_v27 = vunpack.i.l.bf16 %v8336_v24  ;;  %v5221_v38 = vunpack.i.l.bf16 %v8352_v32 }
 0x3a1   : > { %3370 = vrot.lane.b32.xlu0 %v3367_v50, %s5434_s12  ;;  %v3896_v48 = vsel %vm3245_vm15, %v3617_v62, %v3713_v51  ;;  %v3202_v1 = vsel %vm1266_vm8, %v3172_v61, %v8236_v41  ;;  %v5211_v50 = vunpack.i.l.bf16 %v8324_v43  ;;  %v3358_v62 = vsel %vm841_vm3, %v3355_v7, %v3357_v30 }
 0x3a2   : > { %4807 = vmatprep.mubr.msk.f32.mxu1 %vm3957_vm0, %v3896_v48  ;;  %3339 = vrot.lane.b32.xlu1 %v3336_v46, %s5426_s8  ;;  %v3233_v18 = vsel %vm3214_vm14, %v3202_v1, %v8241_v6  ;;  %v9472_v48 = vld [vmem:[#allocation32_spill] sm:$0xff]  ;;  %v5227_v43 = vunpack.i.h.bf16 %v8434_v25  ;;  %v5232_v7 = vunpack.i.h.bf16 %v5230_v9  ;;  %v3368_v32 = vrot.slane %v2485_v59, 4 }
 0x3a3   : > { %v8480_v55 = vpop.permute.xlu0 %3112  ;;  %4134 = vmatmul.mubr.f32.vlgmr.msra.gmra.mxu1 %v3864_v11  ;;  %v3156_v41 = vsel %vm1204_vm6, %v9472_v48, %v5206_v63  ;;  %v8508_v30 = vsel %vm3245_vm15, %v3233_v18, %v8252_v36  ;;  %v9473_v63 = vld [vmem:[#allocation33_spill] sm:$0xff]  ;;  %v5278_v1 = vpack.i.bf16 %v8399_v37, %v8358_v53  ;;  %v5197_v48 = vunpack.i.h.bf16 %v7506_v49 }
 0x3a4   : > { %v8486_v51 = vpop.permute.xlu1 %2634  ;;  %v3186_v24 = vsel %vm1266_vm8, %v3156_v41, %v5211_v50  ;;  %v3369_v39 = vsel %vm1007_vm4, %v3366_v42, %v3368_v32  ;;  %v9474_v50 = vld [vmem:[#allocation30_spill] sm:$0xff] }
 0x3a5   : > { %3350 = vrot.lane.b32.xlu0 %v3347_v35, %s5428_s10  ;;  %v3217_v6 = vsel %vm3214_vm14, %v3186_v24, %v5216_v27  ;;  %v3173_v35 = vsel %vm1204_vm6, %v9473_v63, %v8257_v19  ;;  %v5202_v19 = vunpack.i.h.bf16 %v7527_v29 }
 0x3a6   : > { %3361 = vrot.lane.b32.xlu1 %v3358_v62, %s5433_s11  ;;  %v3248_v25 = vsel %vm3245_vm15, %v3217_v6, %v5221_v38  ;;  %v5187_v62 = vunpack.i.h.bf16 %v9474_v50  ;;  %v3203_v27 = vsel %vm1266_vm8, %v3173_v35, %v8269_v47 }
 0x3a7   : > { %v8497_v14 = vpop.permute.xlu0 %2794  ;;  %v3800_v36 = vsel %vm1850_vm10, %v3248_v25, %v5227_v43  ;;  %v3234_v41 = vsel %vm3214_vm14, %v3203_v27, %v8271_v44  ;;  %v9476_v43 = vld [vmem:[#allocation35_spill] sm:$0xff]  ;;  %v5288_v63 = vpack.i.bf16 %v8461_v2, %v3248_v25  ;;  %v9478_v25 = vld [vmem:[#allocation12_spill] sm:$0xff] }
 0x3a8   : > { %v8504_v46 = vpop.permute.xlu1 %2954  ;;  %v3832_v9 = vsel %vm1916_vm12, %v3800_v36, %v5232_v7  ;;  %v3174_v47 = vsel %vm1204_vm6, %v9476_v43, %v8282_v22  ;;  %v9477_v7 = vld [vmem:[#allocation3_spill] sm:$0xff]  ;;  %v8555_v49 = vsel %vm3245_vm15, %v3234_v41, %v8277_v31 }
 0x3a9   : > { %3634 = vrot.lane.b32.xlu0 %v8399_v37, %s5435_s13  ;;  %v3154_v32 = vsel %vm1204_vm6, %v9477_v7, %v5187_v62  ;;  %v3204_v6 = vsel %vm1266_vm8, %v3174_v47, %v8296_v34  ;;  %v5293_v47 = vpack.i.bf16 %v8399_v37, %v8464_v26 }
 0x3aa   : > { %3730 = vrot.lane.b32.xlu1 %v8508_v30, %s5434_s12  ;;  %v3235_v31 = vsel %vm3214_vm14, %v3204_v6, %v8300_v21 }
 0x3ab   : > { %v3619_v57 = vpop.permute.xlu0 %3618  ;;  %v8574_v34 = vsel %vm3245_vm15, %v3235_v31, %v8314_v5 }
 0x3ac   : > { %v3715_v11 = vpop.permute.xlu1 %3714  ;;  %v3865_v59 = vsel %vm3860_vm7, %v3832_v9, %v3619_v57 }
 0x3ad   : > { %v3897_v61 = vsel %vm3245_vm15, %v3619_v57, %v3715_v11  ;;  %3372 = vrot.lane.b32.xlu0 %v3369_v39, %s5434_s12 }
 0x3ae   : > { %4808 = vmatprep.mubr.msk.f32.mxu1 %vm3957_vm0, %v3897_v61  ;;  %5274 = vrot.lane.b32.xlu1 %v8439_v58, %s5430_s19  ;;  %v9475_v58 = vld [vmem:[#allocation10_spill] sm:$0xff] }
 0x3af   : > { %v8529_v42 = vpop.permute.xlu0 %3114  ;;  %4139 = vmatmul.mubr.f32.gmra.mxu1 %v3865_v59  ;;  %v5192_v18 = vunpack.i.h.bf16 %v9475_v58  ;;  %v3175_v58 = vsel %vm1204_vm6, %v9478_v25, %v8322_v4 }
 0x3b0   : > { %v8536_v38 = vpop.permute.xlu1 %2636 }
 0x3b1   : > { %5279 = vrot.lane.b32.xlu0 %v5278_v1, %s5432_s28  ;;  %v3184_v57 = vsel %vm1266_vm8, %v3154_v32, %v5192_v18  ;;  %v3205_v18 = vsel %vm1266_vm8, %v3175_v58, %v8331_v17 }
 0x3b2   : > { %3636 = vrot.lane.b32.xlu1 %v8461_v2, %s5435_s13  ;;  %v3215_v44 = vsel %vm3214_vm14, %v3184_v57, %v5197_v48  ;;  %v3236_v48 = vsel %vm3214_vm14, %v3205_v18, %v8347_v54  ;;  %v5298_v54 = vpack.i.bf16 %v8508_v30, %v7938_v28 }
 0x3b3   : > { %v8549_v24 = vpop.permute.xlu0 %2796  ;;  %v8566_v11 = vsel %vm3245_vm15, %v3215_v44, %v5202_v19  ;;  %v8610_v41 = vsel %vm3245_vm15, %v3236_v48, %v8364_v20  ;;  %v9479_v44 = vld [vmem:[#allocation14_spill] sm:$0xff]  ;;  %v5313_v48 = vpack.i.bf16 %v8555_v49, %v8508_v30 }
 0x3b4   : > { %v5235_v29 = vpop.permute.xlu1 %5234  ;;  %v5283_v61 = vpack.i.bf16 %v8358_v53, %v8566_v11 }
 0x3b5   : > { %3732 = vrot.lane.b32.xlu0 %v8555_v49, %s5434_s12  ;;  %v5236_v22 = vunpack.i.l.bf16 %v5235_v29  ;;  %v5237_v43 = vunpack.i.h.bf16 %v5235_v29 }
 0x3b6   : > { %3638 = vrot.lane.b32.xlu1 %v8508_v30, %s5435_s13 }
 0x3b7   : > { %v8570_v39 = vpop.permute.xlu0 %2956  ;;  %v3801_v59 = vsel %vm1850_vm10, %v7938_v28, %v5236_v22  ;;  %v3802_v20 = vsel %vm1850_vm10, %v7912_v16, %v5237_v43  ;;  %v3176_v28 = vsel %vm1204_vm6, %v9479_v44, %v8366_v13 }
 0x3b8   : > { %v5240_v36 = vpop.permute.xlu1 %5239  ;;  %v3206_v31 = vsel %vm1266_vm8, %v3176_v28, %v8372_v10 }
 0x3b9   : > { %v5241_v9 = vunpack.i.l.bf16 %v5240_v36  ;;  %3734 = vrot.lane.b32.xlu0 %v8574_v34, %s5434_s12  ;;  %v5242_v7 = vunpack.i.h.bf16 %v5240_v36 }
 0x3ba   : > { %5284 = vrot.lane.b32.xlu1 %v5283_v61, %s5430_s19  ;;  %v3237_v61 = vsel %vm3214_vm14, %v3206_v31, %v8377_v12 }
 0x3bb   : > { %v3621_v21 = vpop.permute.xlu0 %3620  ;;  %v3833_v35 = vsel %vm1916_vm12, %v3801_v59, %v5241_v9  ;;  %v3834_v29 = vsel %vm1916_vm12, %v3802_v20, %v5242_v7  ;;  %v8649_v13 = vsel %vm3245_vm15, %v3237_v61, %v8391_v45  ;;  %v9482_v20 = vld [vmem:[#allocation48_spill] sm:$0xff] }
 0x3bc   : > { %v3717_v5 = vpop.permute.xlu1 %3716  ;;  %v3866_v50 = vsel %vm3860_vm7, %v3833_v35, %v3621_v21  ;;  %v5308_v35 = vpack.i.bf16 %v8555_v49, %v7912_v16 }
 0x3bd   : > { %v3898_v1 = vsel %vm3245_vm15, %v3621_v21, %v3717_v5  ;;  %5289 = vrot.lane.b32.xlu0 %v5288_v63, %s5432_s28 }
 0x3be   : > { %4809 = vmatprep.mubr.msk.f32.mxu1 %vm3957_vm0, %v3898_v1  ;;  %3610 = vrot.lane.b32.xlu1 %v7912_v16, %s5435_s13  ;;  %v3177_v1 = vsel %vm1204_vm6, %v7731_v23, %v8395_v33 }
 0x3bf   : > { %v8591_v62 = vpop.permute.xlu0 %3116  ;;  %4144 = vmatmul.mubr.f32.gmra.mxu1 %v3866_v50  ;;  %v3207_v16 = vsel %vm1266_vm8, %v3177_v1, %v8407_v60 }
 0x3c0   : > { %v8593_v27 = vpop.permute.xlu1 %2638  ;;  %v3238_v23 = vsel %vm3214_vm14, %v3207_v16, %v8409_v56  ;;  %v5318_v56 = vpack.i.bf16 %v8610_v41, %v8574_v34 }
 0x3c1   : > { %3706 = vrot.lane.b32.xlu0 %v7972_v15, %s5434_s12  ;;  %v8682_v60 = vsel %vm3245_vm15, %v3238_v23, %v8417_v0  ;;  %v9480_v0 = vld [vmem:[#allocation27_spill] sm:$0xff] }
 0x3c2   : > { %3640 = vrot.lane.b32.xlu1 %v8555_v49, %s5435_s13 }
 0x3c3   : > { %v8606_v19 = vpop.permute.xlu0 %2798 }
 0x3c4   : > { %v8612_v4 = vpop.permute.xlu1 %2958 }
 0x3c5   : > { %3736 = vrot.lane.b32.xlu0 %v8610_v41, %s5434_s12 }
 0x3c6   : > { %5294 = vrot.lane.b32.xlu1 %v5293_v47, %s5430_s19 }
 0x3c7   : > { %v3623_v17 = vpop.permute.xlu0 %3622 }
 0x3c8   : > { %v3719_v32 = vpop.permute.xlu1 %3718  ;;  %v3867_v57 = vsel %vm3860_vm7, %v3834_v29, %v3623_v17 }
 0x3c9   : > { %v3899_v6 = vsel %vm3245_vm15, %v3623_v17, %v3719_v32  ;;  %5299 = vrot.lane.b32.xlu0 %v5298_v54, %s5432_s28  ;;  %v9481_v17 = vld [vmem:[#allocation37_spill] sm:$0xff] }
 0x3ca   : > { %4810 = vmatprep.mubr.msk.f32.mxu1 %vm3957_vm0, %v3899_v6  ;;  %3612 = vrot.lane.b32.xlu1 %v7982_v3, %s5435_s13  ;;  %v3178_v54 = vsel %vm1204_vm6, %v9481_v17, %v9480_v0 }
 0x3cb   : > { %v8633_v22 = vpop.permute.xlu0 %3118  ;;  %4149 = vmatmul.mubr.f32.gmra.mxu1 %v3867_v57  ;;  %v3208_v6 = vsel %vm1266_vm8, %v3178_v54, %v9482_v20  ;;  %v9483_v57 = vld [vmem:[#allocation15_spill] sm:$0xff] }
 0x3cc   : > { %v8637_v36 = vpop.permute.xlu1 %2640  ;;  %v3239_v29 = vsel %vm3214_vm14, %v3208_v6, %v8452_v52  ;;  %v3179_v44 = vsel %vm1204_vm6, %v9483_v57, %v8486_v51 }
 0x3cd   : > { %3708 = vrot.lane.b32.xlu0 %v8017_v40, %s5434_s12  ;;  %v8712_v31 = vsel %vm3245_vm15, %v3239_v29, %v8480_v55  ;;  %v3209_v61 = vsel %vm1266_vm8, %v3179_v44, %v8497_v14  ;;  %v9487_v29 = vld [vmem:[#allocation18_spill] sm:$0xff] }
 0x3ce   : > { %3642 = vrot.lane.b32.xlu1 %v8574_v34, %s5435_s13  ;;  %v3240_v51 = vsel %vm3214_vm14, %v3209_v61, %v8504_v46  ;;  %v9484_v46 = vld [vmem:[#allocation39_spill] sm:$0xff] }
 0x3cf   : > { %v8645_v9 = vpop.permute.xlu0 %2800 }
 0x3d0   : > { %v5245_v59 = vpop.permute.xlu1 %5244 }
 0x3d1   : > { %3738 = vrot.lane.b32.xlu0 %v8649_v13, %s5434_s12  ;;  %v5246_v10 = vunpack.i.l.bf16 %v5245_v59  ;;  %v5247_v47 = vunpack.i.h.bf16 %v5245_v59 }
 0x3d2   : > { %5304 = vrot.lane.b32.xlu1 %v5288_v63, %s5430_s19 }
 0x3d3   : > { %v8654_v21 = vpop.permute.xlu0 %2960  ;;  %v3803_v45 = vsel %vm1850_vm10, %v7982_v3, %v5246_v10  ;;  %v3804_v10 = vsel %vm1850_vm10, %v7972_v15, %v5247_v47 }
 0x3d4   : > { %v5250_v5 = vpop.permute.xlu1 %5249 }
 0x3d5   : > { %v5251_v12 = vunpack.i.l.bf16 %v5250_v5  ;;  %5309 = vrot.lane.b32.xlu0 %v5308_v35, %s5432_s28  ;;  %v5252_v32 = vunpack.i.h.bf16 %v5250_v5 }
 0x3d6   : > { %3614 = vrot.lane.b32.xlu1 %v7972_v15, %s5435_s13  ;;  %v8730_v15 = vsel %vm3245_vm15, %v3240_v51, %v8529_v42 }
 0x3d7   : > { %v3625_v63 = vpop.permute.xlu0 %3624  ;;  %v3835_v50 = vsel %vm1916_vm12, %v3803_v45, %v5251_v12  ;;  %v3836_v52 = vsel %vm1916_vm12, %v3804_v10, %v5252_v32  ;;  %v5328_v45 = vpack.i.bf16 %v8682_v60, %v8649_v13  ;;  %v5338_v17 = vpack.i.bf16 %v8730_v15, %v8712_v31 }
 0x3d8   : > { %v3721_v25 = vpop.permute.xlu1 %3720  ;;  %v3868_v3 = vsel %vm3860_vm7, %v3835_v50, %v3625_v63 }
 0x3d9   : > { %v3900_v58 = vsel %vm3245_vm15, %v3625_v63, %v3721_v25  ;;  %3710 = vrot.lane.b32.xlu0 %v8096_v8, %s5434_s12  ;;  %v3180_v63 = vsel %vm1204_vm6, %v9484_v46, %v8536_v38  ;;  %v9485_v25 = vld [vmem:[#allocation17_spill] sm:$0xff] }
 0x3da   : > { %4811 = vmatprep.mubr.msk.f32.mxu1 %vm3957_vm0, %v3900_v58  ;;  %3644 = vrot.lane.b32.xlu1 %v8610_v41, %s5435_s13  ;;  %v3210_v42 = vsel %vm1266_vm8, %v3180_v63, %v8549_v24  ;;  %v3181_v58 = vsel %vm1204_vm6, %v9485_v25, %v8593_v27  ;;  %v9489_v63 = vld [vmem:[#allocation42_spill] sm:$0xff] }
 0x3db   : > { %v8678_v33 = vpop.permute.xlu0 %3120  ;;  %4154 = vmatmul.mubr.f32.gmra.mxu1 %v3868_v3  ;;  %v3241_v16 = vsel %vm3214_vm14, %v3210_v42, %v8570_v39  ;;  %v3211_v23 = vsel %vm1266_vm8, %v3181_v58, %v8606_v19 }
 0x3dc   : > { %v8684_v18 = vpop.permute.xlu1 %2642  ;;  %v8756_v38 = vsel %vm3245_vm15, %v3241_v16, %v8591_v62  ;;  %v3242_v27 = vsel %vm3214_vm14, %v3211_v23, %v8612_v4 }
 0x3dd   : > { %3740 = vrot.lane.b32.xlu0 %v8682_v60, %s5434_s12  ;;  %v8771_v19 = vsel %vm3245_vm15, %v3242_v27, %v8633_v22  ;;  %v9486_v22 = vld [vmem:[#allocation41_spill] sm:$0xff]  ;;  %v3183_v57 = vsel %vm1204_vm6, %v9487_v29, %v8684_v18 }
 0x3de   : > { %5314 = vrot.lane.b32.xlu1 %v5313_v48, %s5430_s19  ;;  %v3182_v32 = vsel %vm1204_vm6, %v9486_v22, %v8637_v36  ;;  %v5348_v51 = vpack.i.bf16 %v8771_v19, %v8756_v38 }
 0x3df   : > { %v8691_v43 = vpop.permute.xlu0 %2802  ;;  %v3212_v20 = vsel %vm1266_vm8, %v3182_v32, %v8645_v9 }
 0x3e0   : > { %v8695_v7 = vpop.permute.xlu1 %2962  ;;  %v3243_v6 = vsel %vm3214_vm14, %v3212_v20, %v8654_v21  ;;  %v3213_v36 = vsel %vm1266_vm8, %v3183_v57, %v8691_v43 }
 0x3e1   : > { %5319 = vrot.lane.b32.xlu0 %v5318_v56, %s5432_s28  ;;  %v3244_v21 = vsel %vm3214_vm14, %v3213_v36, %v8695_v7 }
 0x3e2   : > { %3646 = vrot.lane.b32.xlu1 %v8649_v13, %s5435_s13 }
 0x3e3   : > { %v3627_v28 = vpop.permute.xlu0 %3626 }
 0x3e4   : > { %v3723_v59 = vpop.permute.xlu1 %3722  ;;  %v3869_v55 = vsel %vm3860_vm7, %v3836_v52, %v3627_v28 }
 0x3e5   : > { %v3901_v35 = vsel %vm3245_vm15, %v3627_v28, %v3723_v59  ;;  %3742 = vrot.lane.b32.xlu0 %v8712_v31, %s5434_s12  ;;  %v8796_v28 = vsel %vm3245_vm15, %v3243_v6, %v8678_v33 }
 0x3e6   : > { %4812 = vmatprep.mubr.msk.f32.mxu1 %vm3957_vm0, %v3901_v35  ;;  %3648 = vrot.lane.b32.xlu1 %v8682_v60, %s5435_s13 }
 0x3e7   : > { %v3123_v14 = vpop.permute.xlu0 %3122  ;;  %4159 = vmatmul.mubr.f32.gmra.mxu1 %v3869_v55 }
 0x3e8   : > { %v8732_v5 = vpop.permute.xlu1 %3283  ;;  %v8807_v10 = vsel %vm3245_vm15, %v3244_v21, %v3123_v14 }
 0x3e9   : > { %3744 = vrot.lane.b32.xlu0 %v8730_v15, %s5434_s12 }
 0x3ea   : > { %5324 = vrot.lane.b32.xlu1 %v5318_v56, %s5430_s19 }
 0x3eb   : > { %v8737_v12 = vpop.permute.xlu0 %3294 }
 0x3ec   : > { %v5255_v1 = vpop.permute.xlu1 %5254 }
 0x3ed   : > { %5329 = vrot.lane.b32.xlu0 %v5328_v45, %s5432_s28  ;;  %v5256_v50 = vunpack.i.l.bf16 %v5255_v1  ;;  %v5257_v61 = vunpack.i.h.bf16 %v5255_v1 }
 0x3ee   : > { %3650 = vrot.lane.b32.xlu1 %v8712_v31, %s5435_s13 }
 0x3ef   : > { %v3306_v3 = vpop.permute.xlu0 %3305  ;;  %v3805_v39 = vsel %vm1850_vm10, %v8017_v40, %v5256_v50  ;;  %v3806_v43 = vsel %vm1850_vm10, %v8096_v8, %v5257_v61  ;;  %v9488_v8 = vld [vmem:[#allocation20_spill] sm:$0xff] }
 0x3f0   : > { %v5260_v24 = vpop.permute.xlu1 %5259 }
 0x3f1   : > { %v5261_v48 = vunpack.i.l.bf16 %v5260_v24  ;;  %3746 = vrot.lane.b32.xlu0 %v8756_v38, %s5434_s12  ;;  %v5262_v59 = vunpack.i.h.bf16 %v5260_v24 }
 0x3f2   : > { %3652 = vrot.lane.b32.xlu1 %v8730_v15, %s5435_s13 }
 0x3f3   : > { %v3629_v56 = vpop.permute.xlu0 %3628  ;;  %v3837_v62 = vsel %vm1916_vm12, %v3805_v39, %v5261_v48  ;;  %v3838_v52 = vsel %vm1916_vm12, %v3806_v43, %v5262_v59  ;;  %v9490_v39 = vld [vmem:[#allocation36_spill] sm:$0xff]  ;;  %v9493_v43 = vld [vmem:[#allocation19_spill] sm:$0xff] }
 0x3f4   : > { %v3725_v47 = vpop.permute.xlu1 %3724  ;;  %v3870_v40 = vsel %vm3860_vm7, %v3837_v62, %v3629_v56  ;;  %v5358_v62 = vpack.i.bf16 %v8807_v10, %v8796_v28 }
 0x3f5   : > { %v3902_v0 = vsel %vm3245_vm15, %v3629_v56, %v3725_v47  ;;  %3748 = vrot.lane.b32.xlu0 %v8771_v19, %s5434_s12 }
 0x3f6   : > { %4813 = vmatprep.mubr.msk.f32.mxu1 %vm3957_vm0, %v3902_v0  ;;  %5334 = vrot.lane.b32.xlu1 %v5328_v45, %s5430_s19  ;;  %v3322_v45 = vsel %vm1204_vm6, %v9488_v8, %v8732_v5 }
 0x3f7   : > { %v3317_v4 = vpop.permute.xlu0 %3316  ;;  %4164 = vmatmul.mubr.f32.gmra.mxu1 %v3870_v40  ;;  %v3324_v1 = vsel %vm1266_vm8, %v3322_v45, %v8737_v12  ;;  %v9491_v40 = vld [vmem:[#allocation6_spill] sm:$0xff] }
 0x3f8   : > { %v3286_v54 = vpop.permute.xlu1 %3285  ;;  %v3326_v46 = vsel %vm3214_vm14, %v3324_v1, %v3306_v3 }
 0x3f9   : > { %5339 = vrot.lane.b32.xlu0 %v5338_v17, %s5432_s28  ;;  %v3323_v42 = vsel %vm1204_vm6, %v9489_v63, %v3286_v54  ;;  %v3328_v16 = vsel %vm3245_vm15, %v3326_v46, %v3317_v4 }
 0x3fa   : > { %3654 = vrot.lane.b32.xlu1 %v8756_v38, %s5435_s13 }
 0x3fb   : > { %v3297_v44 = vpop.permute.xlu0 %3296 }
 0x3fc   : > { %v3308_v9 = vpop.permute.xlu1 %3307  ;;  %v3325_v25 = vsel %vm1266_vm8, %v3323_v42, %v3297_v44 }
 0x3fd   : > { %3750 = vrot.lane.b32.xlu0 %v8796_v28, %s5434_s12  ;;  %v3327_v12 = vsel %vm3214_vm14, %v3325_v25, %v3308_v9  ;;  %v9492_v9 = vld [vmem:[#allocation45_spill] sm:$0xff]  ;;  %v9494_v25 = vld [vmem:[#allocation38_spill] sm:$0xff] }
 0x3fe   : > { %3656 = vrot.lane.b32.xlu1 %v8771_v19, %s5435_s13 }
 0x3ff   : > { %v3631_v18 = vpop.permute.xlu0 %3630 }
 0x400   : > { %v3727_v33 = vpop.permute.xlu1 %3726  ;;  %v3871_v7 = vsel %vm3860_vm7, %v3838_v52, %v3631_v18 }
 0x401   : > { %v3903_v35 = vsel %vm3245_vm15, %v3631_v18, %v3727_v33  ;;  %3752 = vrot.lane.b32.xlu0 %v8807_v10, %s5434_s12 }
 0x402   : > { %4814 = vmatprep.mubr.msk.f32.mxu1 %vm3957_vm0, %v3903_v35  ;;  %5344 = vrot.lane.b32.xlu1 %v5338_v17, %s5430_s19 }
 0x403   : > { %v3319_v55 = vpop.permute.xlu0 %3318  ;;  %4169 = vmatmul.mubr.f32.gmra.mxu1 %v3871_v7 }
 0x404   : > { %v3338_v14 = vpop.permute.xlu1 %3337  ;;  %v3329_v3 = vsel %vm3245_vm15, %v3327_v12, %v3319_v55 }
 0x405   : > { %5349 = vrot.lane.b32.xlu0 %v5348_v51, %s5432_s28  ;;  %v3376_v4 = vsel %vm1204_vm6, %v9491_v40, %v3338_v14  ;;  %v5368_v46 = vpack.i.bf16 %v3329_v3, %v3328_v16 }
 0x406   : > { %3658 = vrot.lane.b32.xlu1 %v8796_v28, %s5435_s13 }
 0x407   : > { %v3349_v50 = vpop.permute.xlu0 %3348 }
 0x408   : > { %v5265_v58 = vpop.permute.xlu1 %5264  ;;  %v3378_v54 = vsel %vm1266_vm8, %v3376_v4, %v3349_v50 }
 0x409   : > { %3754 = vrot.lane.b32.xlu0 %v3328_v16, %s5434_s12  ;;  %v5266_v5 = vunpack.i.l.bf16 %v5265_v58  ;;  %v5267_v44 = vunpack.i.h.bf16 %v5265_v58 }
 0x40a   : > { %3660 = vrot.lane.b32.xlu1 %v8807_v10, %s5435_s13 }
 0x40b   : > { %v3360_v23 = vpop.permute.xlu0 %3359  ;;  %v3807_v27 = vsel %vm1850_vm10, %v9490_v39, %v5266_v5  ;;  %v3808_v35 = vsel %vm1850_vm10, %v9493_v43, %v5267_v44 }
 0x40c   : > { %v5270_v24 = vpop.permute.xlu1 %5269  ;;  %v3380_v32 = vsel %vm3214_vm14, %v3378_v54, %v3360_v23 }
 0x40d   : > { %v5271_v48 = vunpack.i.l.bf16 %v5270_v24  ;;  %3756 = vrot.lane.b32.xlu0 %v3329_v3, %s5434_s12  ;;  %v5272_v61 = vunpack.i.h.bf16 %v5270_v24  ;;  %v5373_v24 = vpack.i.bf16 %v8464_v26, %v8566_v11 }
 0x40e   : > { %5354 = vrot.lane.b32.xlu1 %v5348_v51, %s5430_s19 }
 0x40f   : > { %v3633_v56 = vpop.permute.xlu0 %3632  ;;  %v3839_v47 = vsel %vm1916_vm12, %v3807_v27, %v5271_v48  ;;  %v3840_v7 = vsel %vm1916_vm12, %v3808_v35, %v5272_v61 }
 0x410   : > { %v3729_v0 = vpop.permute.xlu1 %3728  ;;  %v3872_v22 = vsel %vm3860_vm7, %v3839_v47, %v3633_v56 }
 0x411   : > { %v3904_v17 = vsel %vm3245_vm15, %v3633_v56, %v3729_v0  ;;  %5359 = vrot.lane.b32.xlu0 %v5358_v62, %s5432_s28  ;;  %v9495_v56 = vld [vmem:[#allocation40_spill] sm:$0xff] }
 0x412   : > { %3662 = vrot.lane.b32.xlu1 %v3328_v16, %s5435_s13  ;;  %4815 = vmatprep.mubr.msk.f32.mxu1 %vm3957_vm0, %v3904_v17 }
 0x413   : > { %v3371_v20 = vpop.permute.xlu0 %3370  ;;  %4174 = vmatmul.mubr.f32.gmra.mxu1 %v3872_v22 }
 0x414   : > { %v3382_v6 = vsel %vm3245_vm15, %v3380_v32, %v3371_v20  ;;  %v3340_v29 = vpop.permute.xlu1 %3339 }
 0x415   : > { %3758 = vrot.lane.b32.xlu0 %v3382_v6, %s5434_s12  ;;  %v3377_v59 = vsel %vm1204_vm6, %v9492_v9, %v3340_v29 }
 0x416   : > { %3664 = vrot.lane.b32.xlu1 %v3329_v3, %s5435_s13 }
 0x417   : > { %v3351_v57 = vpop.permute.xlu0 %3350 }
 0x418   : > { %v3362_v36 = vpop.permute.xlu1 %3361  ;;  %v3379_v18 = vsel %vm1266_vm8, %v3377_v59, %v3351_v57 }
 0x419   : > { %v3381_v51 = vsel %vm3214_vm14, %v3379_v18, %v3362_v36 }
 0x41a   : > { %5364 = vrot.lane.b32.xlu1 %v5358_v62, %s5430_s19 }
 0x41b   : > { %v3635_v21 = vpop.permute.xlu0 %3634 }
 0x41c   : > { %v3731_v33 = vpop.permute.xlu1 %3730  ;;  %v3873_v55 = vsel %vm3860_vm7, %v3840_v7, %v3635_v21 }
 0x41d   : > { %v3905_v52 = vsel %vm3245_vm15, %v3635_v21, %v3731_v33  ;;  %v9496_v21 = vld [vmem:[#allocation43_spill] sm:$0xff] }
 0x41e   : > { %3666 = vrot.lane.b32.xlu1 %v3382_v6, %s5435_s13  ;;  %4816 = vmatprep.mubr.msk.f32.mxu1 %vm3957_vm0, %v3905_v52 }
 0x41f   : > { %v3373_v14 = vpop.permute.xlu0 %3372  ;;  %4179 = vmatmul.mubr.f32.gmra.mxu1 %v3873_v55 }
 0x420   : > { %v3383_v8 = vsel %vm3245_vm15, %v3381_v51, %v3373_v14  ;;  %v5275_v45 = vpop.permute.xlu1 %5274 }
 0x421   : > { %v5276_v1 = vunpack.i.l.bf16 %v5275_v45  ;;  %3760 = vrot.lane.b32.xlu0 %v3383_v8, %s5434_s12  ;;  %v5277_v12 = vunpack.i.h.bf16 %v5275_v45 }
 0x422   : > { %3668 = vrot.lane.b32.xlu1 %v3383_v8, %s5435_s13 }
 0x423   : > { %v5280_v63 = vpop.permute.xlu0 %5279  ;;  %v3809_v58 = vsel %vm1850_vm10, %v9494_v25, %v5276_v1  ;;  %v3810_v62 = vsel %vm1850_vm10, %v9495_v56, %v5277_v12 }
 0x424   : > { %v5281_v42 = vunpack.i.l.bf16 %v5280_v63  ;;  %v3637_v50 = vpop.permute.xlu1 %3636  ;;  %v5282_v48 = vunpack.i.h.bf16 %v5280_v63 }
 0x425   : > { %5369 = vrot.lane.b32.xlu0 %v5368_v46, %s5432_s28 }
 0x426   : > { %3574 = vrot.lane.b32.xlu1 %v3382_v6, %s5432_s28  ;;  %v3841_v5 = vsel %vm1916_vm12, %v3809_v58, %v5281_v42  ;;  %v3842_v40 = vsel %vm1916_vm12, %v3810_v62, %v5282_v48 }
 0x427   : > { %v3733_v23 = vpop.permute.xlu0 %3732  ;;  %v3874_v39 = vsel %vm3860_vm7, %v3841_v5, %v3637_v50  ;;  %v9497_v5 = vld [vmem:[#allocation46_spill] sm:$0xff] }
 0x428   : > { %v3906_v16 = vsel %vm3245_vm15, %v3637_v50, %v3733_v23  ;;  %v3639_v3 = vpop.permute.xlu1 %3638 }
 0x429   : > { %5374 = vrot.lane.b32.xlu0 %v5373_v24, %s5434_s12  ;;  %4817 = vmatprep.mubr.msk.f32.mxu1 %vm3957_vm0, %v3906_v16  ;;  %v3875_v17 = vsel %vm3860_vm7, %v3842_v40, %v3639_v3 }
 0x42a   : > { %3576 = vrot.lane.b32.xlu1 %v3383_v8, %s5432_s28  ;;  %4184 = vmatmul.mubr.f32.gmra.mxu1 %v3874_v39 }
 0x42b   : > { %v3735_v27 = vpop.permute.xlu0 %3734 }
 0x42c   : > { %v3907_v47 = vsel %vm3245_vm15, %v3639_v3, %v3735_v27  ;;  %v5285_v0 = vpop.permute.xlu1 %5284 }
 0x42d   : > { %v5286_v4 = vunpack.i.l.bf16 %v5285_v0  ;;  %5379 = vrot.lane.b32.xlu0 %v5368_v46, %s5430_s19  ;;  %4818 = vmatprep.mubr.msk.f32.mxu1 %vm3957_vm0, %v3907_v47  ;;  %v5287_v29 = vunpack.i.h.bf16 %v5285_v0 }
 0x42e   : > { %4189 = vmatmul.mubr.f32.gmra.mxu1 %v3875_v17 }
 0x42f   : > { %v5290_v54 = vpop.permute.xlu0 %5289  ;;  %v3796_v20 = vsel %vm1850_vm10, %v8566_v11, %v5286_v4  ;;  %v3811_v18 = vsel %vm1850_vm10, %v9496_v21, %v5287_v29 }
 0x430   : > { %v5291_v22 = vunpack.i.l.bf16 %v5290_v54  ;;  %v3611_v32 = vpop.permute.xlu1 %3610  ;;  %v5292_v44 = vunpack.i.h.bf16 %v5290_v54 }
 0x431   : > { %3670 = vrot.lane.b32.xlu0 %v8566_v11, %s5435_s13 }
 0x432   : > { %v3828_v6 = vsel %vm1916_vm12, %v3796_v20, %v5291_v22  ;;  %v3843_v35 = vsel %vm1916_vm12, %v3811_v18, %v5292_v44 }
 0x433   : > { %v3707_v57 = vpop.permute.xlu0 %3706  ;;  %v3861_v9 = vsel %vm3860_vm7, %v3828_v6, %v3611_v32 }
 0x434   : > { %v3893_v36 = vsel %vm3245_vm15, %v3611_v32, %v3707_v57  ;;  %v3641_v61 = vpop.permute.xlu1 %3640 }
 0x435   : > { %3672 = vrot.lane.b32.xlu0 %v8464_v26, %s5435_s13  ;;  %4804 = vmatprep.mubr.msk.f32.mxu0 %vm3957_vm0, %v3893_v36  ;;  %v3876_v7 = vsel %vm3860_vm7, %v3843_v35, %v3641_v61 }
 0x436   : > { %4119 = vmatmul.mubr.f32.vlgmr.msra.gmra.mxu0 %v3861_v9 }
 0x437   : > { %v3737_v59 = vpop.permute.xlu0 %3736 }
 0x438   : > { %v3908_v33 = vsel %vm3245_vm15, %v3641_v61, %v3737_v59  ;;  %v5295_v43 = vpop.permute.xlu1 %5294 }
 0x439   : > { %v5296_v52 = vunpack.i.l.bf16 %v5295_v43  ;;  %4819 = vmatprep.mubr.msk.f32.mxu1 %vm3957_vm0, %v3908_v33  ;;  %v5297_v1 = vunpack.i.h.bf16 %v5295_v43 }
 0x43a   : > { %4194 = vmatmul.mubr.f32.gmra.mxu1 %v3876_v7 }
 0x43b   : > { %v5300_v55 = vpop.permute.xlu0 %5299  ;;  %v3797_v8 = vsel %vm1850_vm10, %v8464_v26, %v5296_v52  ;;  %v3812_v12 = vsel %vm1850_vm10, %v9497_v5, %v5297_v1 }
 0x43c   : > { %v5301_v51 = vunpack.i.l.bf16 %v5300_v55  ;;  %v3613_v14 = vpop.permute.xlu1 %3612  ;;  %v5302_v63 = vunpack.i.h.bf16 %v5300_v55 }
 0x43e   : > { %v3829_v45 = vsel %vm1916_vm12, %v3797_v8, %v5301_v51  ;;  %v3844_v24 = vsel %vm1916_vm12, %v3812_v12, %v5302_v63 }
 0x43f   : > { %v3709_v46 = vpop.permute.xlu0 %3708  ;;  %v3862_v25 = vsel %vm3860_vm7, %v3829_v45, %v3613_v14 }
 0x440   : > { %v3894_v42 = vsel %vm3245_vm15, %v3613_v14, %v3709_v46  ;;  %v3643_v50 = vpop.permute.xlu1 %3642 }
 0x441   : > { %4805 = vmatprep.mubr.msk.f32.mxu0 %vm3957_vm0, %v3894_v42  ;;  %v3877_v16 = vsel %vm3860_vm7, %v3844_v24, %v3643_v50 }
 0x442   : > { %4124 = vmatmul.mubr.f32.gmra.mxu0 %v3862_v25 }
 0x443   : > { %v3739_v58 = vpop.permute.xlu0 %3738 }
 0x444   : > { %v3909_v23 = vsel %vm3245_vm15, %v3643_v50, %v3739_v58  ;;  %v5305_v26 = vpop.permute.xlu1 %5304 }
 0x445   : > { %v5306_v48 = vunpack.i.l.bf16 %v5305_v26  ;;  %4820 = vmatprep.mubr.msk.f32.mxu1 %vm3957_vm0, %v3909_v23  ;;  %v5307_v47 = vunpack.i.h.bf16 %v5305_v26 }
 0x446   : > { %4199 = vmatmul.mubr.f32.gmra.mxu1 %v3877_v16 }
 0x447   : > { %v5310_v3 = vpop.permute.xlu0 %5309  ;;  %v3798_v56 = vsel %vm1850_vm10, %v8566_v11, %v5306_v48  ;;  %v3813_v32 = vsel %vm1850_vm10, %v8358_v53, %v5307_v47 }
 0x448   : > { %v5311_v39 = vunpack.i.l.bf16 %v5310_v3  ;;  %v3615_v27 = vpop.permute.xlu1 %3614  ;;  %v5312_v40 = vunpack.i.h.bf16 %v5310_v3 }
 0x44a   : > { %v3830_v62 = vsel %vm1916_vm12, %v3798_v56, %v5311_v39  ;;  %v3845_v6 = vsel %vm1916_vm12, %v3813_v32, %v5312_v40 }
 0x44b   : > { %v3711_v0 = vpop.permute.xlu0 %3710  ;;  %v3863_v54 = vsel %vm3860_vm7, %v3830_v62, %v3615_v27 }
 0x44c   : > { %v3895_v4 = vsel %vm3245_vm15, %v3615_v27, %v3711_v0  ;;  %v3645_v17 = vpop.permute.xlu1 %3644 }
 0x44d   : > { %4806 = vmatprep.mubr.msk.f32.mxu0 %vm3957_vm0, %v3895_v4  ;;  %v3878_v57 = vsel %vm3860_vm7, %v3845_v6, %v3645_v17 }
 0x44e   : > { %4129 = vmatmul.mubr.f32.gmra.mxu0 %v3863_v54 }
 0x44f   : > { %v3741_v22 = vpop.permute.xlu0 %3740 }
 0x450   : > { %v3910_v20 = vsel %vm3245_vm15, %v3645_v17, %v3741_v22  ;;  %v5315_v11 = vpop.permute.xlu1 %5314 }
 0x451   : > { %v5316_v29 = vunpack.i.l.bf16 %v5315_v11  ;;  %4821 = vmatprep.mubr.msk.f32.mxu1 %vm3957_vm0, %v3910_v20  ;;  %v5317_v53 = vunpack.i.h.bf16 %v5315_v11 }
 0x452   : > { %4204 = vmatmul.mubr.f32.gmra.mxu1 %v3878_v57 }
 0x453   : > { %v5320_v44 = vpop.permute.xlu0 %5319  ;;  %v3814_v9 = vsel %vm1850_vm10, %v8399_v37, %v5316_v29  ;;  %v3815_v7 = vsel %vm1850_vm10, %v8461_v2, %v5317_v53 }
 0x454   : > { %v5321_v36 = vunpack.i.l.bf16 %v5320_v44  ;;  %v3647_v61 = vpop.permute.xlu1 %3646  ;;  %v5322_v18 = vunpack.i.h.bf16 %v5320_v44 }
 0x456   : > { %v3846_v59 = vsel %vm1916_vm12, %v3814_v9, %v5321_v36  ;;  %v3847_v51 = vsel %vm1916_vm12, %v3815_v7, %v5322_v18 }
 0x457   : > { %v3743_v21 = vpop.permute.xlu0 %3742  ;;  %v3879_v35 = vsel %vm3860_vm7, %v3846_v59, %v3647_v61 }
 0x458   : > { %v3911_v33 = vsel %vm3245_vm15, %v3647_v61, %v3743_v21  ;;  %v3649_v43 = vpop.permute.xlu1 %3648 }
 0x459   : > { %4822 = vmatprep.mubr.msk.f32.mxu1 %vm3957_vm0, %v3911_v33  ;;  %v3880_v8 = vsel %vm3860_vm7, %v3847_v51, %v3649_v43 }
 0x45a   : > { %4209 = vmatmul.mubr.f32.gmra.mxu1 %v3879_v35 }
 0x45b   : > { %v3745_v52 = vpop.permute.xlu0 %3744 }
 0x45c   : > { %v3912_v55 = vsel %vm3245_vm15, %v3649_v43, %v3745_v52  ;;  %v5325_v37 = vpop.permute.xlu1 %5324 }
 0x45d   : > { %v5326_v14 = vunpack.i.l.bf16 %v5325_v37  ;;  %4823 = vmatprep.mubr.msk.f32.mxu1 %vm3957_vm0, %v3912_v55  ;;  %v5327_v2 = vunpack.i.h.bf16 %v5325_v37 }
 0x45e   : > { %4214 = vmatmul.mubr.f32.gmra.mxu1 %v3880_v8 }
 0x45f   : > { %v5330_v45 = vpop.permute.xlu0 %5329  ;;  %v3816_v63 = vsel %vm1850_vm10, %v8508_v30, %v5326_v14  ;;  %v3817_v30 = vsel %vm1850_vm10, %v8555_v49, %v5327_v2 }
 0x460   : > { %v5331_v1 = vunpack.i.l.bf16 %v5330_v45  ;;  %v3651_v46 = vpop.permute.xlu1 %3650  ;;  %v5332_v58 = vunpack.i.h.bf16 %v5330_v45 }
 0x462   : > { %v3848_v42 = vsel %vm1916_vm12, %v3816_v63, %v5331_v1  ;;  %v3849_v3 = vsel %vm1916_vm12, %v3817_v30, %v5332_v58  ;;  %v4311_v58 = vld [vmem:[%s9253_s5] sm:$0xff] }
 0x463   : > { %v8946_v50 = vpop.f32.mrf.mxu1  ;;  %v3747_v25 = vpop.permute.xlu0 %3746  ;;  %v3881_v26 = vsel %vm3860_vm7, %v3848_v42, %v3651_v46 }
 0x464   : > { %v3913_v5 = vsel %vm3245_vm15, %v3651_v46, %v3747_v25  ;;  %v3653_v12 = vpop.permute.xlu1 %3652 }
 0x465   : > { %v4137_v23 = vpop.f32.mrf.mxu1  ;;  %4824 = vmatprep.mubr.msk.f32.mxu1 %vm3957_vm0, %v3913_v5  ;;  %v3882_v27 = vsel %vm3860_vm7, %v3849_v3, %v3653_v12 }
 0x466   : > { %4219 = vmatmul.mubr.f32.gmra.mxu1 %v3881_v26 }
 0x467   : > { %v3749_v24 = vpop.permute.xlu0 %3748 }
 0x468   : > { %v3914_v48 = vsel %vm3245_vm15, %v3653_v12, %v3749_v24  ;;  %v5335_v16 = vpop.permute.xlu1 %5334 }
 0x469   : > { %v5336_v39 = vunpack.i.l.bf16 %v5335_v16  ;;  %4825 = vmatprep.mubr.msk.f32.mxu1 %vm3957_vm0, %v3914_v48  ;;  %v5337_v49 = vunpack.i.h.bf16 %v5335_v16 }
 0x46a   : > { %4224 = vmatmul.mubr.f32.gmra.mxu1 %v3882_v27 }
 0x46b   : > { %v5340_v56 = vpop.permute.xlu0 %5339  ;;  %v3818_v0 = vsel %vm1850_vm10, %v8574_v34, %v5336_v39  ;;  %v3819_v34 = vsel %vm1850_vm10, %v8610_v41, %v5337_v49 }
 0x46c   : > { %v5341_v62 = vunpack.i.l.bf16 %v5340_v56  ;;  %v3655_v47 = vpop.permute.xlu1 %3654  ;;  %v5342_v54 = vunpack.i.h.bf16 %v5340_v56 }
 0x46e   : > { %v3850_v40 = vsel %vm1916_vm12, %v3818_v0, %v5341_v62  ;;  %v3851_v44 = vsel %vm1916_vm12, %v3819_v34, %v5342_v54 }
 0x46f   : > { %v8960_v4 = vpop.f32.mrf.mxu1  ;;  %v3751_v17 = vpop.permute.xlu0 %3750  ;;  %v3883_v11 = vsel %vm3860_vm7, %v3850_v40, %v3655_v47 }
 0x470   : > { %v3915_v22 = vsel %vm3245_vm15, %v3655_v47, %v3751_v17  ;;  %v3657_v32 = vpop.permute.xlu1 %3656 }
 0x471   : > { %v4142_v20 = vpop.f32.mrf.mxu1  ;;  %4826 = vmatprep.mubr.msk.f32.mxu1 %vm3957_vm0, %v3915_v22  ;;  %v3884_v61 = vsel %vm3860_vm7, %v3851_v44, %v3657_v32 }
 0x472   : > { %4229 = vmatmul.mubr.f32.gmra.mxu1 %v3883_v11 }
 0x473   : > { %v3753_v6 = vpop.permute.xlu0 %3752 }
 0x474   : > { %v3916_v29 = vsel %vm3245_vm15, %v3657_v32, %v3753_v6  ;;  %v5345_v57 = vpop.permute.xlu1 %5344 }
 0x475   : > { %v5346_v36 = vunpack.i.l.bf16 %v5345_v57  ;;  %4827 = vmatprep.mubr.msk.f32.mxu1 %vm3957_vm0, %v3916_v29  ;;  %v5347_v41 = vunpack.i.h.bf16 %v5345_v57 }
 0x476   : > { %4234 = vmatmul.mubr.f32.gmra.mxu1 %v3884_v61 }
 0x477   : > { %v5350_v9 = vpop.permute.xlu0 %5349  ;;  %v3820_v21 = vsel %vm1850_vm10, %v8649_v13, %v5346_v36  ;;  %v3821_v51 = vsel %vm1850_vm10, %v8682_v60, %v5347_v41  ;;  %v4312_v60 = vld [vmem:[%s9253_s5 + $0x8] sm:$0xff] }
 0x478   : > { %v5351_v59 = vunpack.i.l.bf16 %v5350_v9  ;;  %v3659_v53 = vpop.permute.xlu1 %3658  ;;  %v5352_v43 = vunpack.i.h.bf16 %v5350_v9  ;;  %5026 = vmatprep.subr.mxu0 %v4312_v60 }
 0x479   : > { %5027 = vmatpush3.msra.mxu0 %v4312_v60 }
 0x47a   : > { %v3852_v18 = vsel %vm1916_vm12, %v3820_v21, %v5351_v59  ;;  %v3853_v8 = vsel %vm1916_vm12, %v3821_v51, %v5352_v43  ;;  %5028 = vmatprep.subr.mxu0 %v4311_v58 }
 0x47b   : > { %v3755_v33 = vpop.permute.xlu0 %3754  ;;  %v3885_v7 = vsel %vm3860_vm7, %v3852_v18, %v3659_v53  ;;  %5029 = vmatpush3.msra.mxu0 %v4311_v58 }
 0x47c   : > { %v3917_v35 = vsel %vm3245_vm15, %v3659_v53, %v3755_v33  ;;  %v3661_v52 = vpop.permute.xlu1 %3660 }
 0x47d   : > { %4828 = vmatprep.mubr.msk.f32.mxu1 %vm3957_vm0, %v3917_v35  ;;  %v3886_v46 = vsel %vm3860_vm7, %v3853_v8, %v3661_v52 }
 0x47e   : > { %4239 = vmatmul.mubr.f32.gmra.mxu1 %v3885_v7 }
 0x47f   : > { %v8977_v55 = vpop.f32.mrf.mxu1  ;;  %v3757_v37 = vpop.permute.xlu0 %3756 }
 0x480   : > { %v3918_v13 = vsel %vm3245_vm15, %v3661_v52, %v3757_v37  ;;  %v5355_v14 = vpop.permute.xlu1 %5354 }
 0x481   : > { %v5356_v45 = vunpack.i.l.bf16 %v5355_v14  ;;  %v4147_v1 = vpop.f32.mrf.mxu1  ;;  %4829 = vmatprep.mubr.msk.f32.mxu1 %vm3957_vm0, %v3918_v13  ;;  %v5357_v48 = vunpack.i.h.bf16 %v5355_v14 }
 0x482   : > { %4244 = vmatmul.mubr.f32.gmra.mxu1 %v3886_v46 }
 0x483   : > { %v5360_v63 = vpop.permute.xlu0 %5359  ;;  %v3822_v25 = vsel %vm1850_vm10, %v8712_v31, %v5356_v45  ;;  %v3823_v27 = vsel %vm1850_vm10, %v8730_v15, %v5357_v48 }
 0x484   : > { %v5361_v42 = vunpack.i.l.bf16 %v5360_v63  ;;  %v3663_v2 = vpop.permute.xlu1 %3662  ;;  %v5362_v16 = vunpack.i.h.bf16 %v5360_v63 }
 0x486   : > { %v3854_v5 = vsel %vm1916_vm12, %v3822_v25, %v5361_v42  ;;  %v3855_v62 = vsel %vm1916_vm12, %v3823_v27, %v5362_v16 }
 0x487   : > { %v3759_v12 = vpop.permute.xlu0 %3758  ;;  %v3887_v31 = vsel %vm3860_vm7, %v3854_v5, %v3663_v2 }
 0x488   : > { %v3919_v23 = vsel %vm3245_vm15, %v3663_v2, %v3759_v12  ;;  %v3665_v26 = vpop.permute.xlu1 %3664 }
 0x489   : > { %4830 = vmatprep.mubr.msk.f32.mxu1 %vm3957_vm0, %v3919_v23  ;;  %v3888_v47 = vsel %vm3860_vm7, %v3855_v62, %v3665_v26 }
 0x48a   : > { %4249 = vmatmul.mubr.f32.gmra.mxu1 %v3887_v31  ;;  %v9034_v31 = vld [vmem:[%s9252_s4] ss:$0 sm:$0xff] }
 0x48b   : > { %v8997_v24 = vpop.f32.mrf.mxu1 }
 0x48c   : > { %v5365_v3 = vpop.permute.xlu1 %5364 }
 0x48d   : > { %v4152_v30 = vpop.f32.mrf.mxu1  ;;  %v5366_v0 = vunpack.i.l.bf16 %v5365_v3  ;;  %v5367_v54 = vunpack.i.h.bf16 %v5365_v3 }
 0x48f   : > { %v3824_v15 = vsel %vm1850_vm10, %v8756_v38, %v5366_v0  ;;  %v3825_v9 = vsel %vm1850_vm10, %v8771_v19, %v5367_v54  ;;  %v4141_v54 = vadd.f32 %v9034_v31, %v8960_v4 }
 0x490   : > { %v3667_v40 = vpop.permute.xlu1 %3666 }
 0x493   : > { %v3761_v39 = vpop.permute.xlu0 %3760 }
 0x494   : > { %v3920_v56 = vsel %vm3245_vm15, %v3665_v26, %v3761_v39  ;;  %v3669_v29 = vpop.permute.xlu1 %3668 }
 0x495   : > { %4831 = vmatprep.mubr.msk.f32.mxu1 %vm3957_vm0, %v3920_v56 }
 0x496   : > { %4254 = vmatmul.mubr.f32.gmra.mxu1 %v3888_v47 }
 0x497   : > { %v5370_v49 = vpop.permute.xlu0 %5369 }
 0x498   : > { %v5371_v17 = vunpack.i.l.bf16 %v5370_v49  ;;  %v5372_v20 = vunpack.i.h.bf16 %v5370_v49  ;;  %v3575_v18 = vpop.permute.xlu1 %3574  ;;  %v4136_v49 = vadd.f32 %v9034_v31, %v8946_v50 }
 0x49a   : > { %v3856_v34 = vsel %vm1916_vm12, %v3824_v15, %v5371_v17  ;;  %v3857_v53 = vsel %vm1916_vm12, %v3825_v9, %v5372_v20 }
 0x49b   : > { %v9005_v22 = vpop.f32.mrf.mxu1  ;;  %v5375_v32 = vpop.permute.xlu0 %5374  ;;  %v3889_v61 = vsel %vm3860_vm7, %v3856_v34, %v3667_v40  ;;  %v3890_v43 = vsel %vm3860_vm7, %v3857_v53, %v3669_v29 }
 0x49c   : > { %v5377_v11 = vunpack.i.h.bf16 %v5375_v32  ;;  %v5376_v6 = vunpack.i.l.bf16 %v5375_v32  ;;  %v3577_v13 = vpop.permute.xlu1 %3576 }
 0x49d   : > { %v4157_v57 = vpop.f32.mrf.mxu1 }
 0x49e   : > { %v3921_v44 = vsel %vm3245_vm15, %v3667_v40, %v5376_v6  ;;  %v3922_v38 = vsel %vm3245_vm15, %v3669_v29, %v5377_v11  ;;  %v4283_v29 = vmax.f32 %v4141_v54, 0.0  ;;  %v4151_v57 = vadd.f32 %v9034_v31, %v8997_v24 }
 0x49f   : > { %v5380_v36 = vpop.permute.xlu0 %5379  ;;  %4832 = vmatprep.mubr.msk.f32.mxu1 %vm3957_vm0, %v3921_v44  ;;  %v4156_v44 = vadd.f32 %v9034_v31, %v9005_v22 }
 0x4a0   : > { %v5381_v59 = vunpack.i.l.bf16 %v5380_v36  ;;  %4259 = vmatmul.mubr.f32.gmra.mxu1 %v3889_v61  ;;  %v5382_v41 = vunpack.i.h.bf16 %v5380_v36  ;;  %v4285_v36 = vmax.f32 %v4151_v57, 0.0 }
 0x4a1   : > { %4833 = vmatprep.mubr.msk.f32.mxu1 %vm3957_vm0, %v3922_v38 }
 0x4a2   : > { %v3826_v21 = vsel %vm1850_vm10, %v8796_v28, %v5381_v59  ;;  %v3827_v51 = vsel %vm1850_vm10, %v8807_v10, %v5382_v41 }
 0x4a3   : > { %v3671_v33 = vpop.permute.xlu0 %3670  ;;  %v3858_v19 = vsel %vm1916_vm12, %v3826_v21, %v3575_v18  ;;  %v3859_v8 = vsel %vm1916_vm12, %v3827_v51, %v3577_v13 }
 0x4a4   : > { %v3923_v35 = vsel %vm3245_vm15, %v3671_v33, %v5376_v6  ;;  %4264 = vmatmul.mubr.f32.gmra.mxu1 %v3890_v43  ;;  %v3891_v37 = vsel %vm3860_vm7, %v3858_v19, %v3671_v33  ;;  %v4146_v6 = vadd.f32 %v9034_v31, %v8977_v55  ;;  %v4286_v55 = vmax.f32 %v4156_v44, 0.0 }
 0x4a5   : > { %4834 = vmatprep.mubr.msk.f32.mxu1 %vm3957_vm0, %v3923_v35 }
 0x4a6   : > { %v4284_v4 = vmax.f32 %v4146_v6, 0.0 }
 0x4a7   : > { %v4160_v52 = vpop.f32.mrf.mxu1  ;;  %v3673_v7 = vpop.permute.xlu0 %3672 }
 0x4a8   : > { %v3924_v28 = vsel %vm3245_vm15, %v3673_v7, %v5377_v11  ;;  %4269 = vmatmul.mubr.f32.gmra.mxu1 %v3891_v37  ;;  %v3892_v45 = vsel %vm3860_vm7, %v3859_v8, %v3673_v7  ;;  %v4282_v11 = vmax.f32 %v4136_v49, 0.0  ;;  %v4161_v61 = vadd.f32 %v9034_v31, %v4160_v52 }
 0x4a9   : > { %v4162_v14 = vpop.f32.mrf.mxu1  ;;  %4835 = vmatprep.mubr.msk.f32.mxu1 %vm3957_vm0, %v3924_v28 }
 0x4aa   : > { %v4287_v59 = vmax.f32 %v4161_v61, 0.0 }
 0x4ac   : > { %4274 = vmatmul.mubr.f32.gmra.mxu1 %v3892_v45 }
 0x4b7   : > { %v4165_v1 = vpop.f32.mrf.mxu1 }
 0x4b8   : > { %v4166_v24 = vadd.f32 %v9034_v31, %v4165_v1 }
 0x4b9   : > { %v4167_v46 = vpop.f32.mrf.mxu1 }
 0x4ba   : > { %v4288_v22 = vmax.f32 %v4166_v24, 0.0 }
 0x4c3   : > { %v4170_v63 = vpop.f32.mrf.mxu1 }
 0x4c4   : > { %v4171_v38 = vadd.f32 %v9034_v31, %v4170_v63 }
 0x4c5   : > { %v4172_v42 = vpop.f32.mrf.mxu1 }
 0x4c6   : > { %v4289_v41 = vmax.f32 %v4171_v38, 0.0 }
 0x4d3   : > { %v4175_v2 = vpop.f32.mrf.mxu1 }
 0x4d4   : > { %v4176_v21 = vadd.f32 %v9034_v31, %v4175_v2 }
 0x4d5   : > { %v4177_v25 = vpop.f32.mrf.mxu1 }
 0x4d6   : > { %v4290_v35 = vmax.f32 %v4176_v21, 0.0 }
 0x4df   : > { %v4180_v60 = vpop.f32.mrf.mxu1 }
 0x4e0   : > { %v4181_v33 = vadd.f32 %v9034_v31, %v4180_v60 }
 0x4e1   : > { %v4182_v10 = vpop.f32.mrf.mxu1 }
 0x4e2   : > { %v4291_v52 = vmax.f32 %v4181_v33, 0.0 }
 0x4ea   : > { %v4185_v58 = vpop.f32.mrf.mxu1 }
 0x4eb   : > { %v4186_v19 = vadd.f32 %v9034_v31, %v4185_v58 }
 0x4ec   : > { %v4187_v5 = vpop.f32.mrf.mxu1 }
 0x4ed   : > { %v4292_v37 = vmax.f32 %v4186_v19, 0.0  ;;  %v9108_v19 = vld [vmem:[%s9254_s6] ss:$0 sm:$0xff] }
 0x4ee   : > { %v4190_v12 = vpop.f32.mrf.mxu1 }
 0x4ef   : > { %v4191_v7 = vadd.f32 %v9034_v31, %v4190_v12 }
 0x4f0   : > { %v4192_v23 = vpop.f32.mrf.mxu1 }
 0x4f1   : > { %v4293_v13 = vmax.f32 %v4191_v7, 0.0 }
 0x4f6   : > { %v4120_v26 = vpop.f32.mrf.mxu0 }
 0x4f7   : > { %v4121_v30 = vadd.f32 %v9034_v31, %v4120_v26 }
 0x4f8   : > { %v4122_v48 = vpop.f32.mrf.mxu0 }
 0x4f9   : > { %v4279_v16 = vmax.f32 %v4121_v30, 0.0 }
 0x4fa   : > { %v4195_v3 = vpop.f32.mrf.mxu1 }
 0x4fb   : > { %5030 = vmatprep.mubr.msk.f32.mxu0 %vm1266_vm8, %v4279_v16  ;;  %v4196_v51 = vadd.f32 %v9034_v31, %v4195_v3 }
 0x4fc   : > { %v4197_v39 = vpop.f32.mrf.mxu1 }
 0x4fd   : > { %v4294_v45 = vmax.f32 %v4196_v51, 0.0 }
 0x502   : > { %v4125_v27 = vpop.f32.mrf.mxu0 }
 0x503   : > { %v4126_v56 = vadd.f32 %v9034_v31, %v4125_v27 }
 0x504   : > { %v4127_v62 = vpop.f32.mrf.mxu0 }
 0x505   : > { %v4280_v47 = vmax.f32 %v4126_v56, 0.0 }
 0x506   : > { %v4200_v0 = vpop.f32.mrf.mxu1 }
 0x507   : > { %5031 = vmatmul.mubr.msk.f32.vlgmr.msra.gmra.mxu0 %vm1266_vm8, %v4280_v47  ;;  %v4201_v14 = vadd.f32 %v9034_v31, %v4200_v0 }
 0x508   : > { %v4202_v40 = vpop.f32.mrf.mxu1 }
 0x509   : > { %v4295_v63 = vmax.f32 %v4201_v14, 0.0 }
 0x50e   : > { %v4130_v17 = vpop.f32.mrf.mxu0 }
 0x50f   : > { %v4131_v32 = vadd.f32 %v9034_v31, %v4130_v17 }
 0x510   : > { %v4132_v15 = vpop.f32.mrf.mxu0 }
 0x511   : > { %v4281_v20 = vmax.f32 %v4131_v32, 0.0 }
 0x512   : > { %v4205_v34 = vpop.f32.mrf.mxu1 }
 0x513   : > { %5033 = vmatprep.mubr.msk.f32.mxu0 %vm1266_vm8, %v4281_v20  ;;  %v4206_v1 = vadd.f32 %v9034_v31, %v4205_v34 }
 0x514   : > { %v4207_v50 = vpop.f32.mrf.mxu1  ;;  %5034 = vmatmul.mubr.msk.f32.gmra.mxu0 %vm1266_vm8, %v4282_v11 }
 0x515   : > { %5036 = vmatprep.mubr.msk.f32.mxu0 %vm1266_vm8, %v4283_v29  ;;  %v4296_v25 = vmax.f32 %v4206_v1, 0.0 }
 0x518   : > { %5037 = vmatmul.mubr.msk.f32.gmra.mxu0 %vm1266_vm8, %v4284_v4 }
 0x519   : > { %5039 = vmatprep.mubr.msk.f32.mxu0 %vm1266_vm8, %v4285_v36 }
 0x51a   : > { %v4210_v9 = vpop.f32.mrf.mxu1 }
 0x51b   : > { %v4211_v42 = vadd.f32 %v9034_v31, %v4210_v9 }
 0x51c   : > { %v4212_v53 = vpop.f32.mrf.mxu1  ;;  %5040 = vmatmul.mubr.msk.f32.gmra.mxu0 %vm1266_vm8, %v4286_v55 }
 0x51d   : > { %5042 = vmatprep.mubr.msk.f32.mxu0 %vm1266_vm8, %v4287_v59  ;;  %v4297_v10 = vmax.f32 %v4211_v42, 0.0 }
 0x51e   : > { %v4215_v18 = vpop.f32.mrf.mxu1 }
 0x51f   : > { %v4216_v60 = vadd.f32 %v9034_v31, %v4215_v18 }
 0x520   : > { %v4217_v43 = vpop.f32.mrf.mxu1  ;;  %5043 = vmatmul.mubr.msk.f32.gmra.mxu0 %vm1266_vm8, %v4288_v22 }
 0x521   : > { %5045 = vmatprep.mubr.msk.f32.mxu0 %vm1266_vm8, %v4289_v41  ;;  %v4298_v5 = vmax.f32 %v4216_v60, 0.0 }
 0x524   : > { %5046 = vmatmul.mubr.msk.f32.gmra.mxu0 %vm1266_vm8, %v4290_v35 }
 0x525   : > { %5048 = vmatprep.mubr.msk.f32.mxu0 %vm1266_vm8, %v4291_v52 }
 0x526   : > { %v4220_v28 = vpop.f32.mrf.mxu1 }
 0x527   : > { %v4221_v58 = vadd.f32 %v9034_v31, %v4220_v28 }
 0x528   : > { %v4222_v8 = vpop.f32.mrf.mxu1  ;;  %5049 = vmatmul.mubr.msk.f32.gmra.mxu0 %vm1266_vm8, %v4292_v37  ;;  %v5384_v37 = vld [vmem:[%s5507_s29 + $0x8] sm:$0xff] }
 0x529   : > { %5051 = vmatprep.mubr.msk.f32.mxu0 %vm1266_vm8, %v4293_v13  ;;  %v4299_v26 = vmax.f32 %v4221_v58, 0.0  ;;  %v5385_v13 = vld [vmem:[%s5507_s29] sm:$0xff] }
 0x52a   : > { %v4225_v46 = vpop.f32.mrf.mxu1 }
 0x52b   : > { %v4226_v12 = vadd.f32 %v9034_v31, %v4225_v46  ;;  %v5386_v46 = vld [vmem:[%s5507_s29 + $0x18] sm:$0xff] }
 0x52c   : > { %v4227_v2 = vpop.f32.mrf.mxu1  ;;  %5052 = vmatmul.mubr.msk.f32.gmra.mxu0 %vm1266_vm8, %v4294_v45 }
 0x52d   : > { %5054 = vmatprep.mubr.msk.f32.mxu0 %vm1266_vm8, %v4295_v63  ;;  %v4300_v16 = vmax.f32 %v4226_v12, 0.0 }
 0x530   : > { %5055 = vmatmul.mubr.msk.f32.gmra.mxu0 %vm1266_vm8, %v4296_v25  ;;  %v5387_v25 = vld [vmem:[%s5507_s29 + $0x10] sm:$0xff] }
 0x531   : > { %5057 = vmatprep.mubr.msk.f32.mxu0 %vm1266_vm8, %v4297_v10 }
 0x532   : > { %v4230_v23 = vpop.f32.mrf.mxu1 }
 0x533   : > { %v4231_v30 = vadd.f32 %v9034_v31, %v4230_v23 }
 0x534   : > { %v4232_v48 = vpop.f32.mrf.mxu1  ;;  %5058 = vmatmul.mubr.msk.f32.gmra.mxu0 %vm1266_vm8, %v4298_v5  ;;  %v5388_v5 = vld [vmem:[%s5507_s29 + $0x28] sm:$0xff] }
 0x535   : > { %5060 = vmatprep.mubr.msk.f32.mxu0 %vm1266_vm8, %v4299_v26  ;;  %v4301_v39 = vmax.f32 %v4231_v30, 0.0  ;;  %v5389_v30 = vld [vmem:[%s5507_s29 + $0x20] sm:$0xff] }
 0x536   : > { %v4235_v3 = vpop.f32.mrf.mxu1 }
 0x537   : > { %v4236_v27 = vadd.f32 %v9034_v31, %v4235_v3 }
 0x538   : > { %v4237_v56 = vpop.f32.mrf.mxu1  ;;  %5061 = vmatmul.mubr.msk.f32.gmra.mxu0 %vm1266_vm8, %v4300_v16 }
 0x539   : > { %v4302_v62 = vmax.f32 %v4236_v27, 0.0  ;;  %5063 = vmatprep.mubr.msk.f32.mxu0 %vm1266_vm8, %v4301_v39  ;;  %v5390_v39 = vld [vmem:[%s5507_s29 + $0x38] sm:$0xff] }
 0x53c   : > { %5064 = vmatmul.mubr.msk.f32.gmra.mxu0 %vm1266_vm8, %v4302_v62 }
 0x53e   : > { %v4240_v47 = vpop.f32.mrf.mxu1 }
 0x53f   : > { %v4241_v0 = vadd.f32 %v9034_v31, %v4240_v47  ;;  %v5391_v47 = vld [vmem:[%s5507_s29 + $0x30] sm:$0xff] }
 0x540   : > { %v4242_v40 = vpop.f32.mrf.mxu1 }
 0x541   : > { %v4303_v49 = vmax.f32 %v4241_v0, 0.0 }
 0x542   : > { %v4245_v17 = vpop.f32.mrf.mxu1 }
 0x543   : > { %v4246_v54 = vadd.f32 %v9034_v31, %v4245_v17  ;;  %5066 = vmatprep.mubr.msk.f32.mxu0 %vm1266_vm8, %v4303_v49  ;;  %v5392_v17 = vld [vmem:[%s5507_s29 + $0x48] sm:$0xff] }
 0x544   : > { %v4247_v32 = vpop.f32.mrf.mxu1 }
 0x545   : > { %v4304_v15 = vmax.f32 %v4246_v54, 0.0 }
 0x547   : > { %5067 = vmatmul.mubr.msk.f32.gmra.mxu0 %vm1266_vm8, %v4304_v15 }
 0x54a   : > { %v4250_v20 = vpop.f32.mrf.mxu1 }
 0x54b   : > { %v4251_v11 = vadd.f32 %v9034_v31, %v4250_v20  ;;  %v5393_v20 = vld [vmem:[%s5507_s29 + $0x40] sm:$0xff] }
 0x54c   : > { %v4252_v6 = vpop.f32.mrf.mxu1 }
 0x54d   : > { %v4305_v34 = vmax.f32 %v4251_v11, 0.0 }
 0x54f   : > { %5069 = vmatprep.mubr.msk.f32.mxu0 %vm1266_vm8, %v4305_v34 }
 0x556   : > { %v4255_v29 = vpop.f32.mrf.mxu1 }
 0x557   : > { %v4256_v57 = vadd.f32 %v9034_v31, %v4255_v29  ;;  %v5394_v29 = vld [vmem:[%s5507_s29 + $0x58] sm:$0xff] }
 0x558   : > { %v4257_v50 = vpop.f32.mrf.mxu1 }
 0x559   : > { %v4306_v4 = vmax.f32 %v4256_v57, 0.0 }
 0x55b   : > { %5070 = vmatmul.mubr.msk.f32.gmra.mxu0 %vm1266_vm8, %v4306_v4 }
 0x560   : > { %v4260_v44 = vpop.f32.mrf.mxu1 }
 0x561   : > { %v4261_v36 = vadd.f32 %v9034_v31, %v4260_v44  ;;  %v5395_v44 = vld [vmem:[%s5507_s29 + $0x50] sm:$0xff] }
 0x562   : > { %v4262_v61 = vpop.f32.mrf.mxu1 }
 0x563   : > { %v4307_v55 = vmax.f32 %v4261_v36, 0.0 }
 0x564   : > { %v4265_v24 = vpop.f32.mrf.mxu1 }
 0x565   : > { %v4266_v9 = vadd.f32 %v9034_v31, %v4265_v24  ;;  %5072 = vmatprep.mubr.msk.f32.mxu0 %vm1266_vm8, %v4307_v55  ;;  %v5396_v24 = vld [vmem:[%s5507_s29 + $0x68] sm:$0xff] }
 0x566   : > { %v4267_v59 = vpop.f32.mrf.mxu1 }
 0x567   : > { %v4308_v38 = vmax.f32 %v4266_v9, 0.0 }
 0x568   : > { %v4270_v53 = vpop.f32.mrf.mxu1 }
 0x569   : > { %v4271_v22 = vadd.f32 %v9034_v31, %v4270_v53  ;;  %5073 = vmatmul.mubr.msk.f32.gmra.mxu0 %vm1266_vm8, %v4308_v38  ;;  %v5397_v53 = vld [vmem:[%s5507_s29 + $0x60] sm:$0xff] }
 0x56a   : > { %v4272_v21 = vpop.f32.mrf.mxu1 }
 0x56b   : > { %v4309_v18 = vmax.f32 %v4271_v22, 0.0 }
 0x56c   : > { %v4275_v41 = vpop.f32.mrf.mxu1 }
 0x56d   : > { %v4276_v33 = vadd.f32 %v9034_v31, %v4275_v41  ;;  %5075 = vmatprep.mubr.msk.f32.mxu0 %vm1266_vm8, %v4309_v18  ;;  %v5398_v41 = vld [vmem:[%s5507_s29 + $0x78] sm:$0xff] }
 0x56e   : > { %v4277_v43 = vpop.f32.mrf.mxu1 }
 0x56f   : > { %v4310_v35 = vmax.f32 %v4276_v33, 0.0 }
 0x571   : > { %5076 = vmatmul.mubr.msk.f32.gmra.mxu0 %vm1266_vm8, %v4310_v35 }
 0x5c7   : > { %v5032_v52 = vpop.f32.mrf.mxu0 }
 0x5c8   : > { %v4488_v7 = vadd.f32 %v5032_v52, %v9108_v19  ;;  %v5399_v52 = vld [vmem:[%s5507_s29 + $0x70] sm:$0xff] }
 0x5c9   : > { %v4482_v31 = vpop.f32.mrf.mxu0 }
 0x5ca   : > { %v4642_v51 = vadd.f32 %v5384_v37, %v4488_v7  ;;  %v4483_v28 = vadd.f32 %v9108_v19, %v4482_v31 }
 0x5cc   : > { %4674 = vst.msk [vmem:[%s9116_s18 + $0x8] sm:$0xff] %vm1173_vm5, %v4642_v51  ;;  %v4641_v14 = vadd.f32 %v5385_v13, %v4483_v28  ;;  %v5400_v51 = vld [vmem:[%s5507_s29 + $0x88] sm:$0xff] }
 0x5ce   : > { %4673 = vst.msk [vmem:[%s9116_s18] sm:$0xff] %vm1173_vm5, %v4641_v14 }
 0x5d4   : > { %v5035_v8 = vpop.f32.mrf.mxu0 }
 0x5d5   : > { %v4498_v45 = vadd.f32 %v5035_v8, %v9108_v19  ;;  %v5401_v8 = vld [vmem:[%s5507_s29 + $0x80] sm:$0xff] }
 0x5d6   : > { %v4492_v1 = vpop.f32.mrf.mxu0 }
 0x5d7   : > { %v4644_v63 = vadd.f32 %v5386_v46, %v4498_v45  ;;  %v4493_v42 = vadd.f32 %v9108_v19, %v4492_v1 }
 0x5d8   : > { %v5038_v2 = vpop.f32.mrf.mxu0 }
 0x5d9   : > { %4676 = vst.msk [vmem:[%s9116_s18 + $0x18] sm:$0xff] %vm1173_vm5, %v4644_v63  ;;  %v4643_v60 = vadd.f32 %v5387_v25, %v4493_v42  ;;  %v4508_v10 = vadd.f32 %v5038_v2, %v9108_v19  ;;  %v5402_v63 = vld [vmem:[%s5507_s29 + $0x98] sm:$0xff] }
 0x5da   : > { %v4502_v58 = vpop.f32.mrf.mxu0 }
 0x5db   : > { %4675 = vst.msk [vmem:[%s9116_s18 + $0x10] sm:$0xff] %vm1173_vm5, %v4643_v60  ;;  %v4646_v12 = vadd.f32 %v5388_v5, %v4508_v10  ;;  %v4503_v23 = vadd.f32 %v9108_v19, %v4502_v58  ;;  %v5403_v60 = vld [vmem:[%s5507_s29 + $0x90] sm:$0xff] }
 0x5dc   : > { %v5041_v26 = vpop.f32.mrf.mxu0 }
 0x5dd   : > { %4678 = vst.msk [vmem:[%s9116_s18 + $0x28] sm:$0xff] %vm1173_vm5, %v4646_v12  ;;  %v4645_v48 = vadd.f32 %v5389_v30, %v4503_v23  ;;  %v4518_v16 = vadd.f32 %v5041_v26, %v9108_v19  ;;  %v5404_v12 = vld [vmem:[%s5507_s29 + $0xa8] sm:$0xff] }
 0x5de   : > { %v4512_v3 = vpop.f32.mrf.mxu0 }
 0x5df   : > { %4677 = vst.msk [vmem:[%s9116_s18 + $0x20] sm:$0xff] %vm1173_vm5, %v4645_v48  ;;  %v4648_v27 = vadd.f32 %v5390_v39, %v4518_v16  ;;  %v4513_v56 = vadd.f32 %v9108_v19, %v4512_v3  ;;  %v5405_v48 = vld [vmem:[%s5507_s29 + $0xa0] sm:$0xff] }
 0x5e0   : > { %v5044_v62 = vpop.f32.mrf.mxu0 }
 0x5e1   : > { %4680 = vst.msk [vmem:[%s9116_s18 + $0x38] sm:$0xff] %vm1173_vm5, %v4648_v27  ;;  %v4647_v0 = vadd.f32 %v5391_v47, %v4513_v56  ;;  %v4528_v40 = vadd.f32 %v5044_v62, %v9108_v19  ;;  %v5406_v27 = vld [vmem:[%s5507_s29 + $0xb8] sm:$0xff]  ;;  %v5407_v47 = vld [vmem:[%s5507_s29 + $0xb0] sm:$0xff] }
 0x5e2   : > { %v4522_v49 = vpop.f32.mrf.mxu0 }
 0x5e3   : > { %4679 = vst.msk [vmem:[%s9116_s18 + $0x30] sm:$0xff] %vm1173_vm5, %v4647_v0  ;;  %v4650_v54 = vadd.f32 %v5392_v17, %v4528_v40  ;;  %v4523_v32 = vadd.f32 %v9108_v19, %v4522_v49 }
 0x5e4   : > { %v5047_v15 = vpop.f32.mrf.mxu0 }
 0x5e5   : > { %4682 = vst.msk [vmem:[%s9116_s18 + $0x48] sm:$0xff] %vm1173_vm5, %v4650_v54  ;;  %v4649_v11 = vadd.f32 %v5393_v20, %v4523_v32  ;;  %v4538_v6 = vadd.f32 %v5047_v15, %v9108_v19  ;;  %v5408_v54 = vld [vmem:[%s5507_s29 + $0xc8] sm:$0xff]  ;;  %v5409_v20 = vld [vmem:[%s5507_s29 + $0xc0] sm:$0xff] }
 0x5e6   : > { %v4532_v34 = vpop.f32.mrf.mxu0 }
 0x5e7   : > { %4681 = vst.msk [vmem:[%s9116_s18 + $0x40] sm:$0xff] %vm1173_vm5, %v4649_v11  ;;  %v4652_v57 = vadd.f32 %v5394_v29, %v4538_v6  ;;  %v4533_v50 = vadd.f32 %v9108_v19, %v4532_v34 }
 0x5e8   : > { %v5050_v4 = vpop.f32.mrf.mxu0 }
 0x5e9   : > { %4684 = vst.msk [vmem:[%s9116_s18 + $0x58] sm:$0xff] %vm1173_vm5, %v4652_v57  ;;  %v4651_v36 = vadd.f32 %v5395_v44, %v4533_v50  ;;  %v4548_v61 = vadd.f32 %v5050_v4, %v9108_v19  ;;  %v5410_v57 = vld [vmem:[%s5507_s29 + $0xd8] sm:$0xff]  ;;  %v5411_v44 = vld [vmem:[%s5507_s29 + $0xd0] sm:$0xff] }
 0x5ea   : > { %v4542_v55 = vpop.f32.mrf.mxu0 }
 0x5eb   : > { %4683 = vst.msk [vmem:[%s9116_s18 + $0x50] sm:$0xff] %vm1173_vm5, %v4651_v36  ;;  %v4654_v9 = vadd.f32 %v5396_v24, %v4548_v61  ;;  %v4543_v59 = vadd.f32 %v9108_v19, %v4542_v55 }
 0x5ec   : > { %v5053_v38 = vpop.f32.mrf.mxu0 }
 0x5ed   : > { %4686 = vst.msk [vmem:[%s9116_s18 + $0x68] sm:$0xff] %vm1173_vm5, %v4654_v9  ;;  %v4653_v22 = vadd.f32 %v5397_v53, %v4543_v59  ;;  %v4558_v21 = vadd.f32 %v5053_v38, %v9108_v19  ;;  %v5412_v9 = vld [vmem:[%s5507_s29 + $0xe8] sm:$0xff]  ;;  %v5413_v53 = vld [vmem:[%s5507_s29 + $0xe0] sm:$0xff] }
 0x5ee   : > { %v4552_v18 = vpop.f32.mrf.mxu0 }
 0x5ef   : > { %4685 = vst.msk [vmem:[%s9116_s18 + $0x60] sm:$0xff] %vm1173_vm5, %v4653_v22  ;;  %v4656_v33 = vadd.f32 %v5398_v41, %v4558_v21  ;;  %v4553_v43 = vadd.f32 %v9108_v19, %v4552_v18 }
 0x5f0   : > { %v5056_v35 = vpop.f32.mrf.mxu0 }
 0x5f1   : > { %4688 = vst.msk [vmem:[%s9116_s18 + $0x78] sm:$0xff] %vm1173_vm5, %v4656_v33  ;;  %v4655_v7 = vadd.f32 %v5399_v52, %v4553_v43  ;;  %v4568_v31 = vadd.f32 %v5056_v35, %v9108_v19  ;;  %v5414_v33 = vld [vmem:[%s5507_s29 + $0xf8] sm:$0xff]  ;;  %v5415_v52 = vld [vmem:[%s5507_s29 + $0xf0] sm:$0xff] }
 0x5f2   : > { %v4562_v37 = vpop.f32.mrf.mxu0 }
 0x5f3   : > { %4687 = vst.msk [vmem:[%s9116_s18 + $0x70] sm:$0xff] %vm1173_vm5, %v4655_v7  ;;  %v4658_v28 = vadd.f32 %v5400_v51, %v4568_v31  ;;  %v4563_v13 = vadd.f32 %v9108_v19, %v4562_v37 }
 0x5f4   : > { %v5059_v14 = vpop.f32.mrf.mxu0 }
 0x5f5   : > { %4690 = vst.msk [vmem:[%s9116_s18 + $0x88] sm:$0xff] %vm1173_vm5, %v4658_v28  ;;  %v4657_v45 = vadd.f32 %v5401_v8, %v4563_v13  ;;  %v4578_v1 = vadd.f32 %v5059_v14, %v9108_v19 }
 0x5f6   : > { %v4572_v46 = vpop.f32.mrf.mxu0 }
 0x5f7   : > { %4689 = vst.msk [vmem:[%s9116_s18 + $0x80] sm:$0xff] %vm1173_vm5, %v4657_v45  ;;  %v4660_v42 = vadd.f32 %v5402_v63, %v4578_v1  ;;  %v4573_v2 = vadd.f32 %v9108_v19, %v4572_v46 }
 0x5f8   : > { %v5062_v25 = vpop.f32.mrf.mxu0 }
 0x5f9   : > { %4692 = vst.msk [vmem:[%s9116_s18 + $0x98] sm:$0xff] %vm1173_vm5, %v4660_v42  ;;  %v4659_v10 = vadd.f32 %v5403_v60, %v4573_v2  ;;  %v4588_v58 = vadd.f32 %v5062_v25, %v9108_v19 }
 0x5fa   : > { %v4582_v5 = vpop.f32.mrf.mxu0 }
 0x5fb   : > { %4691 = vst.msk [vmem:[%s9116_s18 + $0x90] sm:$0xff] %vm1173_vm5, %v4659_v10  ;;  %v4662_v23 = vadd.f32 %v5404_v12, %v4588_v58  ;;  %v4583_v26 = vadd.f32 %v9108_v19, %v4582_v5 }
 0x5fc   : > { %v5065_v30 = vpop.f32.mrf.mxu0 }
 0x5fd   : > { %4694 = vst.msk [vmem:[%s9116_s18 + $0xa8] sm:$0xff] %vm1173_vm5, %v4662_v23  ;;  %v4661_v16 = vadd.f32 %v5405_v48, %v4583_v26  ;;  %v4598_v3 = vadd.f32 %v5065_v30, %v9108_v19 }
 0x5fe   : > { %v4592_v39 = vpop.f32.mrf.mxu0 }
 0x5ff   : > { %4693 = vst.msk [vmem:[%s9116_s18 + $0xa0] sm:$0xff] %vm1173_vm5, %v4661_v16  ;;  %v4664_v56 = vadd.f32 %v5406_v27, %v4598_v3  ;;  %v4593_v62 = vadd.f32 %v9108_v19, %v4592_v39 }
 0x601   : > { %4696 = vst.msk [vmem:[%s9116_s18 + $0xb8] sm:$0xff] %vm1173_vm5, %v4664_v56  ;;  %v4663_v0 = vadd.f32 %v5407_v47, %v4593_v62 }
 0x603   : > { %4695 = vst.msk [vmem:[%s9116_s18 + $0xb0] sm:$0xff] %vm1173_vm5, %v4663_v0 }
 0x607   : > { %v5068_v40 = vpop.f32.mrf.mxu0 }
 0x608   : > { %v4608_v49 = vadd.f32 %v5068_v40, %v9108_v19 }
 0x609   : > { %v4602_v17 = vpop.f32.mrf.mxu0 }
 0x60a   : > { %v4666_v32 = vadd.f32 %v5408_v54, %v4608_v49  ;;  %v4603_v15 = vadd.f32 %v9108_v19, %v4602_v17 }
 0x60c   : > { %4698 = vst.msk [vmem:[%s9116_s18 + $0xc8] sm:$0xff] %vm1173_vm5, %v4666_v32  ;;  %v4665_v11 = vadd.f32 %v5409_v20, %v4603_v15 }
 0x60e   : > { %4697 = vst.msk [vmem:[%s9116_s18 + $0xc0] sm:$0xff] %vm1173_vm5, %v4665_v11 }
 0x61b   : > { %v5071_v6 = vpop.f32.mrf.mxu0 }
 0x61c   : > { %v4618_v34 = vadd.f32 %v5071_v6, %v9108_v19 }
 0x61d   : > { %v4612_v29 = vpop.f32.mrf.mxu0 }
 0x61e   : > { %v4668_v50 = vadd.f32 %v5410_v57, %v4618_v34  ;;  %v4613_v4 = vadd.f32 %v9108_v19, %v4612_v29 }
 0x620   : > { %4700 = vst.msk [vmem:[%s9116_s18 + $0xd8] sm:$0xff] %vm1173_vm5, %v4668_v50  ;;  %v4667_v36 = vadd.f32 %v5411_v44, %v4613_v4 }
 0x622   : > { %4699 = vst.msk [vmem:[%s9116_s18 + $0xd0] sm:$0xff] %vm1173_vm5, %v4667_v36 }
 0x629   : > { %v5074_v61 = vpop.f32.mrf.mxu0 }
 0x62a   : > { %v4628_v55 = vadd.f32 %v5074_v61, %v9108_v19 }
 0x62b   : > { %v4622_v24 = vpop.f32.mrf.mxu0 }
 0x62c   : > { %v4670_v59 = vadd.f32 %v5412_v9, %v4628_v55  ;;  %v4623_v38 = vadd.f32 %v9108_v19, %v4622_v24 }
 0x62e   : > { %4702 = vst.msk [vmem:[%s9116_s18 + $0xe8] sm:$0xff] %vm1173_vm5, %v4670_v59  ;;  %v4669_v22 = vadd.f32 %v5413_v53, %v4623_v38 }
 0x630   : > { %4701 = vst.msk [vmem:[%s9116_s18 + $0xe0] sm:$0xff] %vm1173_vm5, %v4669_v22 }
 0x631   : > { %v5077_v21 = vpop.f32.mrf.mxu0 }
 0x632   : > { %v4638_v18 = vadd.f32 %v5077_v21, %v9108_v19 }
 0x633   : > { %v4632_v41 = vpop.f32.mrf.mxu0 }
 0x634   : > { %v4672_v43 = vadd.f32 %v5414_v33, %v4638_v18  ;;  %v4633_v35 = vadd.f32 %v9108_v19, %v4632_v41 }
 0x636   : > { %4704 = vst.msk [vmem:[%s9116_s18 + $0xf8] sm:$0xff] %vm1173_vm5, %v4672_v43  ;;  %v4671_v7 = vadd.f32 %v5415_v52, %v4633_v35 }
 0x638   : > { %4703 = vst.msk [vmem:[%s9116_s18 + $0xf0] sm:$0xff] %vm1173_vm5, %v4671_v7 }
 0x639 PF: > { %s17_s24 = sadd.s32 1, %s5422_s24  }
 0x63a   : > { %p14_p4 = scmp.ge.s32.totalorder %s17_s24, 4  }
 0x63c   :  { %16 = sbr.rel (!%p14_p4) target bundleno = 1 (0x1), region = 78 }

</bundles_post_ra>
